<compile_context>
chip_gen: v5e
topology: v5e:2x2
jax: 0.10.0
libtpu: 0.0.40
codegen_flags: <defaults>
</compile_context>

<pallas_src>
import math

import jax
import jax.numpy as jnp
from jax import lax
from jax.experimental import pallas as pl
from jax.experimental.pallas import tpu as pltpu


def actor_kernel(x_ref, w1_ref, b1_ref, gamma_ref, beta_ref,
                 w2_ref, b2_ref, w3_ref, b3_ref, o_ref):
    # Weights arrive as bf16 and go straight to the MXU (native bf16 path,
    # f32 accumulation).  Only the small (B, ·) activations are cast.
    x = x_ref[...].astype(jnp.bfloat16)                      # (B, obs_pad)

    # --- Linear 1 + ReLU ----------------------------------------------------
    h1 = jnp.dot(x, w1_ref[...], preferred_element_type=jnp.float32)
    h1 = jnp.maximum(h1 + b1_ref[...], 0.0)                  # (B, H) f32

    # --- BatchNorm1d (training mode: biased batch statistics) ---------------
    eps = 1e-5
    mean = jnp.mean(h1, axis=0, keepdims=True)               # (1, H)
    xc = h1 - mean                                           # centered once
    var = jnp.mean(xc * xc, axis=0, keepdims=True)           # (1, H)
    scale = gamma_ref[...] * lax.rsqrt(var + eps)            # fold gamma in row
    h1n = xc * scale + beta_ref[...]                         # one FMA pass

    # --- Linear 2 + ReLU ----------------------------------------------------
    h2 = jnp.dot(h1n.astype(jnp.bfloat16), w2_ref[...],
                 preferred_element_type=jnp.float32)
    h2 = jnp.maximum(h2 + b2_ref[...], 0.0)                  # (B, H)

    # --- Linear 3 + Tanh (output padded to 128 lanes; lane-dense store) -----
    out = jnp.dot(h2.astype(jnp.bfloat16), w3_ref[...],
                  preferred_element_type=jnp.float32)
    o_ref[...] = jnp.tanh(out + b3_ref[...]).astype(o_ref.dtype)   # (B, A_pad)


def actor_forward(state, params, num_actions):
    (w1, b1, gamma, beta, w2, b2, w3, b3) = params
    batch = state.shape[0]
    obs_pad = w1.shape[0]                    # lane-padded observation dim
    a_pad = w3.shape[1]                      # lane-padded action dim (>=128)

    # Lane-pad the state to match the zero-padded w1 rows (lane-dense x load).
    if state.shape[1] < obs_pad:
        state = jnp.pad(state, ((0, 0), (0, obs_pad - state.shape[1])))

    vmem_full = pl.BlockSpec(memory_space=pltpu.MemorySpace.VMEM)

    out_padded = pl.pallas_call(
        actor_kernel,
        out_shape=jax.ShapeDtypeStruct((batch, a_pad), jnp.float32),
        in_specs=[vmem_full] * 9,
        out_specs=vmem_full,
        compiler_params=pltpu.CompilerParams(vmem_limit_bytes=16 << 20),
    )(state, w1, b1, gamma, beta, w2, b2, w3, b3)

    # Slice the lane padding off outside the kernel.
    return out_padded[:, :num_actions]


def init_actor_params(key, observation_size, num_actions, hidden=1024):
    """PyTorch nn.Linear-style init (uniform(-1/sqrt(fan_in), 1/sqrt(fan_in)));
    BatchNorm gamma=1, beta=0.  Weights stored bf16 (kernel is DMA-bound),
    biases/affine kept f32.  w1 is zero-row-padded to a 128-lane observation
    dim; w3/b3 are zero-padded to a 128-lane output."""
    ks = jax.random.split(key, 6)

    def linear(kw, kb, fan_in, fan_out, pad_in=None, pad_out=None):
        bound = 1.0 / math.sqrt(fan_in)
        w = jax.random.uniform(kw, (fan_in, fan_out), jnp.float32, -bound, bound)
        b = jax.random.uniform(kb, (1, fan_out), jnp.float32, -bound, bound)
        if pad_in is not None and pad_in > fan_in:
            w = jnp.pad(w, ((0, pad_in - fan_in), (0, 0)))
        if pad_out is not None and pad_out > fan_out:
            w = jnp.pad(w, ((0, 0), (0, pad_out - fan_out)))
            b = jnp.pad(b, ((0, 0), (0, pad_out - fan_out)))
        return w, b

    obs_pad = max(128, ((observation_size + 127) // 128) * 128)
    a_pad = max(128, ((num_actions + 127) // 128) * 128)

    w1, b1 = linear(ks[0], ks[1], observation_size, hidden, pad_in=obs_pad)
    w2, b2 = linear(ks[2], ks[3], hidden, hidden)
    w3, b3 = linear(ks[4], ks[5], hidden, num_actions, pad_out=a_pad)
    gamma = jnp.ones((1, hidden), jnp.float32)
    beta = jnp.zeros((1, hidden), jnp.float32)

    return (w1.astype(jnp.bfloat16), b1, gamma, beta,
            w2.astype(jnp.bfloat16), b2,
            w3.astype(jnp.bfloat16), b3)


def actor_reference(state, params, num_actions):
    """Pure-JAX reference matching the kernel's math ordering: bf16 operands
    into the matmuls, f32 accumulation, f32 BatchNorm/activations."""
    (w1, b1, gamma, beta, w2, b2, w3, b3) = params
    obs_pad = w1.shape[0]
    if state.shape[1] < obs_pad:
        state = jnp.pad(state, ((0, 0), (0, obs_pad - state.shape[1])))

    h1 = jnp.dot(state.astype(jnp.bfloat16), w1,
                 preferred_element_type=jnp.float32)
    h1 = jnp.maximum(h1 + b1, 0.0)
    mean = jnp.mean(h1, axis=0, keepdims=True)
    var = jnp.mean((h1 - mean) ** 2, axis=0, keepdims=True)
    h1n = (h1 - mean) * (gamma * lax.rsqrt(var + 1e-5)) + beta
    h2 = jnp.dot(h1n.astype(jnp.bfloat16), w2,
                 preferred_element_type=jnp.float32)
    h2 = jnp.maximum(h2 + b2, 0.0)
    out = jnp.dot(h2.astype(jnp.bfloat16), w3,
                  preferred_element_type=jnp.float32)
    return jnp.tanh(out + b3)[:, :num_actions]


if __name__ == "__main__":
    observation_size = 32
    num_actions = 8
    batch = 8                      # multiple of 8 sublanes

    key = jax.random.PRNGKey(0)
    k_params, k_state = jax.random.split(key)

    params = init_actor_params(k_params, observation_size, num_actions)
    state = jax.random.normal(k_state, (batch, observation_size), jnp.float32)

    out = actor_forward(state, params, num_actions)
    out = jax.block_until_ready(out)

    ref = actor_reference(state, params, num_actions)
    assert out.shape == (batch, num_actions)
    assert bool(jnp.allclose(out, ref, atol=2e-2, rtol=2e-2)), \
        "mismatch vs reference"

    print("KERNEL_OK")
</pallas_src>

<mosaic_0001>
module attributes {stable_mosaic.version = 11 : i64} {
  func.func @actor_kernel(%arg0: memref<8x128xf32, #tpu.memory_space<vmem>>, %arg1: memref<128x1024xbf16, #tpu.memory_space<vmem>>, %arg2: memref<1x1024xf32, #tpu.memory_space<vmem>>, %arg3: memref<1x1024xf32, #tpu.memory_space<vmem>>, %arg4: memref<1x1024xf32, #tpu.memory_space<vmem>>, %arg5: memref<1024x1024xbf16, #tpu.memory_space<vmem>>, %arg6: memref<1x1024xf32, #tpu.memory_space<vmem>>, %arg7: memref<1024x128xbf16, #tpu.memory_space<vmem>>, %arg8: memref<1x128xf32, #tpu.memory_space<vmem>>, %arg9: memref<8x128xf32, #tpu.memory_space<vmem>>) attributes {dimension_semantics = [], scalar_prefetch = 0 : i64, scratch_operands = 0 : i64, tpu.core_type = #tpu.core_type<tc>} {
    %c0 = arith.constant 0 : index
    %c0_0 = arith.constant 0 : index
    %0 = vector.load %arg0[%c0, %c0_0] : memref<8x128xf32, #tpu.memory_space<vmem>>, vector<8x128xf32>
    %1 = arith.truncf %0 : vector<8x128xf32> to vector<8x128xbf16>
    %c0_1 = arith.constant 0 : index
    %c0_2 = arith.constant 0 : index
    %2 = vector.load %arg1[%c0_1, %c0_2] : memref<128x1024xbf16, #tpu.memory_space<vmem>>, vector<128x1024xbf16>
    %cst = arith.constant dense<0.000000e+00> : vector<8x1024xf32>
    %3 = tpu.matmul %1, %2, %cst {dimension_numbers = #tpu.dot_dimension_numbers<[1], [0], [0], [1], [0, 0, 1, 1], [], []>} : vector<8x128xbf16>, vector<128x1024xbf16>, vector<8x1024xf32> -> vector<8x1024xf32>
    %c0_3 = arith.constant 0 : index
    %c0_4 = arith.constant 0 : index
    %4 = vector.load %arg2[%c0_3, %c0_4] : memref<1x1024xf32, #tpu.memory_space<vmem>>, vector<1x1024xf32>
    %5 = vector.broadcast %4 : vector<1x1024xf32> to vector<8x1024xf32>
    %6 = arith.addf %3, %5 : vector<8x1024xf32>
    %cst_5 = arith.constant 0.000000e+00 : f32
    %7 = vector.broadcast %cst_5 : f32 to vector<8x1024xf32>
    %8 = arith.maximumf %6, %7 : vector<8x1024xf32>
    %cst_6 = arith.constant dense<0.000000e+00> : vector<1024xf32>
    %9 = vector.multi_reduction <add>, %8, %cst_6 [0] : vector<8x1024xf32> to vector<1024xf32>
    %10 = vector.shape_cast %9 : vector<1024xf32> to vector<1x1024xf32>
    %cst_7 = arith.constant 8.000000e+00 : f32
    %11 = vector.broadcast %cst_7 : f32 to vector<1x1024xf32>
    %12 = arith.divf %10, %11 : vector<1x1024xf32>
    %13 = vector.broadcast %12 : vector<1x1024xf32> to vector<8x1024xf32>
    %14 = arith.subf %8, %13 : vector<8x1024xf32>
    %15 = arith.mulf %14, %14 : vector<8x1024xf32>
    %cst_8 = arith.constant dense<0.000000e+00> : vector<1024xf32>
    %16 = vector.multi_reduction <add>, %15, %cst_8 [0] : vector<8x1024xf32> to vector<1024xf32>
    %17 = vector.shape_cast %16 : vector<1024xf32> to vector<1x1024xf32>
    %cst_9 = arith.constant 8.000000e+00 : f32
    %18 = vector.broadcast %cst_9 : f32 to vector<1x1024xf32>
    %19 = arith.divf %17, %18 : vector<1x1024xf32>
    %c0_10 = arith.constant 0 : index
    %c0_11 = arith.constant 0 : index
    %20 = vector.load %arg3[%c0_10, %c0_11] : memref<1x1024xf32, #tpu.memory_space<vmem>>, vector<1x1024xf32>
    %cst_12 = arith.constant 9.99999974E-6 : f32
    %21 = vector.broadcast %cst_12 : f32 to vector<1x1024xf32>
    %22 = arith.addf %19, %21 : vector<1x1024xf32>
    %23 = math.rsqrt %22 : vector<1x1024xf32>
    %24 = arith.mulf %20, %23 : vector<1x1024xf32>
    %25 = vector.broadcast %24 : vector<1x1024xf32> to vector<8x1024xf32>
    %26 = arith.mulf %14, %25 : vector<8x1024xf32>
    %c0_13 = arith.constant 0 : index
    %c0_14 = arith.constant 0 : index
    %27 = vector.load %arg4[%c0_13, %c0_14] : memref<1x1024xf32, #tpu.memory_space<vmem>>, vector<1x1024xf32>
    %28 = vector.broadcast %27 : vector<1x1024xf32> to vector<8x1024xf32>
    %29 = arith.addf %26, %28 : vector<8x1024xf32>
    %30 = arith.truncf %29 : vector<8x1024xf32> to vector<8x1024xbf16>
    %c0_15 = arith.constant 0 : index
    %c0_16 = arith.constant 0 : index
    %31 = vector.load %arg5[%c0_15, %c0_16] : memref<1024x1024xbf16, #tpu.memory_space<vmem>>, vector<1024x1024xbf16>
    %cst_17 = arith.constant dense<0.000000e+00> : vector<8x1024xf32>
    %32 = tpu.matmul %30, %31, %cst_17 {dimension_numbers = #tpu.dot_dimension_numbers<[1], [0], [0], [1], [0, 0, 1, 1], [], []>} : vector<8x1024xbf16>, vector<1024x1024xbf16>, vector<8x1024xf32> -> vector<8x1024xf32>
    %c0_18 = arith.constant 0 : index
    %c0_19 = arith.constant 0 : index
    %33 = vector.load %arg6[%c0_18, %c0_19] : memref<1x1024xf32, #tpu.memory_space<vmem>>, vector<1x1024xf32>
    %34 = vector.broadcast %33 : vector<1x1024xf32> to vector<8x1024xf32>
    %35 = arith.addf %32, %34 : vector<8x1024xf32>
    %cst_20 = arith.constant 0.000000e+00 : f32
    %36 = vector.broadcast %cst_20 : f32 to vector<8x1024xf32>
    %37 = arith.maximumf %35, %36 : vector<8x1024xf32>
    %38 = arith.truncf %37 : vector<8x1024xf32> to vector<8x1024xbf16>
    %c0_21 = arith.constant 0 : index
    %c0_22 = arith.constant 0 : index
    %39 = vector.load %arg7[%c0_21, %c0_22] : memref<1024x128xbf16, #tpu.memory_space<vmem>>, vector<1024x128xbf16>
    %cst_23 = arith.constant dense<0.000000e+00> : vector<8x128xf32>
    %40 = tpu.matmul %38, %39, %cst_23 {dimension_numbers = #tpu.dot_dimension_numbers<[1], [0], [0], [1], [0, 0, 1, 1], [], []>} : vector<8x1024xbf16>, vector<1024x128xbf16>, vector<8x128xf32> -> vector<8x128xf32>
    %c0_24 = arith.constant 0 : index
    %c0_25 = arith.constant 0 : index
    %41 = vector.load %arg8[%c0_24, %c0_25] : memref<1x128xf32, #tpu.memory_space<vmem>>, vector<1x128xf32>
    %42 = vector.broadcast %41 : vector<1x128xf32> to vector<8x128xf32>
    %43 = arith.addf %40, %42 : vector<8x128xf32>
    %44 = math.tanh %43 : vector<8x128xf32>
    %c0_26 = arith.constant 0 : index
    %c0_27 = arith.constant 0 : index
    %45 = vector.load %arg9[%c0_26, %c0_27] : memref<8x128xf32, #tpu.memory_space<vmem>>, vector<8x128xf32>
    tpu.vector_store %arg9[%c0_26, %c0_27], %44 {strides = array<i32>} : memref<8x128xf32, #tpu.memory_space<vmem>>, vector<8x128xf32>,
    return
  }
}

</mosaic_0001>

<bundles_post_ra>
// kernel: tpu_custom_call.1
= control target key start
LH: loop header
LB: loop body
LE: loop exit
PB: predicated region body
PF: predicated region fallthrough
CT: control target
= control target key end

     0   :  { %14 = vsyncpa [#allocation3], 0  ;;  %s9590_s0 = inlined_call_operand.hbm [shape: f32[8,128], index: 0, kind: input, shape index: {}]   ;;  %s9591_s1 = inlined_call_operand.hbm [shape: bf16[128,1024], index: 1, kind: input, shape index: {}]   ;;  %s9592_s2 = inlined_call_operand.hbm [shape: f32[1,1024], index: 2, kind: input, shape index: {}]   ;;  %s9593_s3 = inlined_call_operand.hbm [shape: f32[1,1024], index: 3, kind: input, shape index: {}]   ;;  %s9594_s4 = inlined_call_operand.hbm [shape: f32[1,1024], index: 4, kind: input, shape index: {}]   ;;  %s9595_s5 = inlined_call_operand.hbm [shape: bf16[1024,1024], index: 5, kind: input, shape index: {}]   ;;  %s9596_s6 = inlined_call_operand.hbm [shape: f32[1,1024], index: 6, kind: input, shape index: {}]   ;;  %s9597_s7 = inlined_call_operand.hbm [shape: bf16[1024,128], index: 7, kind: input, shape index: {}]   ;;  %s9598_s8 = inlined_call_operand.hbm [shape: f32[1,128], index: 8, kind: input, shape index: {}]   ;;  %s9599_s9 = inlined_call_operand.hbm [shape: f32[8,128], index: 9, kind: output, shape index: {}]  }
   0x1   :  { %15 = vsyncpa [#allocation6], 0 }
   0x2   :  { %16 = vsyncpa [#allocation9], 0 }
   0x3   :  { %17 = vsyncpa [#allocation12], 0 }
   0x4   :  { %18 = vsyncpa [#allocation15], 0  ;;  %s35_s11 = sshll.u32 %s9591_s1, 4  ;;  %s36_s11 = int_to_ptr.hbm [resolvable:$true] %s35_s11 }
   0x5   :  { %19 = vsyncpa [#allocation4], 0  ;;  %s9062_s12 = smov [#allocation5]   ;;  %s60_s16 = sshll.u32 %s9593_s3, 4  ;;  %s61_s16 = int_to_ptr.hbm [resolvable:$true] %s60_s16 }
   0x6   :  { %s37_s13 = sshll.u32 %s9062_s12, 4  ;;  %s9063_s17 = smov 512   ;;  %s38_s13 = int_to_ptr.vmem [resolvable:$true] %s37_s13 }
   0x7   :  { %s9064_s18 = smov 32   ;;  %s9065_s19 = smov [#allocation8]  }
   0x8   :  { %43 = dma.hbm_to_vmem [thread:$0]  %s36_s11, 8192, %s38_s13, [#allocation6], %s9063_s17, %s9063_s17, %s9064_s18  }
   0x9   :  { %s62_s20 = sshll.u32 %s9065_s19, 4  ;;  %s81_s23 = sshll.u32 %s9595_s5, 4  ;;  %s63_s20 = int_to_ptr.vmem [resolvable:$true] %s62_s20  ;;  %s82_s23 = int_to_ptr.hbm [resolvable:$true] %s81_s23 }
   0xa   :  { %65 = dma.hbm_to_vmem [thread:$0]  %s61_s16, 128, %s63_s20, [#allocation9]  }
   0xb   :  { %s105_s25 = sshll.u32 %s9597_s7, 4  ;;  %s9066_s26 = smov [#allocation11]   ;;  %s106_s25 = int_to_ptr.hbm [resolvable:$true] %s105_s25 }
   0xc   :  { %s83_s27 = sshll.u32 %s9066_s26, 4  ;;  %s9067_s3 = smov [#allocation14]   ;;  %s84_s27 = int_to_ptr.vmem [resolvable:$true] %s83_s27 }
   0xd   :  { %89 = dma.hbm_to_vmem [thread:$0]  %s82_s23, 65536, %s84_s27, [#allocation12], %s9063_s17, %s9063_s17, %s9064_s18  }
   0xe   :  { %s107_s28 = sshll.u32 %s9067_s3, 4  ;;  %s9068_s29 = smov 64   ;;  %s108_s28 = int_to_ptr.vmem [resolvable:$true] %s107_s28 }
   0xf   :  { %s9069_s30 = smov 4   ;;  %s25_s11 = sshll.u32 %s9590_s0, 4  ;;  %s26_s11 = int_to_ptr.hbm [resolvable:$true] %s25_s11 }
  0x10   :  { %113 = dma.hbm_to_vmem [thread:$0]  %s106_s25, 8192, %s108_s28, [#allocation15], %s9068_s29, %s9068_s29, %s9069_s30  }
  0x11   :  { %s9070_s12 = smov [#allocation2]   ;;  %s49_s15 = sshll.u32 %s9592_s2, 4  ;;  %s50_s15 = int_to_ptr.hbm [resolvable:$true] %s49_s15 }
  0x12   :  { %s27_s13 = sshll.u32 %s9070_s12, 4  ;;  %s9071_s16 = smov [#allocation7]   ;;  %s28_s13 = int_to_ptr.vmem [resolvable:$true] %s27_s13 }
  0x13   :  { %30 = dma.hbm_to_vmem [thread:$0]  %s26_s11, 128, %s28_s13, [#allocation3]  }
  0x14   :  { %s51_s17 = sshll.u32 %s9071_s16, 4  ;;  %s71_s20 = sshll.u32 %s9594_s4, 4  ;;  %s52_s17 = int_to_ptr.vmem [resolvable:$true] %s51_s17  ;;  %s72_s20 = int_to_ptr.hbm [resolvable:$true] %s71_s20 }
  0x15   :  { %54 = dma.hbm_to_vmem [thread:$0]  %s50_s15, 128, %s52_s17, [#allocation6]  }
  0x16   :  { %s95_s22 = sshll.u32 %s9596_s6, 4  ;;  %s9072_s23 = smov [#allocation10]   ;;  %s96_s22 = int_to_ptr.hbm [resolvable:$true] %s95_s22 }
  0x17   :  { %s73_s1 = sshll.u32 %s9072_s23, 4  ;;  %s9073_s2 = smov [#allocation13]   ;;  %s74_s1 = int_to_ptr.vmem [resolvable:$true] %s73_s1 }
  0x18   :  { %76 = dma.hbm_to_vmem [thread:$0]  %s72_s20, 128, %s74_s1, [#allocation9]  }
  0x19   :  { %s97_s24 = sshll.u32 %s9073_s2, 4  ;;  %s119_s27 = sshll.u32 %s9598_s8, 4  ;;  %s98_s24 = int_to_ptr.vmem [resolvable:$true] %s97_s24  ;;  %s120_s27 = int_to_ptr.hbm [resolvable:$true] %s119_s27 }
  0x1a   :  { %100 = dma.hbm_to_vmem [thread:$0]  %s96_s22, 128, %s98_s24, [#allocation12]  }
  0x1b   :  { %s9074_s4 = smov [#allocation16]  }
  0x1c   :  { %s121_s3 = sshll.u32 %s9074_s4, 4  ;;  %s122_s3 = int_to_ptr.vmem [resolvable:$true] %s121_s3 }
  0x1d   :  { %124 = dma.hbm_to_vmem [thread:$0]  %s120_s27, 16, %s122_s3, [#allocation15]  }
  0x1e   :  { %9050 = dma.done.wait [#allocation3], 128  }
  0x1f   :  { %9051 = vsyncadd [#allocation3], 4294967168 }
  0x20   :  { %9052 = dma.done.wait [#allocation6], 8320  }
  0x21   :  { %9053 = vsyncadd [#allocation6], 4294958976 }
  0x22   :  { %9054 = dma.done.wait [#allocation9], 256  }
  0x23   :  { %9055 = vsyncadd [#allocation9], 4294967040 }
  0x24   :  { %9056 = dma.done.wait [#allocation12], 65664  }
  0x25   :  { %9057 = vsyncadd [#allocation12], 4294901632 }
  0x26   :  { %9058 = dma.done.wait [#allocation15], 8208  }
  0x27   :  { %9059 = vsyncadd [#allocation15], 4294959088  ;;  %v5798_v0 = vld [vmem:[#allocation5 + $0x1c0] sm:$0xf]  ;;  %v8188_v2 = vld [vmem:[#allocation5 + $0x1c4] sm:$0xf] }
  0x28   :  { %v8192_v1 = vld [vmem:[#allocation5 + $0x1dc] sm:$0xf0]  ;;  %v5800_v4 = vld [vmem:[#allocation5 + $0x1e0] sm:$0xf0]  ;;  %v5806_v5 = vld [vmem:[#allocation5 + $0x1c8] sm:$0xf] }
  0x29   :  { %v5799_v3 = vor.u32 %v8192_v1, %v5798_v0  ;;  %v8193_v6 = vld [vmem:[#allocation5 + $0x1e4] sm:$0xf0]  ;;  %v5803_v7 = vor.u32 %v8188_v2, %v5800_v4  ;;  %v8189_v9 = vld [vmem:[#allocation5 + $0x1cc] sm:$0xf]  ;;  %v5766_v11 = vld [vmem:[#allocation5 + $0x180] sm:$0xf] }
  0x2a   :  { %v5807_v8 = vor.u32 %v8193_v6, %v5806_v5  ;;  %v5808_v10 = vld [vmem:[#allocation5 + $0x1e8] sm:$0xf0]  ;;  %v8184_v13 = vld [vmem:[#allocation5 + $0x19c] sm:$0xf0]  ;;  %v8180_v14 = vld [vmem:[#allocation5 + $0x184] sm:$0xf] }
  0x2b   :  { %565 = vmatpush.bf16.msra.mxu0 %v5799_v3  ;;  %v5811_v12 = vor.u32 %v8189_v9, %v5808_v10  ;;  %v5768_v15 = vld [vmem:[#allocation5 + $0x1a0] sm:$0xf0]  ;;  %578 = vmatpush.bf16.msra.mxu1 %v5803_v7  ;;  %v5767_v16 = vor.u32 %v8184_v13, %v5766_v11  ;;  %v5774_v18 = vld [vmem:[#allocation5 + $0x188] sm:$0xf]  ;;  %v8181_v20 = vld [vmem:[#allocation5 + $0x18c] sm:$0xf] }
  0x2c   :  { %591 = vmatpush.bf16.msra.mxu2 %v5807_v8  ;;  %v5771_v17 = vor.u32 %v8180_v14, %v5768_v15  ;;  %v8185_v19 = vld [vmem:[#allocation5 + $0x1a4] sm:$0xf0]  ;;  %v5776_v22 = vld [vmem:[#allocation5 + $0x1a8] sm:$0xf0]  ;;  %v5734_v23 = vld [vmem:[#allocation5 + $0x140] sm:$0xf] }
  0x2d   :  { %604 = vmatpush.bf16.msra.mxu3 %v5811_v12  ;;  %v5775_v21 = vor.u32 %v8185_v19, %v5774_v18  ;;  %v8176_v24 = vld [vmem:[#allocation5 + $0x15c] sm:$0xf0]  ;;  %v5779_v25 = vor.u32 %v8181_v20, %v5776_v22  ;;  %v8172_v26 = vld [vmem:[#allocation5 + $0x144] sm:$0xf]  ;;  %v5742_v28 = vld [vmem:[#allocation5 + $0x148] sm:$0xf] }
  0x2e   :  { %v5736_v27 = vld [vmem:[#allocation5 + $0x160] sm:$0xf0]  ;;  %v5735_v29 = vor.u32 %v8176_v24, %v5734_v23  ;;  %v8177_v30 = vld [vmem:[#allocation5 + $0x164] sm:$0xf0]  ;;  %v8173_v31 = vld [vmem:[#allocation5 + $0x14c] sm:$0xf] }
  0x2f   :  { %566 = vmatpush.bf16.msra.mxu0 %v5767_v16  ;;  %v5744_v32 = vld [vmem:[#allocation5 + $0x168] sm:$0xf0]  ;;  %579 = vmatpush.bf16.msra.mxu1 %v5771_v17  ;;  %v5739_v33 = vor.u32 %v8172_v26, %v5736_v27  ;;  %v5743_v34 = vor.u32 %v8177_v30, %v5742_v28  ;;  %v5702_v35 = vld [vmem:[#allocation5 + $0x100] sm:$0xf]  ;;  %v8164_v37 = vld [vmem:[#allocation5 + $0x104] sm:$0xf] }
  0x30   :  { %592 = vmatpush.bf16.msra.mxu2 %v5775_v21  ;;  %v8168_v36 = vld [vmem:[#allocation5 + $0x11c] sm:$0xf0]  ;;  %v5747_v38 = vor.u32 %v8173_v31, %v5744_v32  ;;  %v5704_v39 = vld [vmem:[#allocation5 + $0x120] sm:$0xf0]  ;;  %v5710_v40 = vld [vmem:[#allocation5 + $0x108] sm:$0xf] }
  0x31   :  { %605 = vmatpush.bf16.msra.mxu3 %v5779_v25  ;;  %v8169_v41 = vld [vmem:[#allocation5 + $0x124] sm:$0xf0]  ;;  %v8165_v42 = vld [vmem:[#allocation5 + $0x10c] sm:$0xf]  ;;  %v5703_v44 = vor.u32 %v8168_v36, %v5702_v35  ;;  %v5707_v45 = vor.u32 %v8164_v37, %v5704_v39  ;;  %v5670_v47 = vld [vmem:[#allocation5 + $0xc0] sm:$0xf] }
  0x32   :  { %v5712_v43 = vld [vmem:[#allocation5 + $0x128] sm:$0xf0]  ;;  %v5711_v46 = vor.u32 %v8169_v41, %v5710_v40  ;;  %v8160_v48 = vld [vmem:[#allocation5 + $0xdc] sm:$0xf0]  ;;  %v8156_v49 = vld [vmem:[#allocation5 + $0xc4] sm:$0xf] }
  0x33   :  { %567 = vmatpush.bf16.msra.mxu0 %v5735_v29  ;;  %580 = vmatpush.bf16.msra.mxu1 %v5739_v33  ;;  %v5715_v50 = vor.u32 %v8165_v42, %v5712_v43  ;;  %v5672_v51 = vld [vmem:[#allocation5 + $0xe0] sm:$0xf0]  ;;  %v5678_v52 = vld [vmem:[#allocation5 + $0xc8] sm:$0xf]  ;;  %v8157_v54 = vld [vmem:[#allocation5 + $0xcc] sm:$0xf]  ;;  %v5671_v56 = vor.u32 %v8160_v48, %v5670_v47 }
  0x34   :  { %593 = vmatpush.bf16.msra.mxu2 %v5743_v34  ;;  %v8161_v53 = vld [vmem:[#allocation5 + $0xe4] sm:$0xf0]  ;;  %v5680_v55 = vld [vmem:[#allocation5 + $0xe8] sm:$0xf0]  ;;  %v5675_v57 = vor.u32 %v8156_v49, %v5672_v51  ;;  %v5638_v59 = vld [vmem:[#allocation5 + $0x80] sm:$0xf] }
  0x35   :  { %606 = vmatpush.bf16.msra.mxu3 %v5747_v38  ;;  %v5679_v58 = vor.u32 %v8161_v53, %v5678_v52  ;;  %v8152_v60 = vld [vmem:[#allocation5 + $0x9c] sm:$0xf0]  ;;  %v8148_v61 = vld [vmem:[#allocation5 + $0x84] sm:$0xf]  ;;  %v5683_v62 = vor.u32 %v8157_v54, %v5680_v55  ;;  %v5646_v0 = vld [vmem:[#allocation5 + $0x88] sm:$0xf] }
  0x36   :  { %v5640_v63 = vld [vmem:[#allocation5 + $0xa0] sm:$0xf0]  ;;  %v8153_v1 = vld [vmem:[#allocation5 + $0xa4] sm:$0xf0]  ;;  %v8149_v2 = vld [vmem:[#allocation5 + $0x8c] sm:$0xf]  ;;  %v5639_v4 = vor.u32 %v8152_v60, %v5638_v59 }
  0x37   :  { %568 = vmatpush.bf16.msra.mxu0 %v5703_v44  ;;  %581 = vmatpush.bf16.msra.mxu1 %v5707_v45  ;;  %v5648_v3 = vld [vmem:[#allocation5 + $0xa8] sm:$0xf0]  ;;  %v5643_v5 = vor.u32 %v8148_v61, %v5640_v63  ;;  %v5647_v6 = vor.u32 %v8153_v1, %v5646_v0  ;;  %v5606_v7 = vld [vmem:[#allocation5 + $0x40] sm:$0xf]  ;;  %v8140_v9 = vld [vmem:[#allocation5 + $0x44] sm:$0xf] }
  0x38   :  { %594 = vmatpush.bf16.msra.mxu2 %v5711_v46  ;;  %v8144_v8 = vld [vmem:[#allocation5 + $0x5c] sm:$0xf0]  ;;  %v5651_v10 = vor.u32 %v8149_v2, %v5648_v3  ;;  %v5608_v11 = vld [vmem:[#allocation5 + $0x60] sm:$0xf0]  ;;  %v5614_v12 = vld [vmem:[#allocation5 + $0x48] sm:$0xf] }
  0x39   :  { %607 = vmatpush.bf16.msra.mxu3 %v5715_v50  ;;  %v8145_v13 = vld [vmem:[#allocation5 + $0x64] sm:$0xf0]  ;;  %v8141_v14 = vld [vmem:[#allocation5 + $0x4c] sm:$0xf]  ;;  %v5607_v16 = vor.u32 %v8144_v8, %v5606_v7  ;;  %v5574_v17 = vld [vmem:[#allocation5] sm:$0xf]  ;;  %v5611_v19 = vor.u32 %v8140_v9, %v5608_v11 }
  0x3a   :  { %v5616_v15 = vld [vmem:[#allocation5 + $0x68] sm:$0xf0]  ;;  %v8136_v18 = vld [vmem:[#allocation5 + $0x1c] sm:$0xf0]  ;;  %v5615_v20 = vor.u32 %v8145_v13, %v5614_v12  ;;  %v8132_v21 = vld [vmem:[#allocation5 + $0x4] sm:$0xf] }
  0x3b   :  { %569 = vmatpush.bf16.msra.mxu0 %v5671_v56  ;;  %582 = vmatpush.bf16.msra.mxu1 %v5675_v57  ;;  %v5576_v22 = vld [vmem:[#allocation5 + $0x20] sm:$0xf0]  ;;  %v5582_v23 = vld [vmem:[#allocation5 + $0x8] sm:$0xf]  ;;  %v5619_v24 = vor.u32 %v8141_v14, %v5616_v15  ;;  %v8133_v26 = vld [vmem:[#allocation5 + $0xc] sm:$0xf]  ;;  %v5575_v31 = vor.u32 %v8136_v18, %v5574_v17 }
  0x3c   :  { %595 = vmatpush.bf16.msra.mxu2 %v5679_v58  ;;  %v8137_v25 = vld [vmem:[#allocation5 + $0x24] sm:$0xf0]  ;;  %v5584_v27 = vld [vmem:[#allocation5 + $0x28] sm:$0xf0]  ;;  %v5814_v28 = vld [vmem:[#allocation5 + $0x1d0] sm:$0xf]  ;;  %v5579_v35 = vor.u32 %v8132_v21, %v5576_v22 }
  0x3d   :  { %608 = vmatpush.bf16.msra.mxu3 %v5683_v62  ;;  %v8194_v29 = vld [vmem:[#allocation5 + $0x1ec] sm:$0xf0]  ;;  %v8190_v30 = vld [vmem:[#allocation5 + $0x1d4] sm:$0xf]  ;;  %v5822_v33 = vld [vmem:[#allocation5 + $0x1d8] sm:$0xf]  ;;  %v5583_v36 = vor.u32 %v8137_v25, %v5582_v23  ;;  %v5587_v40 = vor.u32 %v8133_v26, %v5584_v27 }
  0x3e   :  { %v5816_v32 = vld [vmem:[#allocation5 + $0x1f0] sm:$0xf0]  ;;  %v8195_v34 = vld [vmem:[#allocation5 + $0x1f4] sm:$0xf0]  ;;  %v8191_v37 = vld [vmem:[#allocation5 + $0x1dc] sm:$0xf]  ;;  %v5815_v41 = vor.u32 %v8194_v29, %v5814_v28 }
  0x3f   :  { %570 = vmatpush.bf16.msra.mxu0 %v5639_v4  ;;  %583 = vmatpush.bf16.msra.mxu1 %v5643_v5  ;;  %v5824_v38 = vld [vmem:[#allocation5 + $0x1f8] sm:$0xf0]  ;;  %v5819_v42 = vor.u32 %v8190_v30, %v5816_v32  ;;  %v5823_v43 = vor.u32 %v8195_v34, %v5822_v33  ;;  %v5782_v44 = vld [vmem:[#allocation5 + $0x190] sm:$0xf]  ;;  %v8182_v46 = vld [vmem:[#allocation5 + $0x194] sm:$0xf] }
  0x40   :  { %596 = vmatpush.bf16.msra.mxu2 %v5647_v6  ;;  %v161_v39 = vld [vmem:[#allocation2] sm:$0xff]  ;;  %v8186_v45 = vld [vmem:[#allocation5 + $0x1ac] sm:$0xf0]  ;;  %v5827_v47 = vor.u32 %v8191_v37, %v5824_v38  ;;  %v5784_v49 = vld [vmem:[#allocation5 + $0x1b0] sm:$0xf0]  ;;  %vm918_vm10 = vcmask 1042434  }
  0x41   :  { %609 = vmatpush.bf16.msra.mxu3 %v5651_v10  ;;  %v9154_v48 = vpack.c.bf16 %v161_v39, %v161_v39  ;;  %v5790_v50 = vld [vmem:[#allocation5 + $0x198] sm:$0xf]  ;;  %v8183_v52 = vld [vmem:[#allocation5 + $0x19c] sm:$0xf]  ;;  %v5783_v54 = vor.u32 %v8186_v45, %v5782_v44  ;;  %v5787_v55 = vor.u32 %v8182_v46, %v5784_v49  ;;  %v5750_v57 = vld [vmem:[#allocation5 + $0x150] sm:$0xf] }
  0x42   :  { %v8187_v51 = vld [vmem:[#allocation5 + $0x1b4] sm:$0xf0]  ;;  %v5792_v53 = vld [vmem:[#allocation5 + $0x1b8] sm:$0xf0]  ;;  %v8178_v58 = vld [vmem:[#allocation5 + $0x16c] sm:$0xf0] }
  0x43   :  { %571 = vmatpush.bf16.msra.mxu0 %v5607_v16  ;;  %584 = vmatpush.bf16.msra.mxu1 %v5611_v19  ;;  %v5791_v56 = vor.u32 %v8187_v51, %v5790_v50  ;;  %v8174_v59 = vld [vmem:[#allocation5 + $0x154] sm:$0xf]  ;;  %v5795_v60 = vor.u32 %v8183_v52, %v5792_v53  ;;  %v5758_v62 = vld [vmem:[#allocation5 + $0x158] sm:$0xf]  ;;  %v8175_v0 = vld [vmem:[#allocation5 + $0x15c] sm:$0xf]  ;;  %v5751_v2 = vor.u32 %v8178_v58, %v5750_v57 }
  0x44   :  { %597 = vmatpush.bf16.msra.mxu2 %v5615_v20  ;;  %v5752_v61 = vld [vmem:[#allocation5 + $0x170] sm:$0xf0]  ;;  %v8179_v63 = vld [vmem:[#allocation5 + $0x174] sm:$0xf0]  ;;  %v5760_v1 = vld [vmem:[#allocation5 + $0x178] sm:$0xf0] }
  0x45   :  { %610 = vmatpush.bf16.msra.mxu3 %v5619_v24  ;;  %v5755_v3 = vor.u32 %v8174_v59, %v5752_v61  ;;  %v5759_v4 = vor.u32 %v8179_v63, %v5758_v62  ;;  %v5718_v5 = vld [vmem:[#allocation5 + $0x110] sm:$0xf]  ;;  %v8166_v7 = vld [vmem:[#allocation5 + $0x114] sm:$0xf]  ;;  %v5763_v8 = vor.u32 %v8175_v0, %v5760_v1  ;;  %v5726_v10 = vld [vmem:[#allocation5 + $0x118] sm:$0xf] }
  0x46   :  { %v8170_v6 = vld [vmem:[#allocation5 + $0x12c] sm:$0xf0]  ;;  %v5720_v9 = vld [vmem:[#allocation5 + $0x130] sm:$0xf0]  ;;  %v8171_v11 = vld [vmem:[#allocation5 + $0x134] sm:$0xf0] }
  0x47   :  { %572 = vmatpush.bf16.msra.mxu0 %v5575_v31  ;;  %585 = vmatpush.bf16.msra.mxu1 %v5579_v35  ;;  %v8167_v12 = vld [vmem:[#allocation5 + $0x11c] sm:$0xf]  ;;  %v5719_v14 = vor.u32 %v8170_v6, %v5718_v5  ;;  %v5686_v15 = vld [vmem:[#allocation5 + $0xd0] sm:$0xf]  ;;  %v5723_v16 = vor.u32 %v8166_v7, %v5720_v9  ;;  %v5727_v17 = vor.u32 %v8171_v11, %v5726_v10  ;;  %v8158_v19 = vld [vmem:[#allocation5 + $0xd4] sm:$0xf] }
  0x48   :  { %598 = vmatpush.bf16.msra.mxu2 %v5583_v36  ;;  %v5728_v13 = vld [vmem:[#allocation5 + $0x138] sm:$0xf0]  ;;  %v8162_v18 = vld [vmem:[#allocation5 + $0xec] sm:$0xf0]  ;;  %v5688_v20 = vld [vmem:[#allocation5 + $0xf0] sm:$0xf0] }
  0x49   :  { %611 = vmatpush.bf16.msra.mxu3 %v5587_v40  ;;  %v5731_v21 = vor.u32 %v8167_v12, %v5728_v13  ;;  %v5694_v22 = vld [vmem:[#allocation5 + $0xd8] sm:$0xf]  ;;  %v8159_v24 = vld [vmem:[#allocation5 + $0xdc] sm:$0xf]  ;;  %v5687_v26 = vor.u32 %v8162_v18, %v5686_v15  ;;  %v5691_v27 = vor.u32 %v8158_v19, %v5688_v20  ;;  %v5654_v29 = vld [vmem:[#allocation5 + $0x90] sm:$0xf] }
  0x4a   :  { %573 = vmatmul.bf16.vlgmr.msra.gmra.mxu0 %v9154_v48  ;;  %586 = vmatmul.bf16.vlgmr.msra.gmra.mxu1 %v9154_v48  ;;  %v8163_v23 = vld [vmem:[#allocation5 + $0xf4] sm:$0xf0]  ;;  %v5696_v25 = vld [vmem:[#allocation5 + $0xf8] sm:$0xf0]  ;;  %v8154_v30 = vld [vmem:[#allocation5 + $0xac] sm:$0xf0] }
  0x4b   :  { %617 = vmatpush.bf16.msrb.mxu0 %v5815_v41  ;;  %630 = vmatpush.bf16.msrb.mxu1 %v5819_v42  ;;  %v5695_v28 = vor.u32 %v8163_v23, %v5694_v22  ;;  %v8150_v31 = vld [vmem:[#allocation5 + $0x94] sm:$0xf]  ;;  %v5699_v32 = vor.u32 %v8159_v24, %v5696_v25  ;;  %v5662_v34 = vld [vmem:[#allocation5 + $0x98] sm:$0xf]  ;;  %v8151_v36 = vld [vmem:[#allocation5 + $0x9c] sm:$0xf]  ;;  %v5655_v38 = vor.u32 %v8154_v30, %v5654_v29 }
  0x4c   :  { %643 = vmatpush.bf16.msrb.mxu2 %v5823_v43  ;;  %612 = vmatmul.bf16.vlgmr.msra.gmra.mxu3 %v9154_v48  ;;  %v5656_v33 = vld [vmem:[#allocation5 + $0xb0] sm:$0xf0]  ;;  %v8155_v35 = vld [vmem:[#allocation5 + $0xb4] sm:$0xf0]  ;;  %v5664_v37 = vld [vmem:[#allocation5 + $0xb8] sm:$0xf0] }
  0x4d   :  { %656 = vmatpush.bf16.msrb.mxu3 %v5827_v47  ;;  %599 = vmatmul.bf16.vlgmr.msra.gmra.mxu2 %v9154_v48  ;;  %v5659_v39 = vor.u32 %v8150_v31, %v5656_v33  ;;  %v5663_v40 = vor.u32 %v8155_v35, %v5662_v34  ;;  %v5622_v41 = vld [vmem:[#allocation5 + $0x50] sm:$0xf]  ;;  %v8142_v43 = vld [vmem:[#allocation5 + $0x54] sm:$0xf]  ;;  %v5667_v44 = vor.u32 %v8151_v36, %v5664_v37  ;;  %v5630_v46 = vld [vmem:[#allocation5 + $0x58] sm:$0xf] }
  0x4e   :  { %v8146_v42 = vld [vmem:[#allocation5 + $0x6c] sm:$0xf0]  ;;  %v5624_v45 = vld [vmem:[#allocation5 + $0x70] sm:$0xf0]  ;;  %v8147_v47 = vld [vmem:[#allocation5 + $0x74] sm:$0xf0] }
  0x4f   :  { %618 = vmatpush.bf16.msrb.mxu0 %v5783_v54  ;;  %631 = vmatpush.bf16.msrb.mxu1 %v5787_v55  ;;  %v8143_v49 = vld [vmem:[#allocation5 + $0x5c] sm:$0xf]  ;;  %v5623_v51 = vor.u32 %v8146_v42, %v5622_v41  ;;  %v5627_v52 = vor.u32 %v8142_v43, %v5624_v45  ;;  %v5631_v53 = vor.u32 %v8147_v47, %v5630_v46  ;;  %v5590_v54 = vld [vmem:[#allocation5 + $0x10] sm:$0xf]  ;;  %v5592_v58 = vld [vmem:[#allocation5 + $0x30] sm:$0xf0] }
  0x50   :  { %644 = vmatpush.bf16.msrb.mxu2 %v5791_v56  ;;  %v5632_v50 = vld [vmem:[#allocation5 + $0x78] sm:$0xf0]  ;;  %v8138_v55 = vld [vmem:[#allocation5 + $0x2c] sm:$0xf0]  ;;  %v8134_v56 = vld [vmem:[#allocation5 + $0x14] sm:$0xf] }
  0x51   :  { %657 = vmatpush.bf16.msrb.mxu3 %v5795_v60  ;;  %v5635_v57 = vor.u32 %v8143_v49, %v5632_v50  ;;  %v5598_v59 = vld [vmem:[#allocation5 + $0x18] sm:$0xf]  ;;  %v8135_v61 = vld [vmem:[#allocation5 + $0x1c] sm:$0xf]  ;;  %v5591_v63 = vor.u32 %v8138_v55, %v5590_v54  ;;  %v5595_v0 = vor.u32 %v8134_v56, %v5592_v58  ;;  %vm916_vm15 = vcmask 1040384   ;;  %s9076_s6 = smov [#allocation17]  }
  0x52   :  { %v8139_v60 = vld [vmem:[#allocation5 + $0x34] sm:$0xf0]  ;;  %v5600_v62 = vld [vmem:[#allocation5 + $0x38] sm:$0xf0]  ;;  %s5556_s8 = sshll.u32 %s9076_s6, 4  ;;  %s5558_s30 = sshll.u32 %s9599_s9, 4  ;;  %s5557_s8 = int_to_ptr.vmem [resolvable:$true] %s5556_s8  ;;  %s5559_s30 = int_to_ptr.hbm [resolvable:$true] %s5558_s30 }
  0x53   :  { %619 = vmatpush.bf16.msrb.mxu0 %v5751_v2  ;;  %632 = vmatpush.bf16.msrb.mxu1 %v5755_v3  ;;  %v5599_v1 = vor.u32 %v8139_v60, %v5598_v59  ;;  %v5603_v2 = vor.u32 %v8135_v61, %v5600_v62  ;;  %v9075_v3 = vmov 8.0   ;;  %v6054_v58 = vld [vmem:[#allocation11 + $0x1c0] sm:$0xf] }
  0x54   :  { %645 = vmatpush.bf16.msrb.mxu2 %v5759_v4  ;;  %8788 = vrcp.f32 %v9075_v3  ;;  %v9164_v4 = vld [vmem:[#allocation7] sm:$0xff]  ;;  %v8256_v59 = vld [vmem:[#allocation11 + $0x1dc] sm:$0xf0] }
  0x55   :  { %658 = vmatpush.bf16.msrb.mxu3 %v5763_v8  ;;  %v229_v6 = vperm.slane %v9164_v4, 0  ;;  %v230_v8 = vperm.slane %v9164_v4, 1  ;;  %v6055_v62 = vor.u32 %v8256_v59, %v6054_v58 }
  0x57   :  { %620 = vmatpush.bf16.msrb.mxu0 %v5719_v14  ;;  %633 = vmatpush.bf16.msrb.mxu1 %v5723_v16  ;;  %v231_v16 = vperm.slane %v9164_v4, 2 }
  0x58   :  { %646 = vmatpush.bf16.msrb.mxu2 %v5727_v17  ;;  %v232_v17 = vperm.slane %v9164_v4, 3 }
  0x59   :  { %659 = vmatpush.bf16.msrb.mxu3 %v5731_v21 }
  0x5a   :  { %v8789_v5 = vpop.eup %8788 }
  0x5b   :  { %621 = vmatpush.bf16.msrb.mxu0 %v5687_v26  ;;  %634 = vmatpush.bf16.msrb.mxu1 %v5691_v27  ;;  %v726_v7 = vmul.f32 8.0, %v8789_v5  ;;  %vm730_vm0 = vweird.f32 %v8789_v5 }
  0x5c   :  { %647 = vmatpush.bf16.msrb.mxu2 %v5695_v28 }
  0x5d   :  { %660 = vmatpush.bf16.msrb.mxu3 %v5699_v32  ;;  %v727_v12 = vsub.f32 1.0, %v726_v7  ;;  %v6822_v7 = vld [vmem:[#allocation11 + $0x7c0] sm:$0xf] }
  0x5f   :  { %622 = vmatpush.bf16.msrb.mxu0 %v5655_v38  ;;  %635 = vmatpush.bf16.msrb.mxu1 %v5659_v39  ;;  %v728_v18 = vmul.f32 %v8789_v5, %v727_v12 }
  0x60   :  { %648 = vmatpush.bf16.msrb.mxu2 %v5663_v40 }
  0x61   :  { %661 = vmatpush.bf16.msrb.mxu3 %v5667_v44  ;;  %v729_v29 = vadd.f32 %v8789_v5, %v728_v18 }
  0x63   :  { %623 = vmatpush.bf16.msrb.mxu0 %v5623_v51  ;;  %636 = vmatpush.bf16.msrb.mxu1 %v5627_v52  ;;  %v9170_v38 = vsel %vm730_vm0, %v8789_v5, %v729_v29  ;;  %vm922_vm0 = vcmask 1044484  }
  0x64   :  { %649 = vmatpush.bf16.msrb.mxu2 %v5631_v53 }
  0x65   :  { %662 = vmatpush.bf16.msrb.mxu3 %v5635_v57 }
  0x67   :  { %624 = vmatpush.bf16.msrb.mxu0 %v5591_v63  ;;  %637 = vmatpush.bf16.msrb.mxu1 %v5595_v0  ;;  %v6310_v63 = vld [vmem:[#allocation11 + $0x3c0] sm:$0xf] }
  0x68   :  { %650 = vmatpush.bf16.msrb.mxu2 %v5599_v1  ;;  %v8320_v0 = vld [vmem:[#allocation11 + $0x3dc] sm:$0xf0] }
  0x69   :  { %663 = vmatpush.bf16.msrb.mxu3 %v5603_v2  ;;  %v6566_v1 = vld [vmem:[#allocation11 + $0x5c0] sm:$0xf]  ;;  %v6311_v5 = vor.u32 %v8320_v0, %v6310_v63 }
  0x6a   :  { %625 = vmatmul.bf16.vlgmr.msrb.gmra.mxu0 %v9154_v48  ;;  %638 = vmatmul.bf16.vlgmr.msrb.gmra.mxu1 %v9154_v48  ;;  %v5958_v0 = vld [vmem:[#allocation11 + $0x100] sm:$0xf] }
  0x6b   :  { %651 = vmatmul.bf16.vlgmr.msrb.gmra.mxu2 %v9154_v48  ;;  %4081 = vmatpush.bf16.msra.mxu0 %v6055_v62 }
  0x6c   :  { %664 = vmatmul.bf16.vlgmr.msrb.gmra.mxu3 %v9154_v48  ;;  %4094 = vmatpush.bf16.msra.mxu1 %v6311_v5  ;;  %v236_v5 = vperm.slane %v9164_v4, 7 }
  0xc7   :  { %v574_v9 = vpop.f32.mrf.mxu0  ;;  %v587_v11 = vpop.f32.mrf.mxu1 }
  0xc8   :  { %v575_v10 = vadd.f32 %v574_v9, %v229_v6  ;;  %v588_v13 = vadd.f32 %v587_v11, %v230_v8  ;;  %v8384_v6 = vld [vmem:[#allocation11 + $0x5dc] sm:$0xf0] }
  0xc9   :  { %v8448_v11 = vld [vmem:[#allocation11 + $0x7dc] sm:$0xf0] }
  0xca   :  { %v669_v14 = vmax.f32 %v575_v10, 0.0  ;;  %v670_v15 = vmax.f32 %v588_v13, 0.0  ;;  %v6567_v10 = vor.u32 %v8384_v6, %v6566_v1  ;;  %v8232_v1 = vld [vmem:[#allocation11 + $0x11c] sm:$0xf0] }
  0xcc   :  { %v677_v48 = vrot.slane %v669_v14, 4  ;;  %v683_v19 = vrot.slane %v670_v15, 4  ;;  %4107 = vmatpush.bf16.msra.mxu2 %v6567_v10 }
  0xce   :  { %v678_v20 = vadd.f32 %v677_v48, %v669_v14  ;;  %v684_v22 = vadd.f32 %v683_v19, %v670_v15  ;;  %v6278_v48 = vld [vmem:[#allocation11 + $0x380] sm:$0xf]  ;;  %v233_v19 = vperm.slane %v9164_v4, 4 }
  0xcf   :  { %v613_v24 = vpop.f32.mrf.mxu3  ;;  %v576_v25 = vpop.f32.mrf.mxu0 }
  0xd0   :  { %v600_v21 = vpop.f32.mrf.mxu2  ;;  %v679_v26 = vrot.slane %v678_v20, 2  ;;  %v614_v27 = vadd.f32 %v613_v24, %v232_v17  ;;  %v589_v28 = vpop.f32.mrf.mxu1  ;;  %v685_v30 = vrot.slane %v684_v22, 2  ;;  %v234_v24 = vperm.slane %v9164_v4, 5 }
  0xd1   :  { %v601_v23 = vadd.f32 %v600_v21, %v231_v16  ;;  %v8248_v16 = vld [vmem:[#allocation11 + $0x19c] sm:$0xf0] }
  0xd2   :  { %v680_v32 = vadd.f32 %v679_v26, %v678_v20  ;;  %v672_v33 = vmax.f32 %v614_v27, 0.0  ;;  %v686_v34 = vadd.f32 %v685_v30, %v684_v22  ;;  %v8312_v21 = vld [vmem:[#allocation11 + $0x39c] sm:$0xf0] }
  0xd3   :  { %v671_v31 = vmax.f32 %v601_v23, 0.0  ;;  %v6534_v22 = vld [vmem:[#allocation11 + $0x580] sm:$0xf]  ;;  %v6279_v25 = vor.u32 %v8312_v21, %v6278_v48 }
  0xd4   :  { %v681_v36 = vrot.slane %v680_v32, 1  ;;  %v695_v37 = vrot.slane %v672_v33, 4  ;;  %v687_v39 = vrot.slane %v686_v34, 1  ;;  %v8376_v26 = vld [vmem:[#allocation11 + $0x59c] sm:$0xf0] }
  0xd5   :  { %v689_v35 = vrot.slane %v671_v31, 4  ;;  %v6790_v27 = vld [vmem:[#allocation11 + $0x780] sm:$0xf]  ;;  %4095 = vmatpush.bf16.msra.mxu1 %v6279_v25 }
  0xd6   :  { %v682_v41 = vadd.f32 %v681_v36, %v680_v32  ;;  %v696_v42 = vadd.f32 %v695_v37, %v672_v33  ;;  %v688_v44 = vadd.f32 %v687_v39, %v686_v34  ;;  %v8440_v32 = vld [vmem:[#allocation11 + $0x79c] sm:$0xf0] }
  0xd7   :  { %v690_v40 = vadd.f32 %v689_v35, %v671_v31  ;;  %v615_v46 = vpop.f32.mrf.mxu3  ;;  %v5990_v36 = vld [vmem:[#allocation11 + $0x140] sm:$0xf] }
  0xd8   :  { %v602_v43 = vpop.f32.mrf.mxu2  ;;  %v732_v47 = vmul.f32 %v9170_v38, %v682_v41  ;;  %v697_v49 = vrot.slane %v696_v42, 2  ;;  %v733_v50 = vmul.f32 %v9170_v38, %v688_v44  ;;  %v8240_v37 = vld [vmem:[#allocation11 + $0x15c] sm:$0xf0] }
  0xd9   :  { %v691_v45 = vrot.slane %v690_v40, 2  ;;  %v6246_v39 = vld [vmem:[#allocation11 + $0x340] sm:$0xf]  ;;  %v5991_v44 = vor.u32 %v8240_v37, %v5990_v36 }
  0xda   :  { %v9174_v52 = vsub.f32 %v669_v14, %v732_v47  ;;  %v698_v53 = vadd.f32 %v697_v49, %v696_v42  ;;  %v9176_v54 = vsub.f32 %v670_v15, %v733_v50  ;;  %v6823_v14 = vor.u32 %v8448_v11, %v6822_v7  ;;  %v6022_v15 = vld [vmem:[#allocation11 + $0x180] sm:$0xf] }
  0xdb   :  { %v692_v51 = vadd.f32 %v691_v45, %v690_v40  ;;  %v6023_v20 = vor.u32 %v8248_v16, %v6022_v15  ;;  %v8304_v45 = vld [vmem:[#allocation11 + $0x35c] sm:$0xf0]  ;;  %v235_v50 = vperm.slane %v9164_v4, 6 }
  0xdc   :  { %v748_v56 = vmul.f32 %v9174_v52, %v9174_v52  ;;  %v699_v57 = vrot.slane %v698_v53, 1  ;;  %v749_v60 = vmul.f32 %v9176_v54, %v9176_v54  ;;  %4120 = vmatpush.bf16.msra.mxu3 %v6823_v14  ;;  %v6502_v46 = vld [vmem:[#allocation11 + $0x540] sm:$0xf] }
  0xdd   :  { %v693_v55 = vrot.slane %v692_v51, 1  ;;  %4082 = vmatpush.bf16.msra.mxu0 %v6023_v20  ;;  %v5926_v37 = vld [vmem:[#allocation11 + $0xc0] sm:$0xf] }
  0xde   :  { %v756_v2 = vrot.slane %v748_v56, 4  ;;  %v700_v3 = vadd.f32 %v699_v57, %v698_v53  ;;  %v762_v8 = vrot.slane %v749_v60, 4  ;;  %v8368_v53 = vld [vmem:[#allocation11 + $0x55c] sm:$0xf0] }
  0xdf   :  { %v694_v61 = vadd.f32 %v693_v55, %v692_v51  ;;  %v6247_v51 = vor.u32 %v8304_v45, %v6246_v39  ;;  %v6758_v55 = vld [vmem:[#allocation11 + $0x740] sm:$0xf]  ;;  %v6503_v59 = vor.u32 %v8368_v53, %v6502_v46 }
  0xe0   :  { %v757_v12 = vadd.f32 %v756_v2, %v748_v56  ;;  %v735_v13 = vmul.f32 %v9170_v38, %v700_v3  ;;  %v763_v17 = vadd.f32 %v762_v8, %v749_v60  ;;  %v8432_v60 = vld [vmem:[#allocation11 + $0x75c] sm:$0xf0] }
  0xe1   :  { %v734_v9 = vmul.f32 %v9170_v38, %v694_v61  ;;  %4083 = vmatpush.bf16.msra.mxu0 %v5991_v44  ;;  %4096 = vmatpush.bf16.msra.mxu1 %v6247_v51  ;;  %v6759_v6 = vor.u32 %v8432_v60, %v6758_v55  ;;  %v8224_v39 = vld [vmem:[#allocation11 + $0xdc] sm:$0xf0] }
  0xe2   :  { %v9187_v23 = vsub.f32 %v672_v33, %v735_v13  ;;  %v758_v28 = vrot.slane %v757_v12, 2  ;;  %v764_v29 = vrot.slane %v763_v17, 2  ;;  %v6791_v33 = vor.u32 %v8440_v32, %v6790_v27  ;;  %v6470_v27 = vld [vmem:[#allocation11 + $0x500] sm:$0xf] }
  0xe3   :  { %v9184_v18 = vsub.f32 %v671_v31, %v734_v9  ;;  %v6535_v31 = vor.u32 %v8376_v26, %v6534_v22  ;;  %v5959_v13 = vor.u32 %v8232_v1, %v5958_v0  ;;  %v6214_v22 = vld [vmem:[#allocation11 + $0x300] sm:$0xf]  ;;  %v5927_v53 = vor.u32 %v8224_v39, %v5926_v37 }
  0xe4   :  { %v751_v34 = vmul.f32 %v9187_v23, %v9187_v23  ;;  %v765_v40 = vadd.f32 %v764_v29, %v763_v17  ;;  %4121 = vmatpush.bf16.msra.mxu3 %v6791_v33  ;;  %v759_v56 = vadd.f32 %v758_v28, %v757_v12  ;;  %v8360_v28 = vld [vmem:[#allocation11 + $0x51c] sm:$0xf0] }
  0xe5   :  { %v750_v30 = vmul.f32 %v9184_v18, %v9184_v18  ;;  %4108 = vmatpush.bf16.msra.mxu2 %v6535_v31  ;;  %4084 = vmatpush.bf16.msra.mxu0 %v5959_v13  ;;  %v6726_v31 = vld [vmem:[#allocation11 + $0x700] sm:$0xf] }
  0xe6   :  { %v774_v47 = vrot.slane %v751_v34, 4  ;;  %v766_v61 = vrot.slane %v765_v40, 1  ;;  %v760_v9 = vrot.slane %v759_v56, 1  ;;  %v8424_v32 = vld [vmem:[#allocation11 + $0x71c] sm:$0xf0] }
  0xe7   :  { %v626_v35 = vpop.f32.mrf.mxu0  ;;  %v768_v41 = vrot.slane %v750_v30, 4  ;;  %v639_v43 = vpop.f32.mrf.mxu1  ;;  %v6727_v51 = vor.u32 %v8424_v32, %v6726_v31  ;;  %v8288_v0 = vld [vmem:[#allocation11 + $0x2dc] sm:$0xf0] }
  0xe8   :  { %v627_v42 = vadd.f32 %v626_v35, %v233_v19  ;;  %v640_v49 = vadd.f32 %v639_v43, %v234_v24  ;;  %v775_v62 = vadd.f32 %v774_v47, %v751_v34  ;;  %4122 = vmatpush.bf16.msra.mxu3 %v6759_v6  ;;  %v767_v14 = vadd.f32 %v766_v61, %v765_v40  ;;  %v8296_v24 = vld [vmem:[#allocation11 + $0x31c] sm:$0xf0] }
  0xe9   :  { %v769_v57 = vadd.f32 %v768_v41, %v750_v30  ;;  %4109 = vmatpush.bf16.msra.mxu2 %v6503_v59  ;;  %v761_v29 = vadd.f32 %v760_v9, %v759_v56  ;;  %v6471_v43 = vor.u32 %v8360_v28, %v6470_v27  ;;  %v6182_v61 = vld [vmem:[#allocation11 + $0x2c0] sm:$0xf]  ;;  %4085 = vmatpush.bf16.msra.mxu0 %v5927_v53 }
  0xea   :  { %v9195_v58 = vmax.f32 %v627_v42, 0.0  ;;  %v9197_v63 = vmax.f32 %v640_v49, 0.0  ;;  %v776_v7 = vrot.slane %v775_v62, 2  ;;  %v805_v34 = vmul.f32 %v767_v14, %v9170_v38  ;;  %v6438_v1 = vld [vmem:[#allocation11 + $0x4c0] sm:$0xf] }
  0xeb   :  { %v770_v2 = vrot.slane %v769_v57, 2  ;;  %v6215_v42 = vor.u32 %v8296_v24, %v6214_v22  ;;  %v804_v55 = vmul.f32 %v761_v29, %v9170_v38  ;;  %v8416_v6 = vld [vmem:[#allocation11 + $0x6dc] sm:$0xf0] }
  0xec   :  { %v701_v3 = vrot.slane %v9195_v58, 4  ;;  %v707_v8 = vrot.slane %v9197_v63, 4  ;;  %v777_v19 = vadd.f32 %v776_v7, %v775_v62  ;;  %4123 = vmatpush.bf16.msra.mxu3 %v6727_v51 }
  0xed   :  { %v771_v10 = vadd.f32 %v770_v2, %v769_v57  ;;  %4097 = vmatpush.bf16.msra.mxu1 %v6215_v42  ;;  %4110 = vmatpush.bf16.msra.mxu2 %v6471_v43  ;;  %v8352_v2 = vld [vmem:[#allocation11 + $0x4dc] sm:$0xf0]  ;;  %v9219_v13 = vadd.f32 1e-05, %v804_v55 }
  0xee   :  { %v702_v11 = vadd.f32 %v701_v3, %v9195_v58  ;;  %v652_v12 = vpop.f32.mrf.mxu2  ;;  %v708_v15 = vadd.f32 %v707_v8, %v9197_v63  ;;  %v778_v40 = vrot.slane %v777_v19, 1  ;;  %v9214_v3 = vadd.f32 1e-05, %v805_v34  ;;  %v6150_v34 = vld [vmem:[#allocation11 + $0x280] sm:$0xf] }
  0xef   :  { %v653_v16 = vadd.f32 %v652_v12, %v235_v50  ;;  %v665_v48 = vpop.f32.mrf.mxu3  ;;  %v628_v17 = vpop.f32.mrf.mxu0  ;;  %v772_v25 = vrot.slane %v771_v10, 1  ;;  %v8216_v12 = vld [vmem:[#allocation11 + $0x9c] sm:$0xf0]  ;;  %vm827_vm14 = vweird.f32 %v9219_v13 }
  0xf0   :  { %v703_v4 = vrot.slane %v702_v11, 2  ;;  %v666_v20 = vadd.f32 %v665_v48, %v236_v5  ;;  %v641_v21 = vpop.f32.mrf.mxu1  ;;  %v709_v26 = vrot.slane %v708_v15, 2  ;;  %v779_v62 = vadd.f32 %v778_v40, %v777_v19  ;;  %v6694_v5 = vld [vmem:[#allocation11 + $0x6c0] sm:$0xf] }
  0xf1   :  { %v9205_v33 = vmax.f32 %v653_v16, 0.0  ;;  %v773_v44 = vadd.f32 %v772_v25, %v771_v10  ;;  %v6439_v16 = vor.u32 %v8352_v2, %v6438_v1  ;;  %8790 = vrsqrt.f32 %v9214_v3  ;;  %v6406_v42 = vld [vmem:[#allocation11 + $0x480] sm:$0xf] }
  0xf2   :  { %v704_v30 = vadd.f32 %v703_v4, %v702_v11  ;;  %v710_v35 = vadd.f32 %v709_v26, %v708_v15  ;;  %v9207_v36 = vmax.f32 %v666_v20, 0.0  ;;  %v5894_v11 = vld [vmem:[#allocation11 + $0x80] sm:$0xf]  ;;  %v6183_v15 = vor.u32 %v8288_v0, %v6182_v61 }
  0xf3   :  { %v713_v46 = vrot.slane %v9205_v33, 4  ;;  %v806_v7 = vmul.f32 %v773_v44, %v9170_v38  ;;  %v807_v48 = vmul.f32 %v779_v62, %v9170_v38  ;;  %4111 = vmatpush.bf16.msra.mxu2 %v6439_v16  ;;  %v6695_v21 = vor.u32 %v8416_v6, %v6694_v5  ;;  %v8344_v43 = vld [vmem:[#allocation11 + $0x49c] sm:$0xf0] }
  0xf4   :  { %v705_v41 = vrot.slane %v704_v30, 1  ;;  %v711_v45 = vrot.slane %v710_v35, 1  ;;  %v719_v47 = vrot.slane %v9207_v36, 4  ;;  %4098 = vmatpush.bf16.msra.mxu1 %v6183_v15  ;;  %v5895_v22 = vor.u32 %v8216_v12, %v5894_v11  ;;  %v5862_v55 = vld [vmem:[#allocation11 + $0x40] sm:$0xf] }
  0xf5   :  { %v714_v57 = vadd.f32 %v713_v46, %v9205_v33  ;;  %v9229_v24 = vadd.f32 1e-05, %v806_v7  ;;  %4124 = vmatpush.bf16.msra.mxu3 %v6695_v21  ;;  %8792 = vrsqrt.f32 %v9219_v13  ;;  %v6407_v61 = vor.u32 %v8344_v43, %v6406_v42  ;;  %v6118_v62 = vld [vmem:[#allocation11 + $0x240] sm:$0xf] }
  0xf6   :  { %v706_v49 = vadd.f32 %v705_v41, %v704_v30  ;;  %v654_v50 = vpop.f32.mrf.mxu2  ;;  %v712_v56 = vadd.f32 %v711_v45, %v710_v35  ;;  %v720_v59 = vadd.f32 %v719_v47, %v9207_v36  ;;  %4086 = vmatpush.bf16.msra.mxu0 %v5895_v22  ;;  %v9237_v30 = vadd.f32 1e-05, %v807_v48  ;;  %v8280_v35 = vld [vmem:[#allocation11 + $0x29c] sm:$0xf0] }
  0xf7   :  { %v667_v60 = vpop.f32.mrf.mxu3  ;;  %v715_v10 = vrot.slane %v714_v57, 2  ;;  %8794 = vrsqrt.f32 %v9229_v24  ;;  %v9239_v37 = vpop.eup %8790  ;;  %v6151_v46 = vor.u32 %v8280_v35, %v6150_v34  ;;  %v6662_v47 = vld [vmem:[#allocation11 + $0x680] sm:$0xf]  ;;  %4112 = vmatpush.bf16.msra.mxu2 %v6407_v61  ;;  %vm837_vm2 = vweird.f32 %v9214_v3 }
  0xf8   :  { %v736_v8 = vmul.f32 %v9170_v38, %v706_v49  ;;  %v737_v9 = vmul.f32 %v9170_v38, %v712_v56  ;;  %v721_v14 = vrot.slane %v720_v59, 2  ;;  %v8408_v49 = vld [vmem:[#allocation11 + $0x69c] sm:$0xf0]  ;;  %v832_v50 = vmul.f32 %v9239_v37, %v9214_v3 }
  0xf9   :  { %v716_v4 = vadd.f32 %v715_v10, %v714_v57  ;;  %8796 = vrsqrt.f32 %v9237_v30  ;;  %v8208_v56 = vld [vmem:[#allocation11 + $0x5c] sm:$0xf0]  ;;  %4099 = vmatpush.bf16.msra.mxu1 %v6151_v46  ;;  %vm838_vm1 = vweird.f32 %v9239_v37  ;;  %vm847_vm6 = vweird.f32 %v9229_v24 }
  0xfa   :  { %v9223_v17 = vsub.f32 %v9195_v58, %v736_v8  ;;  %v9226_v19 = vsub.f32 %v9197_v63, %v737_v9  ;;  %v722_v20 = vadd.f32 %v721_v14, %v720_v59  ;;  %v8272_v0 = vld [vmem:[#allocation11 + $0x25c] sm:$0xf0]  ;;  %v833_v14 = vmul.f32 %v9239_v37, %v832_v50  ;;  %vm9311_vm3 = vmor %vm837_vm2, %vm838_vm1 }
  0xfb   :  { %v717_v26 = vrot.slane %v716_v4, 1  ;;  %v9249_v57 = vpop.eup %8792  ;;  %v6374_v6 = vld [vmem:[#allocation11 + $0x440] sm:$0xf]  ;;  %v6119_v22 = vor.u32 %v8272_v0, %v6118_v62  ;;  %vm857_vm8 = vweird.f32 %v9237_v30  ;;  %vm920_vm1 = vcmask 1041408  }
  0xfc   :  { %v752_v25 = vmul.f32 %v9223_v17, %v9223_v17  ;;  %v753_v58 = vmul.f32 %v9226_v19, %v9226_v19  ;;  %v723_v27 = vrot.slane %v722_v20, 1  ;;  %v8336_v7 = vld [vmem:[#allocation11 + $0x45c] sm:$0xf0]  ;;  %v822_v12 = vmul.f32 %v9249_v57, %v9219_v13 }
  0xfd   :  { %v718_v29 = vadd.f32 %v717_v26, %v716_v4  ;;  %v9254_v1 = vpop.eup %8794  ;;  %v6630_v10 = vld [vmem:[#allocation11 + $0x640] sm:$0xf]  ;;  %4100 = vmatpush.bf16.msra.mxu1 %v6119_v22  ;;  %v9269_v46 = vmul.f32 0.5, %v833_v14  ;;  %vm828_vm11 = vweird.f32 %v9249_v57 }
  0xfe   :  { %v780_v63 = vrot.slane %v752_v25, 4  ;;  %v786_v28 = vrot.slane %v753_v58, 4  ;;  %v724_v32 = vadd.f32 %v723_v27, %v722_v20  ;;  %v8400_v11 = vld [vmem:[#allocation11 + $0x65c] sm:$0xf0]  ;;  %v842_v4 = vmul.f32 %v9254_v1, %v9229_v24 }
  0xff   :  { %v738_v41 = vmul.f32 %v9170_v38, %v718_v29  ;;  %v5830_v48 = vld [vmem:[#allocation11] sm:$0xf]  ;;  %v9265_v26 = vpop.eup %8796  ;;  %v6631_v29 = vor.u32 %v8400_v11, %v6630_v10  ;;  %v823_v0 = vmul.f32 %v9249_v57, %v822_v12  ;;  %vm848_vm4 = vweird.f32 %v9254_v1 }
 0x100   :  { %v781_v31 = vadd.f32 %v780_v63, %v752_v25  ;;  %v787_v39 = vadd.f32 %v786_v28, %v753_v58  ;;  %v739_v45 = vmul.f32 %v9170_v38, %v724_v32  ;;  %v8200_v25 = vld [vmem:[#allocation11 + $0x1c] sm:$0xf0]  ;;  %v6375_v28 = vor.u32 %v8336_v7, %v6374_v6  ;;  %vm9326_vm7 = vmor %vm847_vm6, %vm848_vm4 }
 0x101   :  { %v9247_v53 = vsub.f32 %v9205_v33, %v738_v41  ;;  %v6663_v33 = vor.u32 %v8408_v49, %v6662_v47  ;;  %v6086_v58 = vld [vmem:[#allocation11 + $0x200] sm:$0xf]  ;;  %v5831_v50 = vor.u32 %v8200_v25, %v5830_v48  ;;  %vm858_vm5 = vweird.f32 %v9265_v26 }
 0x102   :  { %v782_v40 = vrot.slane %v781_v31, 2  ;;  %v788_v44 = vrot.slane %v787_v39, 2  ;;  %v9252_v60 = vsub.f32 %v9207_v36, %v739_v45  ;;  %v5863_v36 = vor.u32 %v8208_v56, %v5862_v55  ;;  %v6342_v32 = vld [vmem:[#allocation11 + $0x400] sm:$0xf]  ;;  %4113 = vmatpush.bf16.msra.mxu2 %v6375_v28  ;;  %vm9341_vm9 = vmor %vm857_vm8, %vm858_vm5 }
 0x103   :  { %v754_v5 = vmul.f32 %v9247_v53, %v9247_v53  ;;  %4125 = vmatpush.bf16.msra.mxu3 %v6663_v33  ;;  %v8328_v34 = vld [vmem:[#allocation11 + $0x41c] sm:$0xf0]  ;;  %v852_v55 = vmul.f32 %v9265_v26, %v9237_v30 }
 0x104   :  { %v783_v51 = vadd.f32 %v782_v40, %v781_v31  ;;  %v789_v59 = vadd.f32 %v788_v44, %v787_v39  ;;  %v755_v9 = vmul.f32 %v9252_v60, %v9252_v60  ;;  %4087 = vmatpush.bf16.msra.mxu0 %v5863_v36  ;;  %v8264_v31 = vld [vmem:[#allocation11 + $0x21c] sm:$0xf0] }
 0x105   :  { %v792_v16 = vrot.slane %v754_v5, 4  ;;  %v6598_v40 = vld [vmem:[#allocation11 + $0x600] sm:$0xf]  ;;  %v6087_v61 = vor.u32 %v8264_v31, %v6086_v58 }
 0x106   :  { %v784_v2 = vrot.slane %v783_v51, 1  ;;  %v790_v8 = vrot.slane %v789_v59, 1  ;;  %v798_v21 = vrot.slane %v755_v9, 4  ;;  %v8392_v41 = vld [vmem:[#allocation11 + $0x61c] sm:$0xf0] }
 0x107   :  { %v793_v63 = vadd.f32 %v792_v16, %v754_v5  ;;  %v7078_v42 = vld [vmem:[#allocation11 + $0x9c0] sm:$0xf]  ;;  %4126 = vmatpush.bf16.msra.mxu3 %v6631_v29  ;;  %4101 = vmatpush.bf16.msra.mxu1 %v6087_v61 }
 0x108   :  { %v785_v15 = vadd.f32 %v784_v2, %v783_v51  ;;  %v791_v20 = vadd.f32 %v790_v8, %v789_v59  ;;  %v799_v39 = vadd.f32 %v798_v21, %v755_v9  ;;  %v8512_v43 = vld [vmem:[#allocation11 + $0x9dc] sm:$0xf0]  ;;  %v843_v2 = vmul.f32 %v9254_v1, %v842_v4  ;;  %4088 = vmatpush.bf16.msra.mxu0 %v5831_v50 }
 0x109   :  { %v7334_v44 = vld [vmem:[#allocation11 + $0xbc0] sm:$0xf]  ;;  %v794_v49 = vrot.slane %v793_v63, 2  ;;  %v6343_v9 = vor.u32 %v8328_v34, %v6342_v32  ;;  %v7079_v12 = vor.u32 %v8512_v43, %v7078_v42 }
 0x10a   :  { %v808_v27 = vmul.f32 %v785_v15, %v9170_v38  ;;  %v809_v35 = vmul.f32 %v791_v20, %v9170_v38  ;;  %v8576_v45 = vld [vmem:[#allocation11 + $0xbdc] sm:$0xf0]  ;;  %v800_v59 = vrot.slane %v799_v39, 2  ;;  %v6599_v15 = vor.u32 %v8392_v41, %v6598_v40 }
 0x10b   :  { %v7590_v51 = vld [vmem:[#allocation11 + $0xdc0] sm:$0xf]  ;;  %v795_v5 = vadd.f32 %v794_v49, %v793_v63  ;;  %v7335_v16 = vor.u32 %v8576_v45, %v7334_v44  ;;  %v853_v20 = vmul.f32 %v9265_v26, %v852_v55  ;;  %4114 = vmatpush.bf16.msra.mxu2 %v6343_v9  ;;  %v9282_v63 = vmul.f32 0.5, %v823_v0 }
 0x10c   :  { %v9271_v47 = vadd.f32 1e-05, %v808_v27  ;;  %v9275_v56 = vadd.f32 1e-05, %v809_v35  ;;  %v8640_v62 = vld [vmem:[#allocation11 + $0xddc] sm:$0xf0]  ;;  %v801_v8 = vadd.f32 %v800_v59, %v799_v39  ;;  %4127 = vmatpush.bf16.msra.mxu3 %v6599_v15  ;;  %4133 = vmatpush.bf16.msrb.mxu0 %v7079_v12 }
 0x10d   :  { %v7846_v33 = vld [vmem:[#allocation11 + $0xfc0] sm:$0xf]  ;;  %v796_v14 = vrot.slane %v795_v5, 1  ;;  %v7591_v22 = vor.u32 %v8640_v62, %v7590_v51  ;;  %v9284_v28 = vmul.f32 0.5, %v843_v2  ;;  %4146 = vmatpush.bf16.msrb.mxu1 %v7335_v16  ;;  %v835_v55 = vsub.f32 1.5, %v9269_v46 }
 0x10e   :  { %8798 = vrsqrt.f32 %v9271_v47  ;;  %v8704_v6 = vld [vmem:[#allocation11 + $0xfdc] sm:$0xf0]  ;;  %v802_v21 = vrot.slane %v801_v8, 1  ;;  %v854_v59 = vmul.f32 0.5, %v853_v20  ;;  %vm867_vm2 = vweird.f32 %v9271_v47 }
 0x10f   :  { %v7046_v7 = vld [vmem:[#allocation11 + $0x980] sm:$0xf]  ;;  %8800 = vrsqrt.f32 %v9275_v56  ;;  %v7847_v25 = vor.u32 %v8704_v6, %v7846_v33  ;;  %v797_v29 = vadd.f32 %v796_v14, %v795_v5  ;;  %4159 = vmatpush.bf16.msrb.mxu2 %v7591_v22  ;;  %v845_v5 = vsub.f32 1.5, %v9284_v28 }
 0x110   :  { %v8504_v36 = vld [vmem:[#allocation11 + $0x99c] sm:$0xf0]  ;;  %v803_v32 = vadd.f32 %v802_v21, %v801_v8  ;;  %v855_v20 = vsub.f32 1.5, %v854_v59  ;;  %vm877_vm4 = vweird.f32 %v9275_v56 }
 0x111   :  { %v7302_v10 = vld [vmem:[#allocation11 + $0xb80] sm:$0xf]  ;;  %v7047_v31 = vor.u32 %v8504_v36, %v7046_v7  ;;  %v810_v43 = vmul.f32 %v797_v29, %v9170_v38  ;;  %4172 = vmatpush.bf16.msrb.mxu3 %v7847_v25 }
 0x112   :  { %v8568_v11 = vld [vmem:[#allocation11 + $0xb9c] sm:$0xf0]  ;;  %v811_v62 = vmul.f32 %v803_v32, %v9170_v38 }
 0x113   :  { %v7558_v48 = vld [vmem:[#allocation11 + $0xd80] sm:$0xf]  ;;  %v7303_v34 = vor.u32 %v8568_v11, %v7302_v10  ;;  %v9299_v6 = vadd.f32 1e-05, %v810_v43  ;;  %4134 = vmatpush.bf16.msrb.mxu0 %v7047_v31 }
 0x114   :  { %v8632_v4 = vld [vmem:[#allocation11 + $0xd9c] sm:$0xf0]  ;;  %v9286_v42 = vpop.eup %8798  ;;  %v9302_v9 = vadd.f32 1e-05, %v811_v62 }
 0x115   :  { %v7814_v58 = vld [vmem:[#allocation11 + $0xf80] sm:$0xf]  ;;  %v7559_v35 = vor.u32 %v8632_v4, %v7558_v48  ;;  %v9290_v51 = vpop.eup %8800  ;;  %v862_v61 = vmul.f32 %v9286_v42, %v9271_v47  ;;  %4147 = vmatpush.bf16.msrb.mxu1 %v7303_v34  ;;  %8802 = vrsqrt.f32 %v9299_v6  ;;  %v825_v4 = vsub.f32 1.5, %v9282_v63 }
 0x116   :  { %v8696_v27 = vld [vmem:[#allocation11 + $0xf9c] sm:$0xf0]  ;;  %v872_v33 = vmul.f32 %v9290_v51, %v9275_v56  ;;  %8804 = vrsqrt.f32 %v9302_v9  ;;  %v9318_v34 = vmul.f32 %v9239_v37, %v835_v55  ;;  %vm868_vm12 = vweird.f32 %v9286_v42 }
 0x117   :  { %v7014_v39 = vld [vmem:[#allocation11 + $0x940] sm:$0xf]  ;;  %v7815_v44 = vor.u32 %v8696_v27, %v7814_v58  ;;  %v863_v46 = vmul.f32 %v9286_v42, %v862_v61  ;;  %4160 = vmatpush.bf16.msrb.mxu2 %v7559_v35  ;;  %v9321_v35 = vmul.f32 %v9254_v1, %v845_v5  ;;  %v9337_v24 = vmul.f32 %v9249_v57, %v825_v4 }
 0x118   :  { %v8496_v40 = vld [vmem:[#allocation11 + $0x95c] sm:$0xf0]  ;;  %v873_v14 = vmul.f32 %v9290_v51, %v872_v33  ;;  %vm878_vm13 = vweird.f32 %v9290_v51  ;;  %vm887_vm8 = vweird.f32 %v9299_v6 }
 0x119   :  { %v7270_v41 = vld [vmem:[#allocation11 + $0xb40] sm:$0xf]  ;;  %v7015_v7 = vor.u32 %v8496_v40, %v7014_v39  ;;  %4173 = vmatpush.bf16.msrb.mxu3 %v7815_v44  ;;  %v864_v58 = vmul.f32 0.5, %v863_v46  ;;  %vm9381_vm5 = vmor %vm877_vm4, %vm878_vm13  ;;  %vm928_vm4 = vcmask 1043456  }
 0x11a   :  { %v8560_v45 = vld [vmem:[#allocation11 + $0xb5c] sm:$0xf0]  ;;  %v874_v27 = vmul.f32 0.5, %v873_v14 }
 0x11b   :  { %v7526_v49 = vld [vmem:[#allocation11 + $0xd40] sm:$0xf]  ;;  %v7271_v36 = vor.u32 %v8560_v45, %v7270_v41  ;;  %4135 = vmatpush.bf16.msrb.mxu0 %v7015_v7  ;;  %v9331_v45 = vmul.f32 %v9265_v26, %v855_v20  ;;  %v9334_v55 = vpop.eup %8802  ;;  %v865_v61 = vsub.f32 1.5, %v864_v58 }
 0x11c   :  { %v8624_v50 = vld [vmem:[#allocation11 + $0xd5c] sm:$0xf0]  ;;  %v875_v62 = vsub.f32 1.5, %v874_v27  ;;  %v882_v30 = vmul.f32 %v9334_v55, %v9299_v6  ;;  %vm888_vm6 = vweird.f32 %v9334_v55 }
 0x11d   :  { %v7782_v0 = vld [vmem:[#allocation11 + $0xf40] sm:$0xf]  ;;  %v7527_v38 = vor.u32 %v8624_v50, %v7526_v49  ;;  %4148 = vmatpush.bf16.msrb.mxu1 %v7271_v36  ;;  %v840_v36 = vsel %vm9311_vm3, %v9239_v37, %v9318_v34  ;;  %v866_v4 = vmul.f32 %v9286_v42, %v865_v61  ;;  %vm9374_vm3 = vmor %vm867_vm2, %vm868_vm12  ;;  %vm897_vm12 = vweird.f32 %v9302_v9 }
 0x11e   :  { %v8688_v2 = vld [vmem:[#allocation11 + $0xf5c] sm:$0xf0]  ;;  %v883_v37 = vmul.f32 %v9334_v55, %v882_v30  ;;  %v876_v20 = vmul.f32 %v9290_v51, %v875_v62  ;;  %vm924_vm2 = vcmask 1046534  }
 0x11f   :  { %v6982_v8 = vld [vmem:[#allocation11 + $0x900] sm:$0xf]  ;;  %v7783_v15 = vor.u32 %v8688_v2, %v7782_v0  ;;  %4161 = vmatpush.bf16.msrb.mxu2 %v7527_v38  ;;  %v9345_v2 = vpop.eup %8804  ;;  %v850_v38 = vsel %vm9326_vm7, %v9254_v1, %v9321_v35  ;;  %v870_v56 = vsel %vm9374_vm3, %v9286_v42, %v866_v4  ;;  %vm926_vm3 = vcmask 1045508  }
 0x120   :  { %v8488_v10 = vld [vmem:[#allocation11 + $0x91c] sm:$0xf0]  ;;  %v884_v58 = vmul.f32 0.5, %v883_v37  ;;  %vm898_vm7 = vweird.f32 %v9345_v2 }
 0x121   :  { %v7238_v11 = vld [vmem:[#allocation11 + $0xb00] sm:$0xf]  ;;  %v6983_v28 = vor.u32 %v8488_v10, %v6982_v8  ;;  %4174 = vmatpush.bf16.msrb.mxu3 %v7783_v15  ;;  %v892_v10 = vmul.f32 %v9345_v2, %v9302_v9  ;;  %vm899_vm13 = vmor %vm897_vm12, %vm898_vm7 }
 0x122   :  { %v8552_v12 = vld [vmem:[#allocation11 + $0xb1c] sm:$0xf0] }
 0x123   :  { %v7494_v16 = vld [vmem:[#allocation11 + $0xd00] sm:$0xf]  ;;  %v7239_v3 = vor.u32 %v8552_v12, %v7238_v11  ;;  %4136 = vmatpush.bf16.msrb.mxu0 %v6983_v28 }
 0x124   :  { %v8616_v48 = vld [vmem:[#allocation11 + $0xd1c] sm:$0xf0] }
 0x125   :  { %v7750_v21 = vld [vmem:[#allocation11 + $0xf00] sm:$0xf]  ;;  %v7495_v63 = vor.u32 %v8616_v48, %v7494_v16  ;;  %4149 = vmatpush.bf16.msrb.mxu1 %v7239_v3  ;;  %v860_v16 = vsel %vm9341_vm9, %v9265_v26, %v9331_v45  ;;  %vm889_vm9 = vmor %vm887_vm8, %vm888_vm6 }
 0x126   :  { %v8680_v22 = vld [vmem:[#allocation11 + $0xf1c] sm:$0xf0] }
 0x127   :  { %v6950_v29 = vld [vmem:[#allocation11 + $0x8c0] sm:$0xf]  ;;  %v7751_v39 = vor.u32 %v8680_v22, %v7750_v21  ;;  %4162 = vmatpush.bf16.msrb.mxu2 %v7495_v63  ;;  %v893_v21 = vmul.f32 %v9345_v2, %v892_v10 }
 0x128   :  { %v8480_v31 = vld [vmem:[#allocation11 + $0x8dc] sm:$0xf0] }
 0x129   :  { %v7206_v32 = vld [vmem:[#allocation11 + $0xac0] sm:$0xf]  ;;  %v6951_v0 = vor.u32 %v8480_v31, %v6950_v29  ;;  %4175 = vmatpush.bf16.msrb.mxu3 %v7751_v39  ;;  %v910_v29 = vrot.slane %v850_v38, 6  ;;  %v911_v39 = vrot.slane %v860_v16, 5  ;;  %v912_v38 = vrot.slane %v870_v56, 4 }
 0x12a   :  { %v8544_v40 = vld [vmem:[#allocation11 + $0xadc] sm:$0xf0] }
 0x12b   :  { %v7462_v41 = vld [vmem:[#allocation11 + $0xcc0] sm:$0xf]  ;;  %v7207_v5 = vor.u32 %v8544_v40, %v7206_v32  ;;  %4137 = vmatpush.bf16.msrb.mxu0 %v6951_v0  ;;  %v894_v32 = vmul.f32 0.5, %v893_v21  ;;  %v919_v6 = vsel %vm918_vm10, %v910_v29, %v911_v39  ;;  %vm829_vm10 = vmor %vm827_vm14, %vm828_vm11  ;;  %v6056_v39 = vld [vmem:[#allocation11 + $0x1e0] sm:$0xf0] }
 0x12c   :  { %v8608_v43 = vld [vmem:[#allocation11 + $0xcdc] sm:$0xf0] }
 0x12d   :  { %v7718_v49 = vld [vmem:[#allocation11 + $0xec0] sm:$0xf]  ;;  %v7463_v33 = vor.u32 %v8608_v43, %v7462_v41  ;;  %4150 = vmatpush.bf16.msrb.mxu1 %v7207_v5  ;;  %v885_v41 = vsub.f32 1.5, %v884_v58 }
 0x12e   :  { %v8672_v50 = vld [vmem:[#allocation11 + $0xedc] sm:$0xf0] }
 0x12f   :  { %v6918_v7 = vld [vmem:[#allocation11 + $0x880] sm:$0xf]  ;;  %v7719_v11 = vor.u32 %v8672_v50, %v7718_v49  ;;  %4163 = vmatpush.bf16.msrb.mxu2 %v7463_v33  ;;  %v880_v49 = vsel %vm9381_vm5, %v9290_v51, %v876_v20  ;;  %v895_v50 = vsub.f32 1.5, %v894_v32  ;;  %v886_v61 = vmul.f32 %v9334_v55, %v885_v41  ;;  %v812_v20 = vld [vmem:[#allocation8] sm:$0xff]  ;;  %v8316_v41 = vld [vmem:[#allocation11 + $0x3c4] sm:$0xf] }
 0x130   :  { %v8472_v8 = vld [vmem:[#allocation11 + $0x89c] sm:$0xf0]  ;;  %v909_v33 = vrot.slane %v840_v36, 7  ;;  %v913_v10 = vrot.slane %v880_v49, 3 }
 0x131   :  { %v7174_v46 = vld [vmem:[#allocation11 + $0xa80] sm:$0xf]  ;;  %v6919_v26 = vor.u32 %v8472_v8, %v6918_v7  ;;  %4176 = vmatpush.bf16.msrb.mxu3 %v7719_v11  ;;  %v896_v51 = vmul.f32 %v9345_v2, %v895_v50  ;;  %v890_v11 = vsel %vm889_vm9, %v9334_v55, %v886_v61  ;;  %v6568_v50 = vld [vmem:[#allocation11 + $0x5e0] sm:$0xf0] }
 0x132   :  { %v8536_v14 = vld [vmem:[#allocation11 + $0xa9c] sm:$0xf0]  ;;  %v923_v4 = vsel %vm922_vm0, %v912_v38, %v913_v10  ;;  %v6824_v61 = vld [vmem:[#allocation11 + $0x7e0] sm:$0xf0] }
 0x133   :  { %v7430_v15 = vld [vmem:[#allocation11 + $0xc80] sm:$0xf]  ;;  %v7175_v27 = vor.u32 %v8536_v14, %v7174_v46  ;;  %4138 = vmatpush.bf16.msrb.mxu0 %v6919_v26  ;;  %v8436_v38 = vld [vmem:[#allocation11 + $0x784] sm:$0xf] }
 0x134   :  { %v8600_v12 = vld [vmem:[#allocation11 + $0xc9c] sm:$0xf0]  ;;  %v6792_v10 = vld [vmem:[#allocation11 + $0x7a0] sm:$0xf0] }
 0x135   :  { %v7686_v1 = vld [vmem:[#allocation11 + $0xe80] sm:$0xf]  ;;  %v7431_v28 = vor.u32 %v8600_v12, %v7430_v15  ;;  %4151 = vmatpush.bf16.msrb.mxu1 %v7175_v27  ;;  %v914_v15 = vrot.slane %v890_v11, 2  ;;  %v900_v12 = vsel %vm899_vm13, %v9345_v2, %v896_v51  ;;  %v8236_v11 = vld [vmem:[#allocation11 + $0x144] sm:$0xf] }
 0x136   :  { %v8664_v48 = vld [vmem:[#allocation11 + $0xe9c] sm:$0xf0]  ;;  %v915_v16 = vrot.slane %v900_v12, 1 }
 0x137   :  { %v6886_v22 = vld [vmem:[#allocation11 + $0x840] sm:$0xf]  ;;  %v7687_v34 = vor.u32 %v8664_v48, %v7686_v1  ;;  %4164 = vmatpush.bf16.msrb.mxu2 %v7431_v28  ;;  %v830_v1 = vsel %vm829_vm10, %v9249_v57, %v9337_v24 }
 0x138   :  { %v8464_v25 = vld [vmem:[#allocation11 + $0x85c] sm:$0xf0]  ;;  %v917_v48 = vsel %vm916_vm15, %v830_v1, %v909_v33  ;;  %v925_v13 = vsel %vm924_vm2, %v914_v15, %v915_v16  ;;  %v6248_v15 = vld [vmem:[#allocation11 + $0x360] sm:$0xf0] }
 0x139   :  { %v7142_v3 = vld [vmem:[#allocation11 + $0xa40] sm:$0xf]  ;;  %v6887_v43 = vor.u32 %v8464_v25, %v6886_v22  ;;  %4177 = vmatpush.bf16.msrb.mxu3 %v7687_v34  ;;  %v921_v21 = vsel %vm920_vm1, %v917_v48, %v919_v6  ;;  %v927_v26 = vsel %vm926_vm3, %v923_v4, %v925_v13  ;;  %v9414_v22 = vld [vmem:[#allocation10] sm:$0xff]  ;;  %v6536_v6 = vld [vmem:[#allocation11 + $0x5a0] sm:$0xf0]  ;;  %v6795_v4 = vor.u32 %v8436_v38, %v6792_v10 }
 0x13a   :  { %v8528_v63 = vld [vmem:[#allocation11 + $0xa5c] sm:$0xf0]  ;;  %v929_v25 = vsel %vm928_vm4, %v921_v21, %v927_v26  ;;  %v959_v24 = vperm.slane %v9414_v22, 0  ;;  %v960_v58 = vperm.slane %v9414_v22, 1  ;;  %v962_v31 = vperm.slane %v9414_v22, 3 }
 0x13b   :  { %v7398_v47 = vld [vmem:[#allocation11 + $0xc40] sm:$0xf]  ;;  %v7143_v62 = vor.u32 %v8528_v63, %v7142_v3  ;;  %4139 = vmatpush.bf16.msrb.mxu0 %v6887_v43  ;;  %v9416_v57 = vmul.f32 %v929_v25, %v812_v20  ;;  %v961_v63 = vperm.slane %v9414_v22, 2  ;;  %v6312_v43 = vld [vmem:[#allocation11 + $0x3e0] sm:$0xf0]  ;;  %v966_v26 = vperm.slane %v9414_v22, 7 }
 0x13c   :  { %v8592_v35 = vld [vmem:[#allocation11 + $0xc5c] sm:$0xf0]  ;;  %v8364_v16 = vld [vmem:[#allocation11 + $0x544] sm:$0xf] }
 0x13d   :  { %v7654_v44 = vld [vmem:[#allocation11 + $0xe40] sm:$0xf]  ;;  %v7399_v0 = vor.u32 %v8592_v35, %v7398_v47  ;;  %4152 = vmatpush.bf16.msrb.mxu1 %v7143_v62  ;;  %v933_v27 = vperm.slane %v9416_v57, 0  ;;  %v934_v28 = vperm.slane %v9416_v57, 1  ;;  %v935_v3 = vperm.slane %v9416_v57, 2 }
 0x13e   :  { %v8656_v45 = vld [vmem:[#allocation11 + $0xe5c] sm:$0xf0]  ;;  %v936_v29 = vperm.slane %v9416_v57, 3  ;;  %v8252_v35 = vld [vmem:[#allocation11 + $0x1c4] sm:$0xf]  ;;  %v938_v1 = vperm.slane %v9416_v57, 5 }
 0x13f   :  { %v6854_v59 = vld [vmem:[#allocation11 + $0x800] sm:$0xf]  ;;  %v7655_v7 = vor.u32 %v8656_v45, %v7654_v44  ;;  %4165 = vmatpush.bf16.msrb.mxu2 %v7399_v0  ;;  %v949_v32 = vmul.f32 %v933_v27, %v9174_v52  ;;  %v950_v34 = vmul.f32 %v934_v28, %v9176_v54  ;;  %v951_v47 = vmul.f32 %v935_v3, %v9184_v18  ;;  %v8380_v44 = vld [vmem:[#allocation11 + $0x5c4] sm:$0xf] }
 0x140   :  { %v8456_v30 = vld [vmem:[#allocation11 + $0x81c] sm:$0xf0]  ;;  %v952_v40 = vmul.f32 %v936_v29, %v9187_v23  ;;  %v6059_v0 = vor.u32 %v8252_v35, %v6056_v39  ;;  %v6024_v23 = vld [vmem:[#allocation11 + $0x1a0] sm:$0xf0]  ;;  %v6571_v51 = vor.u32 %v8380_v44, %v6568_v50  ;;  %v939_v20 = vperm.slane %v9416_v57, 6 }
 0x141   :  { %v7110_v5 = vld [vmem:[#allocation11 + $0xa00] sm:$0xf]  ;;  %v6855_v9 = vor.u32 %v8456_v30, %v6854_v59  ;;  %4178 = vmatpush.bf16.msrb.mxu3 %v7655_v7  ;;  %v975_v45 = vadd.f32 %v959_v24, %v949_v32  ;;  %v976_v56 = vadd.f32 %v960_v58, %v950_v34  ;;  %v977_v49 = vadd.f32 %v961_v63, %v951_v47  ;;  %v8444_v59 = vld [vmem:[#allocation11 + $0x7c4] sm:$0xf] }
 0x142   :  { %v8520_v42 = vld [vmem:[#allocation11 + $0xa1c] sm:$0xf0]  ;;  %v978_v62 = vadd.f32 %v962_v31, %v952_v40  ;;  %v6315_v30 = vor.u32 %v8316_v41, %v6312_v43  ;;  %v6827_v7 = vor.u32 %v8444_v59, %v6824_v61  ;;  %v8428_v13 = vld [vmem:[#allocation11 + $0x744] sm:$0xf]  ;;  %v963_v31 = vperm.slane %v9414_v22, 4 }
 0x143   :  { %v7366_v8 = vld [vmem:[#allocation11 + $0xc00] sm:$0xf]  ;;  %v7111_v55 = vor.u32 %v8520_v42, %v7110_v5  ;;  %4140 = vmatpush.bf16.msrb.mxu0 %v6855_v9  ;;  %v9430_v52 = vpack.c.bf16 %v975_v45, %v975_v45  ;;  %v9432_v54 = vpack.c.bf16 %v976_v56, %v976_v56  ;;  %v9434_v18 = vpack.c.bf16 %v977_v49, %v977_v49  ;;  %v8244_v5 = vld [vmem:[#allocation11 + $0x184] sm:$0xf] }
 0x144   :  { %v8584_v46 = vld [vmem:[#allocation11 + $0xc1c] sm:$0xf0]  ;;  %v8308_v42 = vld [vmem:[#allocation11 + $0x384] sm:$0xf]  ;;  %v9436_v33 = vpack.c.bf16 %v978_v62, %v978_v62  ;;  %v6027_v12 = vor.u32 %v8244_v5, %v6024_v23  ;;  %v954_v32 = vmul.f32 %v938_v1, %v9226_v19  ;;  %v955_v40 = vmul.f32 %v939_v20, %v9247_v53 }
 0x145   :  { %v7622_v36 = vld [vmem:[#allocation11 + $0xe00] sm:$0xf]  ;;  %v7367_v37 = vor.u32 %v8584_v46, %v7366_v8  ;;  %4153 = vmatpush.bf16.msrb.mxu1 %v7111_v55  ;;  %v6280_v8 = vld [vmem:[#allocation11 + $0x3a0] sm:$0xf0]  ;;  %4089 = vmatmul.bf16.vlgmr.msra.gmra.mxu0 %v9430_v52  ;;  %v965_v41 = vperm.slane %v9414_v22, 6 }
 0x146   :  { %v8648_v14 = vld [vmem:[#allocation11 + $0xe1c] sm:$0xf0]  ;;  %v8372_v46 = vld [vmem:[#allocation11 + $0x584] sm:$0xf]  ;;  %4102 = vmatmul.bf16.vlgmr.msra.gmra.mxu1 %v9432_v54  ;;  %4115 = vmatmul.bf16.vlgmr.msra.gmra.mxu2 %v9434_v18  ;;  %v6283_v9 = vor.u32 %v8308_v42, %v6280_v8 }
 0x147   :  { %v7623_v2 = vor.u32 %v8648_v14, %v7622_v36  ;;  %4166 = vmatpush.bf16.msrb.mxu2 %v7367_v37  ;;  %4128 = vmatmul.bf16.vlgmr.msra.gmra.mxu3 %v9436_v33  ;;  %v5992_v36 = vld [vmem:[#allocation11 + $0x160] sm:$0xf0]  ;;  %v937_v37 = vperm.slane %v9416_v57, 4  ;;  %v6539_v48 = vor.u32 %v8372_v46, %v6536_v6  ;;  %v981_v53 = vadd.f32 %v965_v41, %v955_v40 }
 0x148   :  { %v8300_v14 = vld [vmem:[#allocation11 + $0x344] sm:$0xf]  ;;  %4185 = vmatpush.bf16.msra.mxu0 %v6059_v0  ;;  %v5995_v25 = vor.u32 %v8236_v11, %v5992_v36 }
 0x149   :  { %4179 = vmatpush.bf16.msrb.mxu3 %v7623_v2  ;;  %4198 = vmatpush.bf16.msra.mxu1 %v6315_v30  ;;  %v6504_v55 = vld [vmem:[#allocation11 + $0x560] sm:$0xf0]  ;;  %v940_v2 = vperm.slane %v9416_v57, 7  ;;  %v6251_v24 = vor.u32 %v8300_v14, %v6248_v15  ;;  %v953_v29 = vmul.f32 %v937_v37, %v9223_v17  ;;  %v964_v57 = vperm.slane %v9414_v22, 5 }
 0x14a   :  { %v6760_v21 = vld [vmem:[#allocation11 + $0x760] sm:$0xf0]  ;;  %v6507_v58 = vor.u32 %v8364_v16, %v6504_v55  ;;  %v9460_v11 = vpack.c.bf16 %v981_v53, %v981_v53 }
 0x14b   :  { %4211 = vmatpush.bf16.msra.mxu2 %v6571_v51  ;;  %v8228_v27 = vld [vmem:[#allocation11 + $0x104] sm:$0xf]  ;;  %v956_v34 = vmul.f32 %v940_v2, %v9252_v60  ;;  %v6763_v47 = vor.u32 %v8428_v13, %v6760_v21  ;;  %v979_v49 = vadd.f32 %v963_v31, %v953_v29  ;;  %v980_v50 = vadd.f32 %v964_v57, %v954_v32 }
 0x14c   :  { %v5960_v28 = vld [vmem:[#allocation11 + $0x120] sm:$0xf0]  ;;  %4186 = vmatpush.bf16.msra.mxu0 %v6027_v12 }
 0x14d   :  { %4224 = vmatpush.bf16.msra.mxu3 %v6827_v7  ;;  %4199 = vmatpush.bf16.msra.mxu1 %v6283_v9  ;;  %v8292_v3 = vld [vmem:[#allocation11 + $0x304] sm:$0xf]  ;;  %v5963_v17 = vor.u32 %v8228_v27, %v5960_v28  ;;  %v982_v62 = vadd.f32 %v966_v26, %v956_v34  ;;  %v9454_v7 = vpack.c.bf16 %v979_v49, %v979_v49 }
 0x14e   :  { %v6216_v63 = vld [vmem:[#allocation11 + $0x320] sm:$0xf0]  ;;  %v9456_v8 = vpack.c.bf16 %v980_v50, %v980_v50 }
 0x14f   :  { %4212 = vmatpush.bf16.msra.mxu2 %v6539_v48  ;;  %v8356_v35 = vld [vmem:[#allocation11 + $0x504] sm:$0xf]  ;;  %v6219_v45 = vor.u32 %v8292_v3, %v6216_v63  ;;  %v9458_v10 = vpack.c.bf16 %v982_v62, %v982_v62 }
 0x150   :  { %v6472_v39 = vld [vmem:[#allocation11 + $0x520] sm:$0xf0]  ;;  %4187 = vmatpush.bf16.msra.mxu0 %v5995_v25 }
 0x151   :  { %4225 = vmatpush.bf16.msra.mxu3 %v6795_v4  ;;  %v8420_v43 = vld [vmem:[#allocation11 + $0x704] sm:$0xf]  ;;  %4200 = vmatpush.bf16.msra.mxu1 %v6251_v24  ;;  %v6475_v19 = vor.u32 %v8356_v35, %v6472_v39 }
 0x152   :  { %v6728_v44 = vld [vmem:[#allocation11 + $0x720] sm:$0xf0] }
 0x153   :  { %v8220_v56 = vld [vmem:[#allocation11 + $0xc4] sm:$0xf]  ;;  %4213 = vmatpush.bf16.msra.mxu2 %v6507_v58  ;;  %v6731_v0 = vor.u32 %v8420_v43, %v6728_v44 }
 0x154   :  { %v5928_v60 = vld [vmem:[#allocation11 + $0xe0] sm:$0xf0]  ;;  %4188 = vmatpush.bf16.msra.mxu0 %v5963_v17 }
 0x155   :  { %v8284_v59 = vld [vmem:[#allocation11 + $0x2c4] sm:$0xf]  ;;  %4226 = vmatpush.bf16.msra.mxu3 %v6763_v47  ;;  %v5931_v42 = vor.u32 %v8220_v56, %v5928_v60  ;;  %4201 = vmatpush.bf16.msra.mxu1 %v6219_v45 }
 0x156   :  { %v6184_v61 = vld [vmem:[#allocation11 + $0x2e0] sm:$0xf0]  ;;  %4141 = vmatmul.bf16.vlgmr.msrb.gmra.mxu0 %v9454_v7  ;;  %4154 = vmatmul.bf16.vlgmr.msrb.gmra.mxu1 %v9456_v8 }
 0x157   :  { %v8348_v30 = vld [vmem:[#allocation11 + $0x4c4] sm:$0xf]  ;;  %v6187_v51 = vor.u32 %v8284_v59, %v6184_v61  ;;  %4214 = vmatpush.bf16.msra.mxu2 %v6475_v19  ;;  %4180 = vmatmul.bf16.vlgmr.msrb.gmra.mxu3 %v9458_v10 }
 0x158   :  { %v6440_v22 = vld [vmem:[#allocation11 + $0x4e0] sm:$0xf0]  ;;  %4167 = vmatmul.bf16.vlgmr.msrb.gmra.mxu2 %v9460_v11  ;;  %4189 = vmatpush.bf16.msra.mxu0 %v5931_v42 }
 0x159   :  { %v8412_v5 = vld [vmem:[#allocation11 + $0x6c4] sm:$0xf]  ;;  %v6443_v46 = vor.u32 %v8348_v30, %v6440_v22  ;;  %4227 = vmatpush.bf16.msra.mxu3 %v6731_v0  ;;  %4202 = vmatpush.bf16.msra.mxu1 %v6187_v51 }
 0x15a   :  { %v6696_v23 = vld [vmem:[#allocation11 + $0x6e0] sm:$0xf0] }
 0x15b   :  { %v8212_v6 = vld [vmem:[#allocation11 + $0x84] sm:$0xf]  ;;  %v6699_v36 = vor.u32 %v8412_v5, %v6696_v23  ;;  %4215 = vmatpush.bf16.msra.mxu2 %v6443_v46 }
 0x15c   :  { %v5896_v38 = vld [vmem:[#allocation11 + $0xa0] sm:$0xf0] }
 0x15d   :  { %v8276_v14 = vld [vmem:[#allocation11 + $0x284] sm:$0xf]  ;;  %v5899_v37 = vor.u32 %v8212_v6, %v5896_v38  ;;  %4228 = vmatpush.bf16.msra.mxu3 %v6699_v36 }
 0x15e   :  { %v6152_v15 = vld [vmem:[#allocation11 + $0x2a0] sm:$0xf0] }
 0x15f   :  { %v8340_v12 = vld [vmem:[#allocation11 + $0x484] sm:$0xf]  ;;  %v6155_v1 = vor.u32 %v8276_v14, %v6152_v15  ;;  %4190 = vmatpush.bf16.msra.mxu0 %v5899_v37 }
 0x160   :  { %v6408_v9 = vld [vmem:[#allocation11 + $0x4a0] sm:$0xf0] }
 0x161   :  { %v8404_v16 = vld [vmem:[#allocation11 + $0x684] sm:$0xf]  ;;  %v6411_v4 = vor.u32 %v8340_v12, %v6408_v9  ;;  %4203 = vmatpush.bf16.msra.mxu1 %v6155_v1 }
 0x162   :  { %v6664_v55 = vld [vmem:[#allocation11 + $0x6a0] sm:$0xf0] }
 0x163   :  { %v8204_v2 = vld [vmem:[#allocation11 + $0x44] sm:$0xf]  ;;  %v6667_v20 = vor.u32 %v8404_v16, %v6664_v55  ;;  %4216 = vmatpush.bf16.msra.mxu2 %v6411_v4 }
 0x164   :  { %v5864_v48 = vld [vmem:[#allocation11 + $0x60] sm:$0xf0] }
 0x165   :  { %v8268_v13 = vld [vmem:[#allocation11 + $0x244] sm:$0xf]  ;;  %v5867_v28 = vor.u32 %v8204_v2, %v5864_v48  ;;  %4229 = vmatpush.bf16.msra.mxu3 %v6667_v20 }
 0x166   :  { %v6120_v21 = vld [vmem:[#allocation11 + $0x260] sm:$0xf0] }
 0x167   :  { %v8332_v26 = vld [vmem:[#allocation11 + $0x444] sm:$0xf]  ;;  %v6123_v3 = vor.u32 %v8268_v13, %v6120_v21  ;;  %4191 = vmatpush.bf16.msra.mxu0 %v5867_v28 }
 0x168   :  { %v6376_v25 = vld [vmem:[#allocation11 + $0x460] sm:$0xf0] }
 0x169   :  { %v8396_v24 = vld [vmem:[#allocation11 + $0x644] sm:$0xf]  ;;  %v6379_v32 = vor.u32 %v8332_v26, %v6376_v25  ;;  %4204 = vmatpush.bf16.msra.mxu1 %v6123_v3 }
 0x16a   :  { %v6632_v58 = vld [vmem:[#allocation11 + $0x660] sm:$0xf0] }
 0x16b   :  { %v8196_v27 = vld [vmem:[#allocation11 + $0x4] sm:$0xf]  ;;  %v6635_v57 = vor.u32 %v8396_v24, %v6632_v58  ;;  %4217 = vmatpush.bf16.msra.mxu2 %v6379_v32 }
 0x16c   :  { %v5832_v63 = vld [vmem:[#allocation11 + $0x20] sm:$0xf0] }
 0x16d   :  { %v8260_v29 = vld [vmem:[#allocation11 + $0x204] sm:$0xf]  ;;  %v5835_v45 = vor.u32 %v8196_v27, %v5832_v63  ;;  %4230 = vmatpush.bf16.msra.mxu3 %v6635_v57 }
 0x16e   :  { %v6088_v31 = vld [vmem:[#allocation11 + $0x220] sm:$0xf0] }
 0x16f   :  { %v8324_v34 = vld [vmem:[#allocation11 + $0x404] sm:$0xf]  ;;  %v6091_v56 = vor.u32 %v8260_v29, %v6088_v31  ;;  %4192 = vmatpush.bf16.msra.mxu0 %v5835_v45 }
 0x170   :  { %v6344_v47 = vld [vmem:[#allocation11 + $0x420] sm:$0xf0] }
 0x171   :  { %v8388_v35 = vld [vmem:[#allocation11 + $0x604] sm:$0xf]  ;;  %v6347_v60 = vor.u32 %v8324_v34, %v6344_v47  ;;  %4205 = vmatpush.bf16.msra.mxu1 %v6091_v56 }
 0x172   :  { %v6600_v39 = vld [vmem:[#allocation11 + $0x620] sm:$0xf0]  ;;  %4193 = vmatmul.bf16.vlgmr.msra.gmra.mxu0 %v9430_v52 }
 0x173   :  { %v8508_v40 = vld [vmem:[#allocation11 + $0x9c4] sm:$0xf]  ;;  %v6603_v59 = vor.u32 %v8388_v35, %v6600_v39  ;;  %4218 = vmatpush.bf16.msra.mxu2 %v6347_v60 }
 0x174   :  { %v7080_v41 = vld [vmem:[#allocation11 + $0x9e0] sm:$0xf0]  ;;  %4206 = vmatmul.bf16.vlgmr.msra.gmra.mxu1 %v9432_v54 }
 0x175   :  { %v8572_v43 = vld [vmem:[#allocation11 + $0xbc4] sm:$0xf]  ;;  %v7083_v61 = vor.u32 %v8508_v40, %v7080_v41  ;;  %4231 = vmatpush.bf16.msra.mxu3 %v6603_v59 }
 0x176   :  { %v7336_v44 = vld [vmem:[#allocation11 + $0xbe0] sm:$0xf0]  ;;  %4219 = vmatmul.bf16.vlgmr.msra.gmra.mxu2 %v9434_v18 }
 0x177   :  { %v8636_v17 = vld [vmem:[#allocation11 + $0xdc4] sm:$0xf]  ;;  %v7339_v62 = vor.u32 %v8572_v43, %v7336_v44  ;;  %4237 = vmatpush.bf16.msrb.mxu0 %v7083_v61 }
 0x178   :  { %v7592_v19 = vld [vmem:[#allocation11 + $0xde0] sm:$0xf0]  ;;  %4232 = vmatmul.bf16.vlgmr.msra.gmra.mxu3 %v9436_v33 }
 0x179   :  { %v8700_v49 = vld [vmem:[#allocation11 + $0xfc4] sm:$0xf]  ;;  %v7595_v30 = vor.u32 %v8636_v17, %v7592_v19  ;;  %4250 = vmatpush.bf16.msrb.mxu1 %v7339_v62 }
 0x17a   :  { %v7848_v50 = vld [vmem:[#allocation11 + $0xfe0] sm:$0xf0] }
 0x17b   :  { %v8500_v0 = vld [vmem:[#allocation11 + $0x984] sm:$0xf]  ;;  %v7851_v22 = vor.u32 %v8700_v49, %v7848_v50  ;;  %4263 = vmatpush.bf16.msrb.mxu2 %v7595_v30 }
 0x17c   :  { %v7048_v53 = vld [vmem:[#allocation11 + $0x9a0] sm:$0xf0] }
 0x17d   :  { %v8564_v5 = vld [vmem:[#allocation11 + $0xb84] sm:$0xf]  ;;  %v7051_v38 = vor.u32 %v8500_v0, %v7048_v53  ;;  %4276 = vmatpush.bf16.msrb.mxu3 %v7851_v22 }
 0x17e   :  { %v7304_v23 = vld [vmem:[#allocation11 + $0xba0] sm:$0xf0] }
 0x17f   :  { %v8628_v42 = vld [vmem:[#allocation11 + $0xd84] sm:$0xf]  ;;  %v7307_v36 = vor.u32 %v8564_v5, %v7304_v23  ;;  %4238 = vmatpush.bf16.msrb.mxu0 %v7051_v38 }
 0x180   :  { %v7560_v51 = vld [vmem:[#allocation11 + $0xda0] sm:$0xf0] }
 0x181   :  { %v8692_v46 = vld [vmem:[#allocation11 + $0xf84] sm:$0xf]  ;;  %v7563_v12 = vor.u32 %v8628_v42, %v7560_v51  ;;  %4251 = vmatpush.bf16.msrb.mxu1 %v7307_v36 }
 0x182   :  { %v7816_v6 = vld [vmem:[#allocation11 + $0xfa0] sm:$0xf0] }
 0x183   :  { %v8492_v14 = vld [vmem:[#allocation11 + $0x944] sm:$0xf]  ;;  %v7819_v9 = vor.u32 %v8692_v46, %v7816_v6  ;;  %4264 = vmatpush.bf16.msrb.mxu2 %v7563_v12 }
 0x184   :  { %v7016_v15 = vld [vmem:[#allocation11 + $0x960] sm:$0xf0] }
 0x185   :  { %v8556_v16 = vld [vmem:[#allocation11 + $0xb44] sm:$0xf]  ;;  %v7019_v4 = vor.u32 %v8492_v14, %v7016_v15  ;;  %4277 = vmatpush.bf16.msrb.mxu3 %v7819_v9 }
 0x186   :  { %v7272_v55 = vld [vmem:[#allocation11 + $0xb60] sm:$0xf0] }
 0x187   :  { %v8620_v37 = vld [vmem:[#allocation11 + $0xd44] sm:$0xf]  ;;  %v7275_v20 = vor.u32 %v8556_v16, %v7272_v55  ;;  %4239 = vmatpush.bf16.msrb.mxu0 %v7019_v4 }
 0x188   :  { %v7528_v1 = vld [vmem:[#allocation11 + $0xd60] sm:$0xf0] }
 0x189   :  { %v8684_v2 = vld [vmem:[#allocation11 + $0xf44] sm:$0xf]  ;;  %v7531_v26 = vor.u32 %v8620_v37, %v7528_v1  ;;  %4252 = vmatpush.bf16.msrb.mxu1 %v7275_v20 }
 0x18a   :  { %v7784_v48 = vld [vmem:[#allocation11 + $0xf60] sm:$0xf0] }
 0x18b   :  { %v8484_v13 = vld [vmem:[#allocation11 + $0x904] sm:$0xf]  ;;  %v7787_v25 = vor.u32 %v8684_v2, %v7784_v48  ;;  %4265 = vmatpush.bf16.msrb.mxu2 %v7531_v26  ;;  %v6062_v26 = vld [vmem:[#allocation11 + $0x1c8] sm:$0xf] }
 0x18c   :  { %v6984_v21 = vld [vmem:[#allocation11 + $0x920] sm:$0xf0] }
 0x18d   :  { %v8548_v24 = vld [vmem:[#allocation11 + $0xb04] sm:$0xf]  ;;  %v6987_v29 = vor.u32 %v8484_v13, %v6984_v21  ;;  %4278 = vmatpush.bf16.msrb.mxu3 %v7787_v25  ;;  %v8257_v25 = vld [vmem:[#allocation11 + $0x1e4] sm:$0xf0] }
 0x18e   :  { %v7240_v58 = vld [vmem:[#allocation11 + $0xb20] sm:$0xf0] }
 0x18f   :  { %v8612_v27 = vld [vmem:[#allocation11 + $0xd04] sm:$0xf]  ;;  %v7243_v31 = vor.u32 %v8548_v24, %v7240_v58  ;;  %4240 = vmatpush.bf16.msrb.mxu0 %v6987_v29  ;;  %v6318_v24 = vld [vmem:[#allocation11 + $0x3c8] sm:$0xf] }
 0x190   :  { %v7496_v28 = vld [vmem:[#allocation11 + $0xd20] sm:$0xf0]  ;;  %v8321_v58 = vld [vmem:[#allocation11 + $0x3e4] sm:$0xf0] }
 0x191   :  { %v8676_v3 = vld [vmem:[#allocation11 + $0xf04] sm:$0xf]  ;;  %v7499_v34 = vor.u32 %v8612_v27, %v7496_v28  ;;  %4253 = vmatpush.bf16.msrb.mxu1 %v7243_v31  ;;  %v6574_v27 = vld [vmem:[#allocation11 + $0x5c8] sm:$0xf] }
 0x192   :  { %v7752_v63 = vld [vmem:[#allocation11 + $0xf20] sm:$0xf0]  ;;  %v6830_v29 = vld [vmem:[#allocation11 + $0x7c8] sm:$0xf] }
 0x193   :  { %v8476_v32 = vld [vmem:[#allocation11 + $0x8c4] sm:$0xf]  ;;  %v7755_v47 = vor.u32 %v8676_v3, %v7752_v63  ;;  %4266 = vmatpush.bf16.msrb.mxu2 %v7499_v34  ;;  %v8385_v63 = vld [vmem:[#allocation11 + $0x5e4] sm:$0xf0]  ;;  %v6063_v34 = vor.u32 %v8257_v25, %v6062_v26 }
 0x194   :  { %v6952_v57 = vld [vmem:[#allocation11 + $0x8e0] sm:$0xf0]  ;;  %v8449_v31 = vld [vmem:[#allocation11 + $0x7e4] sm:$0xf0] }
 0x195   :  { %v8540_v35 = vld [vmem:[#allocation11 + $0xac4] sm:$0xf]  ;;  %v6955_v17 = vor.u32 %v8476_v32, %v6952_v57  ;;  %4279 = vmatpush.bf16.msrb.mxu3 %v7755_v47  ;;  %v6319_v47 = vor.u32 %v8321_v58, %v6318_v24  ;;  %v6446_v26 = vld [vmem:[#allocation11 + $0x4c8] sm:$0xf] }
 0x196   :  { %v7208_v39 = vld [vmem:[#allocation11 + $0xae0] sm:$0xf0]  ;;  %v8353_v25 = vld [vmem:[#allocation11 + $0x4e4] sm:$0xf0] }
 0x197   :  { %v8604_v40 = vld [vmem:[#allocation11 + $0xcc4] sm:$0xf]  ;;  %v7211_v45 = vor.u32 %v8540_v35, %v7208_v39  ;;  %4241 = vmatpush.bf16.msrb.mxu0 %v6955_v17  ;;  %v6030_v35 = vld [vmem:[#allocation11 + $0x188] sm:$0xf] }
 0x198   :  { %v7464_v41 = vld [vmem:[#allocation11 + $0xce0] sm:$0xf0]  ;;  %v8249_v39 = vld [vmem:[#allocation11 + $0x1a4] sm:$0xf0] }
 0x199   :  { %v8668_v43 = vld [vmem:[#allocation11 + $0xec4] sm:$0xf]  ;;  %v7467_v49 = vor.u32 %v8604_v40, %v7464_v41  ;;  %4254 = vmatpush.bf16.msrb.mxu1 %v7211_v45  ;;  %v6575_v40 = vor.u32 %v8385_v63, %v6574_v27  ;;  %v6831_v41 = vor.u32 %v8449_v31, %v6830_v29  ;;  %v6542_v17 = vld [vmem:[#allocation11 + $0x588] sm:$0xf]  ;;  %v6447_v29 = vor.u32 %v8353_v25, %v6446_v26 }
 0x19a   :  { %v7720_v44 = vld [vmem:[#allocation11 + $0xee0] sm:$0xf0]  ;;  %v8377_v45 = vld [vmem:[#allocation11 + $0x5a4] sm:$0xf0] }
 0x19b   :  { %v8468_v56 = vld [vmem:[#allocation11 + $0x884] sm:$0xf]  ;;  %v7723_v50 = vor.u32 %v8668_v43, %v7720_v44  ;;  %4267 = vmatpush.bf16.msrb.mxu2 %v7467_v49  ;;  %v6286_v43 = vld [vmem:[#allocation11 + $0x388] sm:$0xf]  ;;  %v6031_v49 = vor.u32 %v8249_v39, %v6030_v35 }
 0x19c   :  { %v6920_v19 = vld [vmem:[#allocation11 + $0x8a0] sm:$0xf0]  ;;  %v8313_v44 = vld [vmem:[#allocation11 + $0x3a4] sm:$0xf0] }
 0x19d   :  { %v8532_v60 = vld [vmem:[#allocation11 + $0xa84] sm:$0xf]  ;;  %v6923_v30 = vor.u32 %v8468_v56, %v6920_v19  ;;  %4280 = vmatpush.bf16.msrb.mxu3 %v7723_v50  ;;  %v6798_v56 = vld [vmem:[#allocation11 + $0x788] sm:$0xf]  ;;  %v6287_v50 = vor.u32 %v8313_v44, %v6286_v43 }
 0x19e   :  { %v7176_v59 = vld [vmem:[#allocation11 + $0xaa0] sm:$0xf0]  ;;  %v8441_v19 = vld [vmem:[#allocation11 + $0x7a4] sm:$0xf0] }
 0x19f   :  { %v8596_v61 = vld [vmem:[#allocation11 + $0xc84] sm:$0xf]  ;;  %v7179_v22 = vor.u32 %v8532_v60, %v7176_v59  ;;  %4242 = vmatpush.bf16.msrb.mxu0 %v6923_v30  ;;  %v5998_v60 = vld [vmem:[#allocation11 + $0x148] sm:$0xf] }
 0x1a0   :  { %v7432_v62 = vld [vmem:[#allocation11 + $0xca0] sm:$0xf0]  ;;  %v8241_v59 = vld [vmem:[#allocation11 + $0x164] sm:$0xf0] }
 0x1a1   :  { %v8660_v0 = vld [vmem:[#allocation11 + $0xe84] sm:$0xf]  ;;  %v7435_v42 = vor.u32 %v8596_v61, %v7432_v62  ;;  %4255 = vmatpush.bf16.msrb.mxu1 %v7179_v22  ;;  %v6543_v61 = vor.u32 %v8377_v45, %v6542_v17  ;;  %v6799_v62 = vor.u32 %v8441_v19, %v6798_v56  ;;  %v6510_v30 = vld [vmem:[#allocation11 + $0x548] sm:$0xf] }
 0x1a2   :  { %v7688_v53 = vld [vmem:[#allocation11 + $0xea0] sm:$0xf0]  ;;  %v8369_v22 = vld [vmem:[#allocation11 + $0x564] sm:$0xf0] }
 0x1a3   :  { %v8460_v5 = vld [vmem:[#allocation11 + $0x844] sm:$0xf]  ;;  %v7691_v51 = vor.u32 %v8660_v0, %v7688_v53  ;;  %4268 = vmatpush.bf16.msrb.mxu2 %v7435_v42  ;;  %v6254_v0 = vld [vmem:[#allocation11 + $0x348] sm:$0xf]  ;;  %v5999_v42 = vor.u32 %v8241_v59, %v5998_v60 }
 0x1a4   :  { %v6888_v23 = vld [vmem:[#allocation11 + $0x860] sm:$0xf0]  ;;  %v8305_v53 = vld [vmem:[#allocation11 + $0x364] sm:$0xf0] }
 0x1a5   :  { %v8524_v46 = vld [vmem:[#allocation11 + $0xa44] sm:$0xf]  ;;  %v6891_v9 = vor.u32 %v8460_v5, %v6888_v23  ;;  %4281 = vmatpush.bf16.msrb.mxu3 %v7691_v51  ;;  %v6766_v5 = vld [vmem:[#allocation11 + $0x748] sm:$0xf]  ;;  %v6255_v51 = vor.u32 %v8305_v53, %v6254_v0 }
 0x1a6   :  { %v7144_v6 = vld [vmem:[#allocation11 + $0xa60] sm:$0xf0]  ;;  %v8433_v23 = vld [vmem:[#allocation11 + $0x764] sm:$0xf0] }
 0x1a7   :  { %v8588_v38 = vld [vmem:[#allocation11 + $0xc44] sm:$0xf]  ;;  %v7147_v16 = vor.u32 %v8524_v46, %v7144_v6  ;;  %4243 = vmatpush.bf16.msrb.mxu0 %v6891_v9  ;;  %v5966_v46 = vld [vmem:[#allocation11 + $0x108] sm:$0xf] }
 0x1a8   :  { %v7400_v36 = vld [vmem:[#allocation11 + $0xc60] sm:$0xf0]  ;;  %v8233_v6 = vld [vmem:[#allocation11 + $0x124] sm:$0xf0] }
 0x1a9   :  { %v8652_v14 = vld [vmem:[#allocation11 + $0xe44] sm:$0xf]  ;;  %v7403_v2 = vor.u32 %v8588_v38, %v7400_v36  ;;  %4256 = vmatpush.bf16.msrb.mxu1 %v7147_v16  ;;  %v6511_v38 = vor.u32 %v8369_v22, %v6510_v30  ;;  %v6767_v36 = vor.u32 %v8433_v23, %v6766_v5  ;;  %v8361_v9 = vld [vmem:[#allocation11 + $0x524] sm:$0xf0] }
 0x1aa   :  { %v7656_v15 = vld [vmem:[#allocation11 + $0xe60] sm:$0xf0]  ;;  %v6734_v16 = vld [vmem:[#allocation11 + $0x708] sm:$0xf] }
 0x1ab   :  { %v8452_v12 = vld [vmem:[#allocation11 + $0x804] sm:$0xf]  ;;  %v7659_v48 = vor.u32 %v8652_v14, %v7656_v15  ;;  %4269 = vmatpush.bf16.msrb.mxu2 %v7403_v2  ;;  %v6222_v14 = vld [vmem:[#allocation11 + $0x308] sm:$0xf] }
 0x1ac   :  { %v6856_v55 = vld [vmem:[#allocation11 + $0x820] sm:$0xf0]  ;;  %v8297_v15 = vld [vmem:[#allocation11 + $0x324] sm:$0xf0] }
 0x1ad   :  { %v8516_v37 = vld [vmem:[#allocation11 + $0xa04] sm:$0xf]  ;;  %v6859_v28 = vor.u32 %v8452_v12, %v6856_v55  ;;  %4282 = vmatpush.bf16.msrb.mxu3 %v7659_v48  ;;  %v6478_v12 = vld [vmem:[#allocation11 + $0x508] sm:$0xf] }
 0x1ae   :  { %v7112_v1 = vld [vmem:[#allocation11 + $0xa20] sm:$0xf0]  ;;  %v8425_v55 = vld [vmem:[#allocation11 + $0x724] sm:$0xf0] }
 0x1af   :  { %v8580_v4 = vld [vmem:[#allocation11 + $0xc04] sm:$0xf]  ;;  %v7115_v3 = vor.u32 %v8516_v37, %v7112_v1  ;;  %4244 = vmatpush.bf16.msrb.mxu0 %v6859_v28  ;;  %v5967_v37 = vor.u32 %v8233_v6, %v5966_v46  ;;  %v6223_v1 = vor.u32 %v8297_v15, %v6222_v14  ;;  %v5934_v2 = vld [vmem:[#allocation11 + $0xc8] sm:$0xf] }
 0x1b0   :  { %v7368_v20 = vld [vmem:[#allocation11 + $0xc20] sm:$0xf0]  ;;  %v8225_v48 = vld [vmem:[#allocation11 + $0xe4] sm:$0xf0] }
 0x1b1   :  { %v8644_v13 = vld [vmem:[#allocation11 + $0xe04] sm:$0xf]  ;;  %v7371_v32 = vor.u32 %v8580_v4, %v7368_v20  ;;  %4257 = vmatpush.bf16.msrb.mxu1 %v7115_v3  ;;  %v6479_v4 = vor.u32 %v8361_v9, %v6478_v12  ;;  %v6735_v20 = vor.u32 %v8425_v55, %v6734_v16  ;;  %v6702_v24 = vld [vmem:[#allocation11 + $0x6c8] sm:$0xf]  ;;  %v5935_v27 = vor.u32 %v8225_v48, %v5934_v2 }
 0x1b2   :  { %v7624_v21 = vld [vmem:[#allocation11 + $0xe20] sm:$0xf0]  ;;  %4245 = vmatmul.bf16.vlgmr.msrb.gmra.mxu0 %v9454_v7  ;;  %v8417_v58 = vld [vmem:[#allocation11 + $0x6e4] sm:$0xf0] }
 0x1b3   :  { %v7627_v57 = vor.u32 %v8644_v13, %v7624_v21  ;;  %4270 = vmatpush.bf16.msrb.mxu2 %v7371_v32  ;;  %4289 = vmatpush.bf16.msra.mxu0 %v6063_v34  ;;  %v6190_v13 = vld [vmem:[#allocation11 + $0x2c8] sm:$0xf]  ;;  %v6703_v31 = vor.u32 %v8417_v58, %v6702_v24 }
 0x1b4   :  { %4258 = vmatmul.bf16.vlgmr.msrb.gmra.mxu1 %v9456_v8  ;;  %v8289_v21 = vld [vmem:[#allocation11 + $0x2e4] sm:$0xf0] }
 0x1b5   :  { %4283 = vmatpush.bf16.msrb.mxu3 %v7627_v57  ;;  %4302 = vmatpush.bf16.msra.mxu1 %v6319_v47  ;;  %v6191_v28 = vor.u32 %v8289_v21, %v6190_v13  ;;  %v5902_v3 = vld [vmem:[#allocation11 + $0x88] sm:$0xf] }
 0x1b6   :  { %4271 = vmatmul.bf16.vlgmr.msrb.gmra.mxu2 %v9460_v11  ;;  %v8217_v63 = vld [vmem:[#allocation11 + $0xa4] sm:$0xf0] }
 0x1b7   :  { %4315 = vmatpush.bf16.msra.mxu2 %v6575_v40  ;;  %4290 = vmatpush.bf16.msra.mxu0 %v6031_v49  ;;  %v6158_v32 = vld [vmem:[#allocation11 + $0x288] sm:$0xf]  ;;  %v5903_v40 = vor.u32 %v8217_v63, %v5902_v3 }
 0x1b8   :  { %4284 = vmatmul.bf16.vlgmr.msrb.gmra.mxu3 %v9458_v10  ;;  %v8281_v57 = vld [vmem:[#allocation11 + $0x2a4] sm:$0xf0] }
 0x1b9   :  { %4328 = vmatpush.bf16.msra.mxu3 %v6831_v41  ;;  %4303 = vmatpush.bf16.msra.mxu1 %v6287_v50  ;;  %v6414_v34 = vld [vmem:[#allocation11 + $0x488] sm:$0xf]  ;;  %v6159_v41 = vor.u32 %v8281_v57, %v6158_v32 }
 0x1ba   :  { %v8345_v47 = vld [vmem:[#allocation11 + $0x4a4] sm:$0xf0] }
 0x1bb   :  { %4316 = vmatpush.bf16.msra.mxu2 %v6543_v61  ;;  %4291 = vmatpush.bf16.msra.mxu0 %v5999_v42  ;;  %v6670_v35 = vld [vmem:[#allocation11 + $0x688] sm:$0xf]  ;;  %v6415_v17 = vor.u32 %v8345_v47, %v6414_v34 }
 0x1bc   :  { %v8409_v39 = vld [vmem:[#allocation11 + $0x6a4] sm:$0xf0] }
 0x1bd   :  { %4329 = vmatpush.bf16.msra.mxu3 %v6799_v62  ;;  %4304 = vmatpush.bf16.msra.mxu1 %v6255_v51  ;;  %v5870_v43 = vld [vmem:[#allocation11 + $0x48] sm:$0xf]  ;;  %v6671_v45 = vor.u32 %v8409_v39, %v6670_v35 }
 0x1be   :  { %v8209_v44 = vld [vmem:[#allocation11 + $0x64] sm:$0xf0] }
 0x1bf   :  { %4317 = vmatpush.bf16.msra.mxu2 %v6511_v38  ;;  %4292 = vmatpush.bf16.msra.mxu0 %v5967_v37  ;;  %v6126_v56 = vld [vmem:[#allocation11 + $0x248] sm:$0xf]  ;;  %v5871_v62 = vor.u32 %v8209_v44, %v5870_v43 }
 0x1c0   :  { %v8273_v19 = vld [vmem:[#allocation11 + $0x264] sm:$0xf0] }
 0x1c1   :  { %4330 = vmatpush.bf16.msra.mxu3 %v6767_v36  ;;  %4305 = vmatpush.bf16.msra.mxu1 %v6223_v1  ;;  %v6382_v49 = vld [vmem:[#allocation11 + $0x448] sm:$0xf]  ;;  %v6127_v0 = vor.u32 %v8273_v19, %v6126_v56 }
 0x1c2   :  { %v8337_v50 = vld [vmem:[#allocation11 + $0x464] sm:$0xf0] }
 0x1c3   :  { %4318 = vmatpush.bf16.msra.mxu2 %v6479_v4  ;;  %4293 = vmatpush.bf16.msra.mxu0 %v5935_v27  ;;  %v6638_v60 = vld [vmem:[#allocation11 + $0x648] sm:$0xf]  ;;  %v6383_v5 = vor.u32 %v8337_v50, %v6382_v49 }
 0x1c4   :  { %v8401_v59 = vld [vmem:[#allocation11 + $0x664] sm:$0xf0] }
 0x1c5   :  { %4331 = vmatpush.bf16.msra.mxu3 %v6735_v20  ;;  %4306 = vmatpush.bf16.msra.mxu1 %v6191_v28  ;;  %v5838_v61 = vld [vmem:[#allocation11 + $0x8] sm:$0xf]  ;;  %v6639_v23 = vor.u32 %v8401_v59, %v6638_v60 }
 0x1c6   :  { %v8201_v53 = vld [vmem:[#allocation11 + $0x24] sm:$0xf0] }
 0x1c7   :  { %4319 = vmatpush.bf16.msra.mxu2 %v6447_v29  ;;  %4294 = vmatpush.bf16.msra.mxu0 %v5903_v40  ;;  %v6094_v30 = vld [vmem:[#allocation11 + $0x208] sm:$0xf]  ;;  %v5839_v9 = vor.u32 %v8201_v53, %v5838_v61 }
 0x1c8   :  { %v8265_v22 = vld [vmem:[#allocation11 + $0x224] sm:$0xf0] }
 0x1c9   :  { %4332 = vmatpush.bf16.msra.mxu3 %v6703_v31  ;;  %4307 = vmatpush.bf16.msra.mxu1 %v6159_v41  ;;  %v6350_v42 = vld [vmem:[#allocation11 + $0x408] sm:$0xf]  ;;  %v6095_v16 = vor.u32 %v8265_v22, %v6094_v30 }
 0x1ca   :  { %v8329_v51 = vld [vmem:[#allocation11 + $0x424] sm:$0xf0] }
 0x1cb   :  { %4320 = vmatpush.bf16.msra.mxu2 %v6415_v17  ;;  %v6606_v46 = vld [vmem:[#allocation11 + $0x608] sm:$0xf]  ;;  %4295 = vmatpush.bf16.msra.mxu0 %v5871_v62  ;;  %v6351_v2 = vor.u32 %v8329_v51, %v6350_v42 }
 0x1cc   :  { %v8393_v6 = vld [vmem:[#allocation11 + $0x624] sm:$0xf0] }
 0x1cd   :  { %4333 = vmatpush.bf16.msra.mxu3 %v6671_v45  ;;  %v7086_v38 = vld [vmem:[#allocation11 + $0x9c8] sm:$0xf]  ;;  %4308 = vmatpush.bf16.msra.mxu1 %v6127_v0  ;;  %v6607_v48 = vor.u32 %v8393_v6, %v6606_v46 }
 0x1ce   :  { %v8513_v36 = vld [vmem:[#allocation11 + $0x9e4] sm:$0xf0] }
 0x1cf   :  { %v7342_v14 = vld [vmem:[#allocation11 + $0xbc8] sm:$0xf]  ;;  %4321 = vmatpush.bf16.msra.mxu2 %v6383_v5  ;;  %v7087_v4 = vor.u32 %v8513_v36, %v7086_v38  ;;  %4296 = vmatpush.bf16.msra.mxu0 %v5839_v9 }
 0x1d0   :  { %v8577_v15 = vld [vmem:[#allocation11 + $0xbe4] sm:$0xf0] }
 0x1d1   :  { %v7598_v12 = vld [vmem:[#allocation11 + $0xdc8] sm:$0xf]  ;;  %4334 = vmatpush.bf16.msra.mxu3 %v6639_v23  ;;  %v7343_v20 = vor.u32 %v8577_v15, %v7342_v14  ;;  %4309 = vmatpush.bf16.msra.mxu1 %v6095_v16 }
 0x1d2   :  { %v8641_v55 = vld [vmem:[#allocation11 + $0xde4] sm:$0xf0]  ;;  %4297 = vmatmul.bf16.vlgmr.msra.gmra.mxu0 %v9430_v52 }
 0x1d3   :  { %v7854_v37 = vld [vmem:[#allocation11 + $0xfc8] sm:$0xf]  ;;  %v7599_v26 = vor.u32 %v8641_v55, %v7598_v12  ;;  %4322 = vmatpush.bf16.msra.mxu2 %v6351_v2  ;;  %4341 = vmatpush.bf16.msrb.mxu0 %v7087_v4 }
 0x1d4   :  { %v8705_v1 = vld [vmem:[#allocation11 + $0xfe4] sm:$0xf0]  ;;  %4310 = vmatmul.bf16.vlgmr.msra.gmra.mxu1 %v9432_v54 }
 0x1d5   :  { %v7054_v13 = vld [vmem:[#allocation11 + $0x988] sm:$0xf]  ;;  %v7855_v25 = vor.u32 %v8705_v1, %v7854_v37  ;;  %4335 = vmatpush.bf16.msra.mxu3 %v6607_v48  ;;  %4354 = vmatpush.bf16.msrb.mxu1 %v7343_v20 }
 0x1d6   :  { %v8505_v21 = vld [vmem:[#allocation11 + $0x9a4] sm:$0xf0]  ;;  %4323 = vmatmul.bf16.vlgmr.msra.gmra.mxu2 %v9434_v18 }
 0x1d7   :  { %v7310_v24 = vld [vmem:[#allocation11 + $0xb88] sm:$0xf]  ;;  %v7055_v29 = vor.u32 %v8505_v21, %v7054_v13  ;;  %4367 = vmatpush.bf16.msrb.mxu2 %v7599_v26 }
 0x1d8   :  { %v8569_v58 = vld [vmem:[#allocation11 + $0xba4] sm:$0xf0]  ;;  %4336 = vmatmul.bf16.vlgmr.msra.gmra.mxu3 %v9436_v33 }
 0x1d9   :  { %v7566_v27 = vld [vmem:[#allocation11 + $0xd88] sm:$0xf]  ;;  %v7311_v31 = vor.u32 %v8569_v58, %v7310_v24  ;;  %4380 = vmatpush.bf16.msrb.mxu3 %v7855_v25  ;;  %4342 = vmatpush.bf16.msrb.mxu0 %v7055_v29 }
 0x1da   :  { %v8633_v28 = vld [vmem:[#allocation11 + $0xda4] sm:$0xf0] }
 0x1db   :  { %v7822_v3 = vld [vmem:[#allocation11 + $0xf88] sm:$0xf]  ;;  %v7567_v34 = vor.u32 %v8633_v28, %v7566_v27  ;;  %4355 = vmatpush.bf16.msrb.mxu1 %v7311_v31 }
 0x1dc   :  { %v8697_v63 = vld [vmem:[#allocation11 + $0xfa4] sm:$0xf0] }
 0x1dd   :  { %v7022_v32 = vld [vmem:[#allocation11 + $0x948] sm:$0xf]  ;;  %v7823_v47 = vor.u32 %v8697_v63, %v7822_v3  ;;  %4368 = vmatpush.bf16.msrb.mxu2 %v7567_v34 }
 0x1de   :  { %v8497_v57 = vld [vmem:[#allocation11 + $0x964] sm:$0xf0] }
 0x1df   :  { %v7278_v35 = vld [vmem:[#allocation11 + $0xb48] sm:$0xf]  ;;  %v7023_v17 = vor.u32 %v8497_v57, %v7022_v32  ;;  %4381 = vmatpush.bf16.msrb.mxu3 %v7823_v47 }
 0x1e0   :  { %v8561_v39 = vld [vmem:[#allocation11 + $0xb64] sm:$0xf0] }
 0x1e1   :  { %v7534_v40 = vld [vmem:[#allocation11 + $0xd48] sm:$0xf]  ;;  %v7279_v45 = vor.u32 %v8561_v39, %v7278_v35  ;;  %4343 = vmatpush.bf16.msrb.mxu0 %v7023_v17 }
 0x1e2   :  { %v8625_v41 = vld [vmem:[#allocation11 + $0xd64] sm:$0xf0] }
 0x1e3   :  { %v7790_v43 = vld [vmem:[#allocation11 + $0xf48] sm:$0xf]  ;;  %v7535_v49 = vor.u32 %v8625_v41, %v7534_v40  ;;  %4356 = vmatpush.bf16.msrb.mxu1 %v7279_v45 }
 0x1e4   :  { %v8689_v44 = vld [vmem:[#allocation11 + $0xf64] sm:$0xf0] }
 0x1e5   :  { %v6990_v56 = vld [vmem:[#allocation11 + $0x908] sm:$0xf]  ;;  %v7791_v50 = vor.u32 %v8689_v44, %v7790_v43  ;;  %4369 = vmatpush.bf16.msrb.mxu2 %v7535_v49  ;;  %v8253_v49 = vld [vmem:[#allocation11 + $0x1cc] sm:$0xf] }
 0x1e6   :  { %v8489_v19 = vld [vmem:[#allocation11 + $0x924] sm:$0xf0] }
 0x1e7   :  { %v7246_v60 = vld [vmem:[#allocation11 + $0xb08] sm:$0xf]  ;;  %v6991_v30 = vor.u32 %v8489_v19, %v6990_v56  ;;  %4382 = vmatpush.bf16.msrb.mxu3 %v7791_v50  ;;  %v6064_v50 = vld [vmem:[#allocation11 + $0x1e8] sm:$0xf0] }
 0x1e8   :  { %v8553_v59 = vld [vmem:[#allocation11 + $0xb24] sm:$0xf0] }
 0x1e9   :  { %v7502_v61 = vld [vmem:[#allocation11 + $0xd08] sm:$0xf]  ;;  %v7247_v22 = vor.u32 %v8553_v59, %v7246_v60  ;;  %4344 = vmatpush.bf16.msrb.mxu0 %v6991_v30  ;;  %v8317_v60 = vld [vmem:[#allocation11 + $0x3cc] sm:$0xf] }
 0x1ea   :  { %v8617_v62 = vld [vmem:[#allocation11 + $0xd24] sm:$0xf0]  ;;  %v6320_v59 = vld [vmem:[#allocation11 + $0x3e8] sm:$0xf0] }
 0x1eb   :  { %v7758_v0 = vld [vmem:[#allocation11 + $0xf08] sm:$0xf]  ;;  %v7503_v42 = vor.u32 %v8617_v62, %v7502_v61  ;;  %4357 = vmatpush.bf16.msrb.mxu1 %v7247_v22  ;;  %v8381_v61 = vld [vmem:[#allocation11 + $0x5cc] sm:$0xf] }
 0x1ec   :  { %v8681_v53 = vld [vmem:[#allocation11 + $0xf24] sm:$0xf0]  ;;  %v8445_v30 = vld [vmem:[#allocation11 + $0x7cc] sm:$0xf] }
 0x1ed   :  { %v6958_v5 = vld [vmem:[#allocation11 + $0x8c8] sm:$0xf]  ;;  %v7759_v51 = vor.u32 %v8681_v53, %v7758_v0  ;;  %4370 = vmatpush.bf16.msrb.mxu2 %v7503_v42  ;;  %v6576_v53 = vld [vmem:[#allocation11 + $0x5e8] sm:$0xf0]  ;;  %v6067_v42 = vor.u32 %v8253_v49, %v6064_v50 }
 0x1ee   :  { %v8481_v23 = vld [vmem:[#allocation11 + $0x8e4] sm:$0xf0]  ;;  %v6832_v22 = vld [vmem:[#allocation11 + $0x7e8] sm:$0xf0] }
 0x1ef   :  { %v7214_v46 = vld [vmem:[#allocation11 + $0xac8] sm:$0xf]  ;;  %v6959_v12 = vor.u32 %v8481_v23, %v6958_v5  ;;  %4383 = vmatpush.bf16.msrb.mxu3 %v7759_v51  ;;  %v6323_v51 = vor.u32 %v8317_v60, %v6320_v59  ;;  %v8221_v49 = vld [vmem:[#allocation11 + $0xcc] sm:$0xf] }
 0x1f0   :  { %v8545_v6 = vld [vmem:[#allocation11 + $0xae4] sm:$0xf0]  ;;  %v5936_v50 = vld [vmem:[#allocation11 + $0xe8] sm:$0xf0] }
 0x1f1   :  { %v7470_v38 = vld [vmem:[#allocation11 + $0xcc8] sm:$0xf]  ;;  %v7215_v9 = vor.u32 %v8545_v6, %v7214_v46  ;;  %4345 = vmatpush.bf16.msrb.mxu0 %v6959_v12  ;;  %v8245_v46 = vld [vmem:[#allocation11 + $0x18c] sm:$0xf] }
 0x1f2   :  { %v8609_v36 = vld [vmem:[#allocation11 + $0xce4] sm:$0xf0]  ;;  %v6032_v6 = vld [vmem:[#allocation11 + $0x1a8] sm:$0xf0] }
 0x1f3   :  { %v7726_v14 = vld [vmem:[#allocation11 + $0xec8] sm:$0xf]  ;;  %v7471_v37 = vor.u32 %v8609_v36, %v7470_v38  ;;  %4358 = vmatpush.bf16.msrb.mxu1 %v7215_v9  ;;  %v8309_v38 = vld [vmem:[#allocation11 + $0x38c] sm:$0xf]  ;;  %v6579_v36 = vor.u32 %v8381_v61, %v6576_v53  ;;  %v9478_v9 = vld [vmem:[#allocation13] sm:$0xff]  ;;  %v4116_v53 = vpop.f32.mrf.mxu2 }
 0x1f4   :  { %v8673_v15 = vld [vmem:[#allocation11 + $0xee4] sm:$0xf0]  ;;  %v8373_v12 = vld [vmem:[#allocation11 + $0x58c] sm:$0xf] }
 0x1f5   :  { %v6926_v16 = vld [vmem:[#allocation11 + $0x888] sm:$0xf]  ;;  %v7727_v1 = vor.u32 %v8673_v15, %v7726_v14  ;;  %4371 = vmatpush.bf16.msrb.mxu2 %v7471_v37  ;;  %v6835_v14 = vor.u32 %v8445_v30, %v6832_v22  ;;  %v6288_v15 = vld [vmem:[#allocation11 + $0x3a8] sm:$0xf0]  ;;  %v4129_v30 = vpop.f32.mrf.mxu3 }
 0x1f6   :  { %v8473_v55 = vld [vmem:[#allocation11 + $0x8a4] sm:$0xf0]  ;;  %v6800_v37 = vld [vmem:[#allocation11 + $0x7a8] sm:$0xf0] }
 0x1f7   :  { %v7182_v2 = vld [vmem:[#allocation11 + $0xa88] sm:$0xf]  ;;  %v6927_v26 = vor.u32 %v8473_v55, %v6926_v16  ;;  %4384 = vmatpush.bf16.msrb.mxu3 %v7727_v1  ;;  %v6544_v16 = vld [vmem:[#allocation11 + $0x5a8] sm:$0xf0]  ;;  %v6035_v1 = vor.u32 %v8245_v46, %v6032_v6  ;;  %v5939_v6 = vor.u32 %v8221_v49, %v5936_v50 }
 0x1f8   :  { %v8537_v48 = vld [vmem:[#allocation11 + $0xaa4] sm:$0xf0]  ;;  %v8437_v55 = vld [vmem:[#allocation11 + $0x78c] sm:$0xf] }
 0x1f9   :  { %v7438_v4 = vld [vmem:[#allocation11 + $0xc88] sm:$0xf]  ;;  %v7183_v25 = vor.u32 %v8537_v48, %v7182_v2  ;;  %4346 = vmatpush.bf16.msrb.mxu0 %v6927_v26  ;;  %v6291_v2 = vor.u32 %v8309_v38, %v6288_v15  ;;  %v8237_v48 = vld [vmem:[#allocation11 + $0x14c] sm:$0xf] }
 0x1fa   :  { %v8601_v20 = vld [vmem:[#allocation11 + $0xca4] sm:$0xf0]  ;;  %v8301_v26 = vld [vmem:[#allocation11 + $0x34c] sm:$0xf] }
 0x1fb   :  { %v7694_v13 = vld [vmem:[#allocation11 + $0xe88] sm:$0xf]  ;;  %v7439_v27 = vor.u32 %v8601_v20, %v7438_v4  ;;  %4359 = vmatpush.bf16.msrb.mxu1 %v7183_v25  ;;  %v6000_v4 = vld [vmem:[#allocation11 + $0x168] sm:$0xf0]  ;;  %v1505_v20 = vperm.slane %v9478_v9, 0 }
 0x1fc   :  { %v8665_v21 = vld [vmem:[#allocation11 + $0xea4] sm:$0xf0]  ;;  %v6256_v25 = vld [vmem:[#allocation11 + $0x368] sm:$0xf0] }
 0x1fd   :  { %v6894_v24 = vld [vmem:[#allocation11 + $0x848] sm:$0xf]  ;;  %v7695_v28 = vor.u32 %v8665_v21, %v7694_v13  ;;  %4372 = vmatpush.bf16.msrb.mxu2 %v7439_v27  ;;  %v6547_v13 = vor.u32 %v8373_v12, %v6544_v16  ;;  %v6803_v21 = vor.u32 %v8437_v55, %v6800_v37  ;;  %v8429_v27 = vld [vmem:[#allocation11 + $0x74c] sm:$0xf] }
 0x1fe   :  { %v8465_v58 = vld [vmem:[#allocation11 + $0x864] sm:$0xf0]  ;;  %v8285_v61 = vld [vmem:[#allocation11 + $0x2cc] sm:$0xf] }
 0x1ff   :  { %v7150_v3 = vld [vmem:[#allocation11 + $0xa48] sm:$0xf]  ;;  %v6895_v47 = vor.u32 %v8465_v58, %v6894_v24  ;;  %4385 = vmatpush.bf16.msrb.mxu3 %v7695_v28  ;;  %v8365_v24 = vld [vmem:[#allocation11 + $0x54c] sm:$0xf] }
 0x200   :  { %v8529_v63 = vld [vmem:[#allocation11 + $0xa64] sm:$0xf0]  ;;  %v6512_v58 = vld [vmem:[#allocation11 + $0x568] sm:$0xf0] }
 0x201   :  { %v7406_v29 = vld [vmem:[#allocation11 + $0xc48] sm:$0xf]  ;;  %v7151_v35 = vor.u32 %v8529_v63, %v7150_v3  ;;  %4347 = vmatpush.bf16.msrb.mxu0 %v6895_v47  ;;  %v6768_v28 = vld [vmem:[#allocation11 + $0x768] sm:$0xf0]  ;;  %v4090_v3 = vpop.f32.mrf.mxu0  ;;  %v4103_v63 = vpop.f32.mrf.mxu1  ;;  %v6515_v47 = vor.u32 %v8365_v24, %v6512_v58 }
 0x202   :  { %v8593_v31 = vld [vmem:[#allocation11 + $0xc64] sm:$0xf0]  ;;  %v6448_v22 = vld [vmem:[#allocation11 + $0x4e8] sm:$0xf0] }
 0x203   :  { %v7662_v32 = vld [vmem:[#allocation11 + $0xe48] sm:$0xf]  ;;  %v7407_v43 = vor.u32 %v8593_v31, %v7406_v29  ;;  %4360 = vmatpush.bf16.msrb.mxu1 %v7151_v35  ;;  %v6003_v29 = vor.u32 %v8237_v48, %v6000_v4  ;;  %v6259_v31 = vor.u32 %v8301_v26, %v6256_v25  ;;  %v6771_v35 = vor.u32 %v8429_v27, %v6768_v28  ;;  %v8277_v55 = vld [vmem:[#allocation11 + $0x28c] sm:$0xf] }
 0x204   :  { %v8657_v57 = vld [vmem:[#allocation11 + $0xe64] sm:$0xf0]  ;;  %v6160_v37 = vld [vmem:[#allocation11 + $0x2a8] sm:$0xf0] }
 0x205   :  { %v6862_v34 = vld [vmem:[#allocation11 + $0x808] sm:$0xf]  ;;  %v7663_v44 = vor.u32 %v8657_v57, %v7662_v32  ;;  %4373 = vmatpush.bf16.msrb.mxu2 %v7407_v43  ;;  %v4091_v32 = vadd.f32 %v4090_v3, %v1505_v20  ;;  %v8229_v57 = vld [vmem:[#allocation11 + $0x10c] sm:$0xf]  ;;  %v4118_v3 = vpop.f32.mrf.mxu2 }
 0x206   :  { %v8457_v39 = vld [vmem:[#allocation11 + $0x824] sm:$0xf0]  ;;  %v8405_v48 = vld [vmem:[#allocation11 + $0x68c] sm:$0xf] }
 0x207   :  { %v7118_v40 = vld [vmem:[#allocation11 + $0xa08] sm:$0xf]  ;;  %v6863_v62 = vor.u32 %v8457_v39, %v6862_v34  ;;  %4386 = vmatpush.bf16.msrb.mxu3 %v7663_v44  ;;  %v5968_v34 = vld [vmem:[#allocation11 + $0x128] sm:$0xf0]  ;;  %v4104_v43 = vadd.f32 %v4103_v63, %v4091_v32  ;;  %v4131_v63 = vpop.f32.mrf.mxu3 }
 0x208   :  { %v8521_v41 = vld [vmem:[#allocation11 + $0xa24] sm:$0xf0]  ;;  %v8293_v39 = vld [vmem:[#allocation11 + $0x30c] sm:$0xf] }
 0x209   :  { %v7374_v17 = vld [vmem:[#allocation11 + $0xc08] sm:$0xf]  ;;  %v7119_v0 = vor.u32 %v8521_v41, %v7118_v40  ;;  %4348 = vmatpush.bf16.msrb.mxu0 %v6863_v62  ;;  %v6224_v40 = vld [vmem:[#allocation11 + $0x328] sm:$0xf0]  ;;  %v4105_v46 = vpop.f32.mrf.mxu1 }
 0x20a   :  { %v8585_v45 = vld [vmem:[#allocation11 + $0xc24] sm:$0xf0]  ;;  %v8357_v41 = vld [vmem:[#allocation11 + $0x50c] sm:$0xf] }
 0x20b   :  { %v7630_v56 = vld [vmem:[#allocation11 + $0xe08] sm:$0xf]  ;;  %v7375_v5 = vor.u32 %v8585_v45, %v7374_v17  ;;  %4361 = vmatpush.bf16.msrb.mxu1 %v7119_v0  ;;  %v6480_v44 = vld [vmem:[#allocation11 + $0x528] sm:$0xf0] }
 0x20c   :  { %v8649_v19 = vld [vmem:[#allocation11 + $0xe24] sm:$0xf0]  ;;  %4349 = vmatmul.bf16.vlgmr.msrb.gmra.mxu0 %v9454_v7  ;;  %v8421_v17 = vld [vmem:[#allocation11 + $0x70c] sm:$0xf]  ;;  %v6483_v60 = vor.u32 %v8357_v41, %v6480_v44 }
 0x20d   :  { %v7631_v23 = vor.u32 %v8649_v19, %v7630_v56  ;;  %4374 = vmatpush.bf16.msrb.mxu2 %v7375_v5  ;;  %4393 = vmatpush.bf16.msra.mxu0 %v6067_v42  ;;  %v6736_v45 = vld [vmem:[#allocation11 + $0x728] sm:$0xf0]  ;;  %v5971_v56 = vor.u32 %v8229_v57, %v5968_v34  ;;  %v6227_v19 = vor.u32 %v8293_v39, %v6224_v40 }
 0x20e   :  { %4362 = vmatmul.bf16.vlgmr.msrb.gmra.mxu1 %v9456_v8  ;;  %v6739_v59 = vor.u32 %v8421_v17, %v6736_v45  ;;  %v6192_v62 = vld [vmem:[#allocation11 + $0x2e8] sm:$0xf0]  ;;  %v4117_v42 = vadd.f32 %v4116_v53, %v4104_v43 }
 0x20f   :  { %4387 = vmatpush.bf16.msrb.mxu3 %v7631_v23  ;;  %4406 = vmatpush.bf16.msra.mxu1 %v6323_v51  ;;  %v8349_v0 = vld [vmem:[#allocation11 + $0x4cc] sm:$0xf]  ;;  %v4092_v51 = vpop.f32.mrf.mxu0  ;;  %v6195_v38 = vor.u32 %v8285_v61, %v6192_v62 }
 0x210   :  { %4375 = vmatmul.bf16.vlgmr.msrb.gmra.mxu2 %v9460_v11  ;;  %v8413_v5 = vld [vmem:[#allocation11 + $0x6cc] sm:$0xf]  ;;  %v4130_v15 = vadd.f32 %v4129_v30, %v4117_v42  ;;  %v6451_v12 = vor.u32 %v8349_v0, %v6448_v22 }
 0x211   :  { %4419 = vmatpush.bf16.msra.mxu2 %v6579_v36  ;;  %4394 = vmatpush.bf16.msra.mxu0 %v6035_v1  ;;  %v6704_v23 = vld [vmem:[#allocation11 + $0x6e8] sm:$0xf0]  ;;  %v4155_v34 = vpop.f32.mrf.mxu1 }
 0x212   :  { %4388 = vmatmul.bf16.vlgmr.msrb.gmra.mxu3 %v9458_v10  ;;  %v8213_v36 = vld [vmem:[#allocation11 + $0x8c] sm:$0xf]  ;;  %v6707_v16 = vor.u32 %v8413_v5, %v6704_v23 }
 0x213   :  { %4432 = vmatpush.bf16.msra.mxu3 %v6835_v14  ;;  %4407 = vmatpush.bf16.msra.mxu1 %v6291_v2  ;;  %v5904_v14 = vld [vmem:[#allocation11 + $0xa8] sm:$0xf0] }
 0x214   :  { %v8341_v1 = vld [vmem:[#allocation11 + $0x48c] sm:$0xf]  ;;  %v5907_v20 = vor.u32 %v8213_v36, %v5904_v14  ;;  %v4168_v36 = vpop.f32.mrf.mxu2  ;;  %v4181_v14 = vpop.f32.mrf.mxu3 }
 0x215   :  { %4420 = vmatpush.bf16.msra.mxu2 %v6547_v13  ;;  %4395 = vmatpush.bf16.msra.mxu0 %v6003_v29  ;;  %v6416_v2 = vld [vmem:[#allocation11 + $0x4a8] sm:$0xf0]  ;;  %v6163_v13 = vor.u32 %v8277_v55, %v6160_v37 }
 0x216   :  { %v6672_v4 = vld [vmem:[#allocation11 + $0x6a8] sm:$0xf0]  ;;  %v6419_v25 = vor.u32 %v8341_v1, %v6416_v2 }
 0x217   :  { %4433 = vmatpush.bf16.msra.mxu3 %v6803_v21  ;;  %4408 = vmatpush.bf16.msra.mxu1 %v6259_v31  ;;  %v8205_v21 = vld [vmem:[#allocation11 + $0x4c] sm:$0xf]  ;;  %v6675_v24 = vor.u32 %v8405_v48, %v6672_v4  ;;  %v4142_v57 = vpop.f32.mrf.mxu0 }
 0x218   :  { %v5872_v26 = vld [vmem:[#allocation11 + $0x68] sm:$0xf0]  ;;  %v4143_v40 = vadd.f32 %v4142_v57, %v4130_v15 }
 0x219   :  { %4421 = vmatpush.bf16.msra.mxu2 %v6515_v47  ;;  %4396 = vmatpush.bf16.msra.mxu0 %v5971_v56  ;;  %v8269_v58 = vld [vmem:[#allocation11 + $0x24c] sm:$0xf]  ;;  %v4157_v2 = vpop.f32.mrf.mxu1 }
 0x21a   :  { %v6128_v27 = vld [vmem:[#allocation11 + $0x268] sm:$0xf0]  ;;  %v4156_v50 = vadd.f32 %v4155_v34, %v4143_v40 }
 0x21b   :  { %4434 = vmatpush.bf16.msra.mxu3 %v6771_v35  ;;  %4409 = vmatpush.bf16.msra.mxu1 %v6227_v19  ;;  %v8333_v28 = vld [vmem:[#allocation11 + $0x44c] sm:$0xf]  ;;  %v5875_v35 = vor.u32 %v8205_v21, %v5872_v26  ;;  %v6131_v39 = vor.u32 %v8269_v58, %v6128_v27 }
 0x21c   :  { %v6384_v29 = vld [vmem:[#allocation11 + $0x468] sm:$0xf0]  ;;  %v4169_v37 = vadd.f32 %v4168_v36, %v4156_v50  ;;  %v4170_v40 = vpop.f32.mrf.mxu2 }
 0x21d   :  { %4422 = vmatpush.bf16.msra.mxu2 %v6483_v60  ;;  %4397 = vmatpush.bf16.msra.mxu0 %v5939_v6  ;;  %v8397_v31 = vld [vmem:[#allocation11 + $0x64c] sm:$0xf]  ;;  %v6387_v17 = vor.u32 %v8333_v28, %v6384_v29 }
 0x21e   :  { %v6640_v32 = vld [vmem:[#allocation11 + $0x668] sm:$0xf0] }
 0x21f   :  { %4435 = vmatpush.bf16.msra.mxu3 %v6739_v59  ;;  %4410 = vmatpush.bf16.msra.mxu1 %v6195_v38  ;;  %v8197_v47 = vld [vmem:[#allocation11 + $0xc] sm:$0xf]  ;;  %v6643_v45 = vor.u32 %v8397_v31, %v6640_v32  ;;  %v4144_v1 = vpop.f32.mrf.mxu0 }
 0x220   :  { %v5840_v41 = vld [vmem:[#allocation11 + $0x28] sm:$0xf0] }
 0x221   :  { %4423 = vmatpush.bf16.msra.mxu2 %v6451_v12  ;;  %4398 = vmatpush.bf16.msra.mxu0 %v5907_v20  ;;  %v8261_v43 = vld [vmem:[#allocation11 + $0x20c] sm:$0xf]  ;;  %v5843_v30 = vor.u32 %v8197_v47, %v5840_v41  ;;  %v4183_v41 = vpop.f32.mrf.mxu3 }
 0x222   :  { %v6096_v44 = vld [vmem:[#allocation11 + $0x228] sm:$0xf0] }
 0x223   :  { %4436 = vmatpush.bf16.msra.mxu3 %v6707_v16  ;;  %4411 = vmatpush.bf16.msra.mxu1 %v6163_v13  ;;  %v8325_v56 = vld [vmem:[#allocation11 + $0x40c] sm:$0xf]  ;;  %v6099_v22 = vor.u32 %v8261_v43, %v6096_v44  ;;  %v1506_v43 = vperm.slane %v9478_v9, 1 }
 0x224   :  { %v6352_v19 = vld [vmem:[#allocation11 + $0x428] sm:$0xf0] }
 0x225   :  { %4424 = vmatpush.bf16.msra.mxu2 %v6419_v25  ;;  %v8389_v49 = vld [vmem:[#allocation11 + $0x60c] sm:$0xf]  ;;  %4399 = vmatpush.bf16.msra.mxu0 %v5875_v35  ;;  %v6355_v51 = vor.u32 %v8325_v56, %v6352_v19  ;;  %v9485_v25 = vadd.f32 %v4181_v14, %v4169_v37 }
 0x226   :  { %v6608_v60 = vld [vmem:[#allocation11 + $0x628] sm:$0xf0] }
 0x227   :  { %4437 = vmatpush.bf16.msra.mxu3 %v6675_v24  ;;  %v8509_v59 = vld [vmem:[#allocation11 + $0x9cc] sm:$0xf]  ;;  %4412 = vmatpush.bf16.msra.mxu1 %v6131_v39  ;;  %v6611_v46 = vor.u32 %v8389_v49, %v6608_v60 }
 0x228   :  { %v7088_v61 = vld [vmem:[#allocation11 + $0x9e8] sm:$0xf0] }
 0x229   :  { %v8573_v62 = vld [vmem:[#allocation11 + $0xbcc] sm:$0xf]  ;;  %4425 = vmatpush.bf16.msra.mxu2 %v6387_v17  ;;  %v7091_v6 = vor.u32 %v8509_v59, %v7088_v61  ;;  %4400 = vmatpush.bf16.msra.mxu0 %v5843_v30 }
 0x22a   :  { %v7344_v0 = vld [vmem:[#allocation11 + $0xbe8] sm:$0xf0] }
 0x22b   :  { %v8637_v53 = vld [vmem:[#allocation11 + $0xdcc] sm:$0xf]  ;;  %4438 = vmatpush.bf16.msra.mxu3 %v6643_v45  ;;  %v7347_v38 = vor.u32 %v8573_v62, %v7344_v0  ;;  %4413 = vmatpush.bf16.msra.mxu1 %v6099_v22  ;;  %v4194_v62 = vpop.f32.mrf.mxu0  ;;  %v4207_v0 = vpop.f32.mrf.mxu1 }
 0x22c   :  { %v7600_v5 = vld [vmem:[#allocation11 + $0xde8] sm:$0xf0]  ;;  %4401 = vmatmul.bf16.vlgmr.msra.gmra.mxu0 %v9430_v52 }
 0x22d   :  { %v8701_v23 = vld [vmem:[#allocation11 + $0xfcc] sm:$0xf]  ;;  %v7603_v16 = vor.u32 %v8637_v53, %v7600_v5  ;;  %4426 = vmatpush.bf16.msra.mxu2 %v6355_v51  ;;  %4445 = vmatpush.bf16.msrb.mxu0 %v7091_v6  ;;  %v4195_v53 = vadd.f32 %v4194_v62, %v1506_v43 }
 0x22e   :  { %v7856_v42 = vld [vmem:[#allocation11 + $0xfe8] sm:$0xf0]  ;;  %4414 = vmatmul.bf16.vlgmr.msra.gmra.mxu1 %v9432_v54 }
 0x22f   :  { %v8501_v15 = vld [vmem:[#allocation11 + $0x98c] sm:$0xf]  ;;  %v7859_v55 = vor.u32 %v8701_v23, %v7856_v42  ;;  %4439 = vmatpush.bf16.msra.mxu3 %v6611_v46  ;;  %4458 = vmatpush.bf16.msrb.mxu1 %v7347_v38  ;;  %v4208_v36 = vadd.f32 %v4207_v0, %v4195_v53 }
 0x230   :  { %v7056_v12 = vld [vmem:[#allocation11 + $0x9a8] sm:$0xf0]  ;;  %4427 = vmatmul.bf16.vlgmr.msra.gmra.mxu2 %v9434_v18 }
 0x231   :  { %v8565_v48 = vld [vmem:[#allocation11 + $0xb8c] sm:$0xf]  ;;  %v7059_v24 = vor.u32 %v8501_v15, %v7056_v12  ;;  %4471 = vmatpush.bf16.msrb.mxu2 %v7603_v16 }
 0x232   :  { %v7312_v4 = vld [vmem:[#allocation11 + $0xba8] sm:$0xf0]  ;;  %4440 = vmatmul.bf16.vlgmr.msra.gmra.mxu3 %v9436_v33 }
 0x233   :  { %v8629_v20 = vld [vmem:[#allocation11 + $0xd8c] sm:$0xf]  ;;  %v7315_v58 = vor.u32 %v8565_v48, %v7312_v4  ;;  %4484 = vmatpush.bf16.msrb.mxu3 %v7859_v55  ;;  %4446 = vmatpush.bf16.msrb.mxu0 %v7059_v24 }
 0x234   :  { %v7568_v13 = vld [vmem:[#allocation11 + $0xda8] sm:$0xf0] }
 0x235   :  { %v8693_v21 = vld [vmem:[#allocation11 + $0xf8c] sm:$0xf]  ;;  %v7571_v3 = vor.u32 %v8629_v20, %v7568_v13  ;;  %4459 = vmatpush.bf16.msrb.mxu1 %v7315_v58 }
 0x236   :  { %v7824_v26 = vld [vmem:[#allocation11 + $0xfa8] sm:$0xf0] }
 0x237   :  { %v8493_v27 = vld [vmem:[#allocation11 + $0x94c] sm:$0xf]  ;;  %v7827_v63 = vor.u32 %v8693_v21, %v7824_v26  ;;  %4472 = vmatpush.bf16.msrb.mxu2 %v7571_v3  ;;  %v4220_v21 = vpop.f32.mrf.mxu2  ;;  %v4233_v26 = vpop.f32.mrf.mxu3 }
 0x238   :  { %v7024_v28 = vld [vmem:[#allocation11 + $0x968] sm:$0xf0]  ;;  %v4196_v3 = vpop.f32.mrf.mxu0 }
 0x239   :  { %v8557_v29 = vld [vmem:[#allocation11 + $0xb4c] sm:$0xf]  ;;  %v7027_v35 = vor.u32 %v8493_v27, %v7024_v28  ;;  %4485 = vmatpush.bf16.msrb.mxu3 %v7827_v63  ;;  %v4221_v28 = vadd.f32 %v4220_v21, %v4208_v36  ;;  %v4209_v63 = vpop.f32.mrf.mxu1  ;;  %v8314_v21 = vld [vmem:[#allocation11 + $0x3ac] sm:$0xf0] }
 0x23a   :  { %v7280_v31 = vld [vmem:[#allocation11 + $0xb68] sm:$0xf0]  ;;  %v6006_v63 = vld [vmem:[#allocation11 + $0x150] sm:$0xf] }
 0x23b   :  { %v8621_v32 = vld [vmem:[#allocation11 + $0xd4c] sm:$0xf]  ;;  %v7283_v39 = vor.u32 %v8557_v29, %v7280_v31  ;;  %4447 = vmatpush.bf16.msrb.mxu0 %v7027_v35 }
 0x23c   :  { %v7536_v57 = vld [vmem:[#allocation11 + $0xd68] sm:$0xf0] }
 0x23d   :  { %v8685_v34 = vld [vmem:[#allocation11 + $0xf4c] sm:$0xf]  ;;  %v7539_v45 = vor.u32 %v8621_v32, %v7536_v57  ;;  %4460 = vmatpush.bf16.msrb.mxu1 %v7283_v39 }
 0x23e   :  { %v7792_v47 = vld [vmem:[#allocation11 + $0xf68] sm:$0xf0] }
 0x23f   :  { %v8485_v44 = vld [vmem:[#allocation11 + $0x90c] sm:$0xf]  ;;  %v7795_v56 = vor.u32 %v8685_v34, %v7792_v47  ;;  %4473 = vmatpush.bf16.msrb.mxu2 %v7539_v45  ;;  %v9492_v34 = vadd.f32 %v4233_v26, %v4221_v28  ;;  %v6550_v26 = vld [vmem:[#allocation11 + $0x590] sm:$0xf] }
 0x240   :  { %v6992_v17 = vld [vmem:[#allocation11 + $0x928] sm:$0xf0] }
 0x241   :  { %v8549_v19 = vld [vmem:[#allocation11 + $0xb0c] sm:$0xf]  ;;  %v6995_v30 = vor.u32 %v8485_v44, %v6992_v17  ;;  %4486 = vmatpush.bf16.msrb.mxu3 %v7795_v56 }
 0x242   :  { %v7248_v49 = vld [vmem:[#allocation11 + $0xb28] sm:$0xf0] }
 0x243   :  { %v8613_v50 = vld [vmem:[#allocation11 + $0xd0c] sm:$0xf]  ;;  %v7251_v22 = vor.u32 %v8549_v19, %v7248_v49  ;;  %4448 = vmatpush.bf16.msrb.mxu0 %v6995_v30  ;;  %v4222_v30 = vpop.f32.mrf.mxu2 }
 0x244   :  { %v7504_v60 = vld [vmem:[#allocation11 + $0xd28] sm:$0xf0] }
 0x245   :  { %v8677_v59 = vld [vmem:[#allocation11 + $0xf0c] sm:$0xf]  ;;  %v7507_v42 = vor.u32 %v8613_v50, %v7504_v60  ;;  %4461 = vmatpush.bf16.msrb.mxu1 %v7251_v22  ;;  %v4235_v22 = vpop.f32.mrf.mxu3 }
 0x246   :  { %v7760_v61 = vld [vmem:[#allocation11 + $0xf28] sm:$0xf0] }
 0x247   :  { %v8477_v5 = vld [vmem:[#allocation11 + $0x8cc] sm:$0xf]  ;;  %v7763_v51 = vor.u32 %v8677_v59, %v7760_v61  ;;  %4474 = vmatpush.bf16.msrb.mxu2 %v7507_v42  ;;  %v8258_v42 = vld [vmem:[#allocation11 + $0x1ec] sm:$0xf0] }
 0x248   :  { %v6960_v23 = vld [vmem:[#allocation11 + $0x8e8] sm:$0xf0] }
 0x249   :  { %v8541_v46 = vld [vmem:[#allocation11 + $0xacc] sm:$0xf]  ;;  %v6963_v16 = vor.u32 %v8477_v5, %v6960_v23  ;;  %4487 = vmatpush.bf16.msrb.mxu3 %v7763_v51  ;;  %v6070_v23 = vld [vmem:[#allocation11 + $0x1d0] sm:$0xf] }
 0x24a   :  { %v7216_v6 = vld [vmem:[#allocation11 + $0xae8] sm:$0xf0]  ;;  %v6326_v51 = vld [vmem:[#allocation11 + $0x3d0] sm:$0xf] }
 0x24b   :  { %v8605_v38 = vld [vmem:[#allocation11 + $0xccc] sm:$0xf]  ;;  %v7219_v55 = vor.u32 %v8541_v46, %v7216_v6  ;;  %4449 = vmatpush.bf16.msrb.mxu0 %v6963_v16  ;;  %v8322_v46 = vld [vmem:[#allocation11 + $0x3ec] sm:$0xf0] }
 0x24c   :  { %v7472_v14 = vld [vmem:[#allocation11 + $0xce8] sm:$0xf0]  ;;  %v6582_v6 = vld [vmem:[#allocation11 + $0x5d0] sm:$0xf] }
 0x24d   :  { %v8669_v15 = vld [vmem:[#allocation11 + $0xecc] sm:$0xf]  ;;  %v7475_v2 = vor.u32 %v8605_v38, %v7472_v14  ;;  %4462 = vmatpush.bf16.msrb.mxu1 %v7219_v55  ;;  %v8386_v14 = vld [vmem:[#allocation11 + $0x5ec] sm:$0xf0] }
 0x24e   :  { %v7728_v12 = vld [vmem:[#allocation11 + $0xee8] sm:$0xf0] }
 0x24f   :  { %v8469_v37 = vld [vmem:[#allocation11 + $0x88c] sm:$0xf]  ;;  %v7731_v48 = vor.u32 %v8669_v15, %v7728_v12  ;;  %4475 = vmatpush.bf16.msrb.mxu2 %v7475_v2  ;;  %v6838_v15 = vld [vmem:[#allocation11 + $0x7d0] sm:$0xf] }
 0x250   :  { %v6928_v1 = vld [vmem:[#allocation11 + $0x8a8] sm:$0xf0]  ;;  %v8450_v12 = vld [vmem:[#allocation11 + $0x7ec] sm:$0xf0] }
 0x251   :  { %v8533_v4 = vld [vmem:[#allocation11 + $0xa8c] sm:$0xf]  ;;  %v6931_v29 = vor.u32 %v8469_v37, %v6928_v1  ;;  %4488 = vmatpush.bf16.msrb.mxu3 %v7731_v48  ;;  %v6071_v37 = vor.u32 %v8258_v42, %v6070_v23  ;;  %v6327_v1 = vor.u32 %v8322_v46, %v6326_v51  ;;  %v6038_v2 = vld [vmem:[#allocation11 + $0x190] sm:$0xf] }
 0x252   :  { %v7184_v20 = vld [vmem:[#allocation11 + $0xaa8] sm:$0xf0]  ;;  %v8250_v48 = vld [vmem:[#allocation11 + $0x1ac] sm:$0xf0] }
 0x253   :  { %v8597_v13 = vld [vmem:[#allocation11 + $0xc8c] sm:$0xf]  ;;  %v7187_v31 = vor.u32 %v8533_v4, %v7184_v20  ;;  %4450 = vmatpush.bf16.msrb.mxu0 %v6931_v29  ;;  %v6583_v4 = vor.u32 %v8386_v14, %v6582_v6  ;;  %v6839_v20 = vor.u32 %v8450_v12, %v6838_v15  ;;  %v6039_v28 = vor.u32 %v8250_v48, %v6038_v2  ;;  %v8242_v29 = vld [vmem:[#allocation11 + $0x16c] sm:$0xf0] }
 0x254   :  { %v7440_v24 = vld [vmem:[#allocation11 + $0xca8] sm:$0xf0]  ;;  %v5942_v23 = vld [vmem:[#allocation11 + $0xd0] sm:$0xf] }
 0x255   :  { %v8661_v58 = vld [vmem:[#allocation11 + $0xe8c] sm:$0xf]  ;;  %v7443_v47 = vor.u32 %v8597_v13, %v7440_v24  ;;  %4463 = vmatpush.bf16.msrb.mxu1 %v7187_v31  ;;  %v6294_v13 = vld [vmem:[#allocation11 + $0x390] sm:$0xf] }
 0x256   :  { %v7696_v27 = vld [vmem:[#allocation11 + $0xea8] sm:$0xf0]  ;;  %v8378_v24 = vld [vmem:[#allocation11 + $0x5ac] sm:$0xf0]  ;;  %v6295_v3 = vor.u32 %v8314_v21, %v6294_v13  ;;  %v4272_v21 = vpop.f32.mrf.mxu2 }
 0x257   :  { %v8461_v32 = vld [vmem:[#allocation11 + $0x84c] sm:$0xf]  ;;  %v7699_v35 = vor.u32 %v8661_v58, %v7696_v27  ;;  %4476 = vmatpush.bf16.msrb.mxu2 %v7443_v47  ;;  %v6806_v58 = vld [vmem:[#allocation11 + $0x790] sm:$0xf]  ;;  %v6551_v31 = vor.u32 %v8378_v24, %v6550_v26  ;;  %v4285_v26 = vpop.f32.mrf.mxu3 }
 0x258   :  { %v6896_v57 = vld [vmem:[#allocation11 + $0x868] sm:$0xf0]  ;;  %v8442_v27 = vld [vmem:[#allocation11 + $0x7ac] sm:$0xf0] }
 0x259   :  { %v8525_v39 = vld [vmem:[#allocation11 + $0xa4c] sm:$0xf]  ;;  %v6899_v56 = vor.u32 %v8461_v32, %v6896_v57  ;;  %4489 = vmatpush.bf16.msrb.mxu3 %v7699_v35  ;;  %v6807_v32 = vor.u32 %v8442_v27, %v6806_v58  ;;  %v6262_v57 = vld [vmem:[#allocation11 + $0x350] sm:$0xf] }
 0x25a   :  { %v7152_v40 = vld [vmem:[#allocation11 + $0xa68] sm:$0xf0]  ;;  %v8306_v47 = vld [vmem:[#allocation11 + $0x36c] sm:$0xf0] }
 0x25b   :  { %v8589_v41 = vld [vmem:[#allocation11 + $0xc4c] sm:$0xf]  ;;  %v7155_v19 = vor.u32 %v8525_v39, %v7152_v40  ;;  %4451 = vmatpush.bf16.msrb.mxu0 %v6899_v56  ;;  %v6518_v35 = vld [vmem:[#allocation11 + $0x550] sm:$0xf] }
 0x25c   :  { %v7408_v43 = vld [vmem:[#allocation11 + $0xc68] sm:$0xf0]  ;;  %v8370_v39 = vld [vmem:[#allocation11 + $0x56c] sm:$0xf0] }
 0x25d   :  { %v8653_v44 = vld [vmem:[#allocation11 + $0xe4c] sm:$0xf]  ;;  %v7411_v59 = vor.u32 %v8589_v41, %v7408_v43  ;;  %4464 = vmatpush.bf16.msrb.mxu1 %v7155_v19  ;;  %v6774_v40 = vld [vmem:[#allocation11 + $0x750] sm:$0xf]  ;;  %v6007_v43 = vor.u32 %v8242_v29, %v6006_v63  ;;  %v6519_v56 = vor.u32 %v8370_v39, %v6518_v35 }
 0x25e   :  { %v7664_v17 = vld [vmem:[#allocation11 + $0xe68] sm:$0xf0]  ;;  %v8434_v41 = vld [vmem:[#allocation11 + $0x76c] sm:$0xf0] }
 0x25f   :  { %v8453_v45 = vld [vmem:[#allocation11 + $0x80c] sm:$0xf]  ;;  %v7667_v61 = vor.u32 %v8653_v44, %v7664_v17  ;;  %4477 = vmatpush.bf16.msrb.mxu2 %v7411_v59  ;;  %v6263_v44 = vor.u32 %v8306_v47, %v6262_v57  ;;  %v5974_v17 = vld [vmem:[#allocation11 + $0x110] sm:$0xf]  ;;  %v6775_v19 = vor.u32 %v8434_v41, %v6774_v40 }
 0x260   :  { %v6864_v49 = vld [vmem:[#allocation11 + $0x828] sm:$0xf0]  ;;  %v8362_v59 = vld [vmem:[#allocation11 + $0x52c] sm:$0xf0] }
 0x261   :  { %v8517_v50 = vld [vmem:[#allocation11 + $0xa0c] sm:$0xf]  ;;  %v6867_v38 = vor.u32 %v8453_v45, %v6864_v49  ;;  %4490 = vmatpush.bf16.msrb.mxu3 %v7667_v61  ;;  %v8234_v45 = vld [vmem:[#allocation11 + $0x12c] sm:$0xf0] }
 0x262   :  { %v7120_v60 = vld [vmem:[#allocation11 + $0xa28] sm:$0xf0]  ;;  %v6230_v49 = vld [vmem:[#allocation11 + $0x310] sm:$0xf]  ;;  %v5975_v22 = vor.u32 %v8234_v45, %v5974_v17 }
 0x263   :  { %v8581_v62 = vld [vmem:[#allocation11 + $0xc0c] sm:$0xf]  ;;  %v7123_v36 = vor.u32 %v8517_v50, %v7120_v60  ;;  %4452 = vmatpush.bf16.msrb.mxu0 %v6867_v38  ;;  %v8298_v50 = vld [vmem:[#allocation11 + $0x32c] sm:$0xf0] }
 0x264   :  { %v7376_v0 = vld [vmem:[#allocation11 + $0xc28] sm:$0xf0]  ;;  %v6486_v60 = vld [vmem:[#allocation11 + $0x510] sm:$0xf] }
 0x265   :  { %v8645_v53 = vld [vmem:[#allocation11 + $0xe0c] sm:$0xf]  ;;  %v7379_v16 = vor.u32 %v8581_v62, %v7376_v0  ;;  %4465 = vmatpush.bf16.msrb.mxu1 %v7123_v36  ;;  %v6742_v61 = vld [vmem:[#allocation11 + $0x710] sm:$0xf]  ;;  %v4246_v0 = vpop.f32.mrf.mxu0  ;;  %v6487_v51 = vor.u32 %v8362_v59, %v6486_v60 }
 0x266   :  { %v7632_v5 = vld [vmem:[#allocation11 + $0xe28] sm:$0xf0]  ;;  %4453 = vmatmul.bf16.vlgmr.msrb.gmra.mxu0 %v9454_v7  ;;  %v8426_v62 = vld [vmem:[#allocation11 + $0x72c] sm:$0xf0]  ;;  %v4247_v30 = vadd.f32 %v4246_v0, %v9492_v34 }
 0x267   :  { %v7635_v55 = vor.u32 %v8645_v53, %v7632_v5  ;;  %4478 = vmatpush.bf16.msrb.mxu2 %v7379_v16  ;;  %4497 = vmatpush.bf16.msra.mxu0 %v6071_v37  ;;  %v4259_v53 = vpop.f32.mrf.mxu1  ;;  %v6231_v5 = vor.u32 %v8298_v50, %v6230_v49  ;;  %v8226_v42 = vld [vmem:[#allocation11 + $0xec] sm:$0xf0]  ;;  %v6743_v46 = vor.u32 %v8426_v62, %v6742_v61 }
 0x268   :  { %4466 = vmatmul.bf16.vlgmr.msrb.gmra.mxu1 %v9456_v8  ;;  %v6198_v6 = vld [vmem:[#allocation11 + $0x2d0] sm:$0xf]  ;;  %v4260_v14 = vadd.f32 %v4259_v53, %v4247_v30 }
 0x269   :  { %4491 = vmatpush.bf16.msrb.mxu3 %v7635_v55  ;;  %4510 = vmatpush.bf16.msra.mxu1 %v6327_v1  ;;  %v8290_v38 = vld [vmem:[#allocation11 + $0x2ec] sm:$0xf0]  ;;  %v5943_v55 = vor.u32 %v8226_v42, %v5942_v23 }
 0x26a   :  { %4479 = vmatmul.bf16.vlgmr.msrb.gmra.mxu2 %v9460_v11  ;;  %v6454_v36 = vld [vmem:[#allocation11 + $0x4d0] sm:$0xf]  ;;  %v6199_v37 = vor.u32 %v8290_v38, %v6198_v6 }
 0x26b   :  { %4523 = vmatpush.bf16.msra.mxu2 %v6583_v4  ;;  %4498 = vmatpush.bf16.msra.mxu0 %v6039_v28  ;;  %v8354_v15 = vld [vmem:[#allocation11 + $0x4ec] sm:$0xf0]  ;;  %v4273_v28 = vadd.f32 %v4272_v21, %v4260_v14 }
 0x26c   :  { %4492 = vmatmul.bf16.vlgmr.msrb.gmra.mxu3 %v9458_v10  ;;  %v6710_v12 = vld [vmem:[#allocation11 + $0x6d0] sm:$0xf]  ;;  %v6455_v2 = vor.u32 %v8354_v15, %v6454_v36 }
 0x26d   :  { %4536 = vmatpush.bf16.msra.mxu3 %v6839_v20  ;;  %4511 = vmatpush.bf16.msra.mxu1 %v6295_v3  ;;  %v8418_v16 = vld [vmem:[#allocation11 + $0x6ec] sm:$0xf0]  ;;  %v4248_v3 = vpop.f32.mrf.mxu0  ;;  %v9499_v47 = vadd.f32 %v4285_v26, %v4273_v28 }
 0x26e   :  { %v5910_v34 = vld [vmem:[#allocation11 + $0x90] sm:$0xf]  ;;  %v6711_v48 = vor.u32 %v8418_v16, %v6710_v12 }
 0x26f   :  { %4524 = vmatpush.bf16.msra.mxu2 %v6551_v31  ;;  %4499 = vmatpush.bf16.msra.mxu0 %v6007_v43  ;;  %v8218_v1 = vld [vmem:[#allocation11 + $0xac] sm:$0xf0]  ;;  %v4261_v63 = vpop.f32.mrf.mxu1 }
 0x270   :  { %v6166_v4 = vld [vmem:[#allocation11 + $0x290] sm:$0xf]  ;;  %v5911_v29 = vor.u32 %v8218_v1, %v5910_v34 }
 0x271   :  { %4537 = vmatpush.bf16.msra.mxu3 %v6807_v32  ;;  %4512 = vmatpush.bf16.msra.mxu1 %v6263_v44  ;;  %v8282_v20 = vld [vmem:[#allocation11 + $0x2ac] sm:$0xf0] }
 0x272   :  { %v6422_v13 = vld [vmem:[#allocation11 + $0x490] sm:$0xf]  ;;  %v6167_v31 = vor.u32 %v8282_v20, %v6166_v4 }
 0x273   :  { %4525 = vmatpush.bf16.msra.mxu2 %v6519_v56  ;;  %4500 = vmatpush.bf16.msra.mxu0 %v5975_v22  ;;  %v8346_v24 = vld [vmem:[#allocation11 + $0x4ac] sm:$0xf0]  ;;  %v4274_v22 = vpop.f32.mrf.mxu2 }
 0x274   :  { %v6678_v58 = vld [vmem:[#allocation11 + $0x690] sm:$0xf]  ;;  %v6423_v35 = vor.u32 %v8346_v24, %v6422_v13 }
 0x275   :  { %4538 = vmatpush.bf16.msra.mxu3 %v6775_v19  ;;  %4513 = vmatpush.bf16.msra.mxu1 %v6231_v5  ;;  %v8410_v27 = vld [vmem:[#allocation11 + $0x6ac] sm:$0xf0]  ;;  %v4287_v5 = vpop.f32.mrf.mxu3 }
 0x276   :  { %v5878_v32 = vld [vmem:[#allocation11 + $0x50] sm:$0xf]  ;;  %v6679_v39 = vor.u32 %v8410_v27, %v6678_v58 }
 0x277   :  { %4526 = vmatpush.bf16.msra.mxu2 %v6487_v51  ;;  %4501 = vmatpush.bf16.msra.mxu0 %v5943_v55  ;;  %v8210_v57 = vld [vmem:[#allocation11 + $0x6c] sm:$0xf0]  ;;  %v4311_v22 = vpop.f32.mrf.mxu1 }
 0x278   :  { %v6134_v40 = vld [vmem:[#allocation11 + $0x250] sm:$0xf]  ;;  %v5879_v19 = vor.u32 %v8210_v57, %v5878_v32 }
 0x279   :  { %4539 = vmatpush.bf16.msra.mxu3 %v6743_v46  ;;  %4514 = vmatpush.bf16.msra.mxu1 %v6199_v37  ;;  %v8274_v41 = vld [vmem:[#allocation11 + $0x26c] sm:$0xf0] }
 0x27a   :  { %v6390_v43 = vld [vmem:[#allocation11 + $0x450] sm:$0xf]  ;;  %v6135_v49 = vor.u32 %v8274_v41, %v6134_v40 }
 0x27b   :  { %4527 = vmatpush.bf16.msra.mxu2 %v6455_v2  ;;  %v8338_v44 = vld [vmem:[#allocation11 + $0x46c] sm:$0xf0]  ;;  %4502 = vmatpush.bf16.msra.mxu0 %v5911_v29 }
 0x27c   :  { %v6646_v17 = vld [vmem:[#allocation11 + $0x650] sm:$0xf]  ;;  %v6391_v61 = vor.u32 %v8338_v44, %v6390_v43 }
 0x27d   :  { %4540 = vmatpush.bf16.msra.mxu3 %v6711_v48  ;;  %v8402_v45 = vld [vmem:[#allocation11 + $0x66c] sm:$0xf0]  ;;  %4515 = vmatpush.bf16.msra.mxu1 %v6167_v31 }
 0x27e   :  { %v5846_v56 = vld [vmem:[#allocation11 + $0x10] sm:$0xf]  ;;  %v6647_v62 = vor.u32 %v8402_v45, %v6646_v17  ;;  %v1507_v45 = vperm.slane %v9478_v9, 2 }
 0x27f   :  { %v8202_v50 = vld [vmem:[#allocation11 + $0x2c] sm:$0xf0]  ;;  %4528 = vmatpush.bf16.msra.mxu2 %v6423_v35  ;;  %4503 = vmatpush.bf16.msra.mxu0 %v5879_v19 }
 0x280   :  { %v6102_v60 = vld [vmem:[#allocation11 + $0x210] sm:$0xf]  ;;  %v5847_v36 = vor.u32 %v8202_v50, %v5846_v56 }
 0x281   :  { %v8266_v59 = vld [vmem:[#allocation11 + $0x22c] sm:$0xf0]  ;;  %4541 = vmatpush.bf16.msra.mxu3 %v6679_v39  ;;  %4516 = vmatpush.bf16.msra.mxu1 %v6135_v49 }
 0x282   :  { %v6358_v0 = vld [vmem:[#allocation11 + $0x410] sm:$0xf]  ;;  %v6103_v14 = vor.u32 %v8266_v59, %v6102_v60 }
 0x283   :  { %v8330_v53 = vld [vmem:[#allocation11 + $0x42c] sm:$0xf0]  ;;  %4529 = vmatpush.bf16.msra.mxu2 %v6391_v61  ;;  %4504 = vmatpush.bf16.msra.mxu0 %v5847_v36 }
 0x284   :  { %v6614_v30 = vld [vmem:[#allocation11 + $0x610] sm:$0xf]  ;;  %v6359_v55 = vor.u32 %v8330_v53, %v6358_v0 }
 0x285   :  { %v8394_v23 = vld [vmem:[#allocation11 + $0x62c] sm:$0xf0]  ;;  %4542 = vmatpush.bf16.msra.mxu3 %v6647_v62  ;;  %4517 = vmatpush.bf16.msra.mxu1 %v6103_v14 }
 0x286   :  { %v7094_v42 = vld [vmem:[#allocation11 + $0x9d0] sm:$0xf]  ;;  %v6615_v37 = vor.u32 %v8394_v23, %v6614_v30  ;;  %4505 = vmatmul.bf16.vlgmr.msra.gmra.mxu0 %v9430_v52  ;;  %v4298_v30 = vpop.f32.mrf.mxu0 }
 0x287   :  { %v8514_v51 = vld [vmem:[#allocation11 + $0x9ec] sm:$0xf0]  ;;  %4530 = vmatpush.bf16.msra.mxu2 %v6359_v55  ;;  %v4299_v5 = vadd.f32 %v4298_v30, %v1507_v45 }
 0x288   :  { %v7350_v46 = vld [vmem:[#allocation11 + $0xbd0] sm:$0xf]  ;;  %v7095_v34 = vor.u32 %v8514_v51, %v7094_v42  ;;  %4518 = vmatmul.bf16.vlgmr.msra.gmra.mxu1 %v9432_v54 }
 0x289   :  { %v8578_v6 = vld [vmem:[#allocation11 + $0xbec] sm:$0xf0]  ;;  %4543 = vmatpush.bf16.msra.mxu3 %v6615_v37 }
 0x28a   :  { %v7606_v38 = vld [vmem:[#allocation11 + $0xdd0] sm:$0xf]  ;;  %v7351_v1 = vor.u32 %v8578_v6, %v7350_v46  ;;  %4549 = vmatpush.bf16.msrb.mxu0 %v7095_v34  ;;  %4531 = vmatmul.bf16.vlgmr.msra.gmra.mxu2 %v9434_v18 }
 0x28b   :  { %v8642_v15 = vld [vmem:[#allocation11 + $0xdec] sm:$0xf0] }
 0x28c   :  { %v7862_v12 = vld [vmem:[#allocation11 + $0xfd0] sm:$0xf]  ;;  %v7607_v4 = vor.u32 %v8642_v15, %v7606_v38  ;;  %4562 = vmatpush.bf16.msrb.mxu1 %v7351_v1  ;;  %4544 = vmatmul.bf16.vlgmr.msra.gmra.mxu3 %v9436_v33  ;;  %v4312_v15 = vadd.f32 %v4311_v22, %v4299_v5 }
 0x28d   :  { %v8706_v16 = vld [vmem:[#allocation11 + $0xfec] sm:$0xf0] }
 0x28e   :  { %v7062_v2 = vld [vmem:[#allocation11 + $0x990] sm:$0xf]  ;;  %v7863_v20 = vor.u32 %v8706_v16, %v7862_v12  ;;  %4575 = vmatpush.bf16.msrb.mxu2 %v7607_v4 }
 0x28f   :  { %v8506_v48 = vld [vmem:[#allocation11 + $0x9ac] sm:$0xf0] }
 0x290   :  { %v7318_v13 = vld [vmem:[#allocation11 + $0xb90] sm:$0xf]  ;;  %v7063_v28 = vor.u32 %v8506_v48, %v7062_v2  ;;  %4588 = vmatpush.bf16.msrb.mxu3 %v7863_v20 }
 0x291   :  { %v8570_v21 = vld [vmem:[#allocation11 + $0xbac] sm:$0xf0] }
 0x292   :  { %v7574_v26 = vld [vmem:[#allocation11 + $0xd90] sm:$0xf]  ;;  %v7319_v3 = vor.u32 %v8570_v21, %v7318_v13  ;;  %4550 = vmatpush.bf16.msrb.mxu0 %v7063_v28 }
 0x293   :  { %v8634_v24 = vld [vmem:[#allocation11 + $0xdac] sm:$0xf0] }
 0x294   :  { %v7830_v58 = vld [vmem:[#allocation11 + $0xf90] sm:$0xf]  ;;  %v7575_v31 = vor.u32 %v8634_v24, %v7574_v26  ;;  %4563 = vmatpush.bf16.msrb.mxu1 %v7319_v3  ;;  %v4324_v26 = vpop.f32.mrf.mxu2  ;;  %v4337_v24 = vpop.f32.mrf.mxu3 }
 0x295   :  { %v8698_v27 = vld [vmem:[#allocation11 + $0xfac] sm:$0xf0]  ;;  %v4325_v3 = vadd.f32 %v4324_v26, %v4312_v15  ;;  %v6296_v26 = vld [vmem:[#allocation11 + $0x3b0] sm:$0xf0] }
 0x296   :  { %v7030_v63 = vld [vmem:[#allocation11 + $0x950] sm:$0xf]  ;;  %v7831_v32 = vor.u32 %v8698_v27, %v7830_v58  ;;  %4576 = vmatpush.bf16.msrb.mxu2 %v7575_v31 }
 0x297   :  { %v8498_v29 = vld [vmem:[#allocation11 + $0x96c] sm:$0xf0] }
 0x298   :  { %v7286_v57 = vld [vmem:[#allocation11 + $0xb50] sm:$0xf]  ;;  %v7031_v44 = vor.u32 %v8498_v29, %v7030_v63  ;;  %4589 = vmatpush.bf16.msrb.mxu3 %v7831_v32  ;;  %v4300_v63 = vpop.f32.mrf.mxu0  ;;  %v4313_v29 = vpop.f32.mrf.mxu1 }
 0x299   :  { %v8562_v35 = vld [vmem:[#allocation11 + $0xb6c] sm:$0xf0]  ;;  %v8238_v29 = vld [vmem:[#allocation11 + $0x154] sm:$0xf] }
 0x29a   :  { %v7542_v39 = vld [vmem:[#allocation11 + $0xd50] sm:$0xf]  ;;  %v7287_v17 = vor.u32 %v8562_v35, %v7286_v57  ;;  %4551 = vmatpush.bf16.msrb.mxu0 %v7031_v44 }
 0x29b   :  { %v8626_v40 = vld [vmem:[#allocation11 + $0xd6c] sm:$0xf0] }
 0x29c   :  { %v7798_v41 = vld [vmem:[#allocation11 + $0xf50] sm:$0xf]  ;;  %v7543_v49 = vor.u32 %v8626_v40, %v7542_v39  ;;  %4564 = vmatpush.bf16.msrb.mxu1 %v7287_v17  ;;  %v9506_v39 = vadd.f32 %v4337_v24, %v4325_v3  ;;  %v8374_v24 = vld [vmem:[#allocation11 + $0x594] sm:$0xf] }
 0x29d   :  { %v8690_v43 = vld [vmem:[#allocation11 + $0xf6c] sm:$0xf0] }
 0x29e   :  { %v6998_v56 = vld [vmem:[#allocation11 + $0x910] sm:$0xf]  ;;  %v7799_v50 = vor.u32 %v8690_v43, %v7798_v41  ;;  %4577 = vmatpush.bf16.msrb.mxu2 %v7543_v49 }
 0x29f   :  { %v8490_v19 = vld [vmem:[#allocation11 + $0x92c] sm:$0xf0] }
 0x2a0   :  { %v7254_v60 = vld [vmem:[#allocation11 + $0xb10] sm:$0xf]  ;;  %v6999_v23 = vor.u32 %v8490_v19, %v6998_v56  ;;  %4590 = vmatpush.bf16.msrb.mxu3 %v7799_v50 }
 0x2a1   :  { %v8554_v59 = vld [vmem:[#allocation11 + $0xb2c] sm:$0xf0] }
 0x2a2   :  { %v7510_v61 = vld [vmem:[#allocation11 + $0xd10] sm:$0xf]  ;;  %v7255_v42 = vor.u32 %v8554_v59, %v7254_v60  ;;  %4552 = vmatpush.bf16.msrb.mxu0 %v6999_v23  ;;  %v4326_v23 = vpop.f32.mrf.mxu2 }
 0x2a3   :  { %v8618_v62 = vld [vmem:[#allocation11 + $0xd2c] sm:$0xf0] }
 0x2a4   :  { %v7766_v0 = vld [vmem:[#allocation11 + $0xf10] sm:$0xf]  ;;  %v7511_v46 = vor.u32 %v8618_v62, %v7510_v61  ;;  %4565 = vmatpush.bf16.msrb.mxu1 %v7255_v42  ;;  %v4339_v42 = vpop.f32.mrf.mxu3 }
 0x2a5   :  { %v8682_v53 = vld [vmem:[#allocation11 + $0xf2c] sm:$0xf0] }
 0x2a6   :  { %v6966_v9 = vld [vmem:[#allocation11 + $0x8d0] sm:$0xf]  ;;  %v7767_v6 = vor.u32 %v8682_v53, %v7766_v0  ;;  %4578 = vmatpush.bf16.msrb.mxu2 %v7511_v46  ;;  %v6072_v46 = vld [vmem:[#allocation11 + $0x1f0] sm:$0xf0] }
 0x2a7   :  { %v8482_v51 = vld [vmem:[#allocation11 + $0x8ec] sm:$0xf0] }
 0x2a8   :  { %v7222_v38 = vld [vmem:[#allocation11 + $0xad0] sm:$0xf]  ;;  %v6967_v37 = vor.u32 %v8482_v51, %v6966_v9  ;;  %4591 = vmatpush.bf16.msrb.mxu3 %v7767_v6  ;;  %v8254_v51 = vld [vmem:[#allocation11 + $0x1d4] sm:$0xf] }
 0x2a9   :  { %v8546_v36 = vld [vmem:[#allocation11 + $0xaec] sm:$0xf0]  ;;  %v8318_v6 = vld [vmem:[#allocation11 + $0x3d4] sm:$0xf] }
 0x2aa   :  { %v7478_v14 = vld [vmem:[#allocation11 + $0xcd0] sm:$0xf]  ;;  %v7223_v34 = vor.u32 %v8546_v36, %v7222_v38  ;;  %4553 = vmatpush.bf16.msrb.mxu0 %v6967_v37  ;;  %v6328_v38 = vld [vmem:[#allocation11 + $0x3f0] sm:$0xf0] }
 0x2ab   :  { %v8610_v12 = vld [vmem:[#allocation11 + $0xcec] sm:$0xf0]  ;;  %v8382_v36 = vld [vmem:[#allocation11 + $0x5d4] sm:$0xf] }
 0x2ac   :  { %v7734_v16 = vld [vmem:[#allocation11 + $0xed0] sm:$0xf]  ;;  %v7479_v48 = vor.u32 %v8610_v12, %v7478_v14  ;;  %4566 = vmatpush.bf16.msrb.mxu1 %v7223_v34  ;;  %v6584_v12 = vld [vmem:[#allocation11 + $0x5f0] sm:$0xf0] }
 0x2ad   :  { %v8674_v55 = vld [vmem:[#allocation11 + $0xeec] sm:$0xf0] }
 0x2ae   :  { %v6934_v1 = vld [vmem:[#allocation11 + $0x890] sm:$0xf]  ;;  %v7735_v4 = vor.u32 %v8674_v55, %v7734_v16  ;;  %4579 = vmatpush.bf16.msrb.mxu2 %v7479_v48  ;;  %v8446_v16 = vld [vmem:[#allocation11 + $0x7d4] sm:$0xf] }
 0x2af   :  { %v8474_v2 = vld [vmem:[#allocation11 + $0x8ac] sm:$0xf0]  ;;  %v6840_v55 = vld [vmem:[#allocation11 + $0x7f0] sm:$0xf0] }
 0x2b0   :  { %v7190_v20 = vld [vmem:[#allocation11 + $0xa90] sm:$0xf]  ;;  %v6935_v31 = vor.u32 %v8474_v2, %v6934_v1  ;;  %4592 = vmatpush.bf16.msrb.mxu3 %v7735_v4  ;;  %v6075_v1 = vor.u32 %v8254_v51, %v6072_v46  ;;  %v6331_v2 = vor.u32 %v8318_v6, %v6328_v38  ;;  %v8246_v48 = vld [vmem:[#allocation11 + $0x194] sm:$0xf] }
 0x2b1   :  { %v8538_v13 = vld [vmem:[#allocation11 + $0xaac] sm:$0xf0]  ;;  %v6040_v4 = vld [vmem:[#allocation11 + $0x1b0] sm:$0xf0] }
 0x2b2   :  { %v7446_v21 = vld [vmem:[#allocation11 + $0xc90] sm:$0xf]  ;;  %v7191_v32 = vor.u32 %v8538_v13, %v7190_v20  ;;  %4554 = vmatpush.bf16.msrb.mxu0 %v6935_v31  ;;  %v6587_v20 = vor.u32 %v8382_v36, %v6584_v12  ;;  %v6843_v13 = vor.u32 %v8446_v16, %v6840_v55  ;;  %v6043_v3 = vor.u32 %v8246_v48, %v6040_v4  ;;  %v6008_v31 = vld [vmem:[#allocation11 + $0x170] sm:$0xf0] }
 0x2b3   :  { %v8602_v58 = vld [vmem:[#allocation11 + $0xcac] sm:$0xf0]  ;;  %v8222_v51 = vld [vmem:[#allocation11 + $0xd4] sm:$0xf] }
 0x2b4   :  { %v7702_v27 = vld [vmem:[#allocation11 + $0xe90] sm:$0xf]  ;;  %v7447_v40 = vor.u32 %v8602_v58, %v7446_v21  ;;  %4567 = vmatpush.bf16.msrb.mxu1 %v7191_v32  ;;  %v8310_v21 = vld [vmem:[#allocation11 + $0x394] sm:$0xf] }
 0x2b5   :  { %v8666_v28 = vld [vmem:[#allocation11 + $0xeac] sm:$0xf0]  ;;  %v6552_v58 = vld [vmem:[#allocation11 + $0x5b0] sm:$0xf0]  ;;  %v6299_v63 = vor.u32 %v8310_v21, %v6296_v26  ;;  %v4376_v26 = vpop.f32.mrf.mxu2 }
 0x2b6   :  { %v6902_v57 = vld [vmem:[#allocation11 + $0x850] sm:$0xf]  ;;  %v7703_v41 = vor.u32 %v8666_v28, %v7702_v27  ;;  %4580 = vmatpush.bf16.msrb.mxu2 %v7447_v40  ;;  %v8438_v27 = vld [vmem:[#allocation11 + $0x794] sm:$0xf]  ;;  %v6555_v32 = vor.u32 %v8374_v24, %v6552_v58  ;;  %v4389_v24 = vpop.f32.mrf.mxu3 }
 0x2b7   :  { %v8466_v35 = vld [vmem:[#allocation11 + $0x86c] sm:$0xf0]  ;;  %v6808_v28 = vld [vmem:[#allocation11 + $0x7b0] sm:$0xf0] }
 0x2b8   :  { %v7158_v43 = vld [vmem:[#allocation11 + $0xa50] sm:$0xf]  ;;  %v6903_v50 = vor.u32 %v8466_v35, %v6902_v57  ;;  %4593 = vmatpush.bf16.msrb.mxu3 %v7703_v41  ;;  %v6811_v57 = vor.u32 %v8438_v27, %v6808_v28  ;;  %v8302_v35 = vld [vmem:[#allocation11 + $0x354] sm:$0xf] }
 0x2b9   :  { %v8530_v44 = vld [vmem:[#allocation11 + $0xa6c] sm:$0xf0]  ;;  %v6264_v40 = vld [vmem:[#allocation11 + $0x370] sm:$0xf0] }
 0x2ba   :  { %v7414_v17 = vld [vmem:[#allocation11 + $0xc50] sm:$0xf]  ;;  %v7159_v60 = vor.u32 %v8530_v44, %v7158_v43  ;;  %4555 = vmatpush.bf16.msrb.mxu0 %v6903_v50  ;;  %v8366_v41 = vld [vmem:[#allocation11 + $0x554] sm:$0xf] }
 0x2bb   :  { %v8594_v45 = vld [vmem:[#allocation11 + $0xc6c] sm:$0xf0]  ;;  %v6520_v43 = vld [vmem:[#allocation11 + $0x570] sm:$0xf0] }
 0x2bc   :  { %v7670_v56 = vld [vmem:[#allocation11 + $0xe50] sm:$0xf]  ;;  %v7415_v0 = vor.u32 %v8594_v45, %v7414_v17  ;;  %4568 = vmatpush.bf16.msrb.mxu1 %v7159_v60  ;;  %v8430_v44 = vld [vmem:[#allocation11 + $0x754] sm:$0xf]  ;;  %v6011_v45 = vor.u32 %v8238_v29, %v6008_v31  ;;  %v6523_v50 = vor.u32 %v8366_v41, %v6520_v43 }
 0x2bd   :  { %v8658_v19 = vld [vmem:[#allocation11 + $0xe6c] sm:$0xf0]  ;;  %v6776_v17 = vld [vmem:[#allocation11 + $0x770] sm:$0xf0] }
 0x2be   :  { %v6870_v49 = vld [vmem:[#allocation11 + $0x810] sm:$0xf]  ;;  %v7671_v53 = vor.u32 %v8658_v19, %v7670_v56  ;;  %4581 = vmatpush.bf16.msrb.mxu2 %v7415_v0  ;;  %v6267_v56 = vor.u32 %v8302_v35, %v6264_v40  ;;  %v8230_v19 = vld [vmem:[#allocation11 + $0x114] sm:$0xf]  ;;  %v6779_v60 = vor.u32 %v8430_v44, %v6776_v17 }
 0x2bf   :  { %v8458_v59 = vld [vmem:[#allocation11 + $0x82c] sm:$0xf0]  ;;  %v6488_v0 = vld [vmem:[#allocation11 + $0x530] sm:$0xf0] }
 0x2c0   :  { %v7126_v61 = vld [vmem:[#allocation11 + $0xa10] sm:$0xf]  ;;  %v6871_v14 = vor.u32 %v8458_v59, %v6870_v49  ;;  %4594 = vmatpush.bf16.msrb.mxu3 %v7671_v53  ;;  %v5976_v49 = vld [vmem:[#allocation11 + $0x130] sm:$0xf0] }
 0x2c1   :  { %v8522_v62 = vld [vmem:[#allocation11 + $0xa2c] sm:$0xf0]  ;;  %v8294_v59 = vld [vmem:[#allocation11 + $0x314] sm:$0xf]  ;;  %v5979_v42 = vor.u32 %v8230_v19, %v5976_v49 }
 0x2c2   :  { %v7382_v30 = vld [vmem:[#allocation11 + $0xc10] sm:$0xf]  ;;  %v7127_v15 = vor.u32 %v8522_v62, %v7126_v61  ;;  %4556 = vmatpush.bf16.msrb.mxu0 %v6871_v14  ;;  %v6232_v61 = vld [vmem:[#allocation11 + $0x330] sm:$0xf0] }
 0x2c3   :  { %v8586_v22 = vld [vmem:[#allocation11 + $0xc2c] sm:$0xf0]  ;;  %v8358_v62 = vld [vmem:[#allocation11 + $0x514] sm:$0xf] }
 0x2c4   :  { %v7638_v5 = vld [vmem:[#allocation11 + $0xe10] sm:$0xf]  ;;  %v7383_v37 = vor.u32 %v8586_v22, %v7382_v30  ;;  %4569 = vmatpush.bf16.msrb.mxu1 %v7127_v15  ;;  %v8422_v53 = vld [vmem:[#allocation11 + $0x714] sm:$0xf]  ;;  %v4350_v22 = vpop.f32.mrf.mxu0  ;;  %v6491_v6 = vor.u32 %v8358_v62, %v6488_v0 }
 0x2c5   :  { %v8650_v9 = vld [vmem:[#allocation11 + $0xe2c] sm:$0xf0]  ;;  %4557 = vmatmul.bf16.vlgmr.msrb.gmra.mxu0 %v9454_v7  ;;  %v6744_v30 = vld [vmem:[#allocation11 + $0x730] sm:$0xf0]  ;;  %v4351_v23 = vadd.f32 %v4350_v22, %v9506_v39 }
 0x2c6   :  { %v7639_v34 = vor.u32 %v8650_v9, %v7638_v5  ;;  %4582 = vmatpush.bf16.msrb.mxu2 %v7383_v37  ;;  %4601 = vmatpush.bf16.msra.mxu0 %v6075_v1  ;;  %v4363_v5 = vpop.f32.mrf.mxu1  ;;  %v6235_v9 = vor.u32 %v8294_v59, %v6232_v61  ;;  %v5944_v46 = vld [vmem:[#allocation11 + $0xf0] sm:$0xf0]  ;;  %v6747_v38 = vor.u32 %v8422_v53, %v6744_v30 }
 0x2c7   :  { %4570 = vmatmul.bf16.vlgmr.msrb.gmra.mxu1 %v9456_v8  ;;  %v8286_v36 = vld [vmem:[#allocation11 + $0x2d4] sm:$0xf]  ;;  %v4364_v12 = vadd.f32 %v4363_v5, %v4351_v23 }
 0x2c8   :  { %4595 = vmatpush.bf16.msrb.mxu3 %v7639_v34  ;;  %4614 = vmatpush.bf16.msra.mxu1 %v6331_v2  ;;  %v6200_v14 = vld [vmem:[#allocation11 + $0x2f0] sm:$0xf0]  ;;  %v5947_v34 = vor.u32 %v8222_v51, %v5944_v46 }
 0x2c9   :  { %4583 = vmatmul.bf16.vlgmr.msrb.gmra.mxu2 %v9460_v11  ;;  %v8350_v15 = vld [vmem:[#allocation11 + $0x4d4] sm:$0xf]  ;;  %v6203_v1 = vor.u32 %v8286_v36, %v6200_v14 }
 0x2ca   :  { %4627 = vmatpush.bf16.msra.mxu2 %v6587_v20  ;;  %4602 = vmatpush.bf16.msra.mxu0 %v6043_v3  ;;  %v6456_v16 = vld [vmem:[#allocation11 + $0x4f0] sm:$0xf0]  ;;  %v4377_v3 = vadd.f32 %v4376_v26, %v4364_v12 }
 0x2cb   :  { %4596 = vmatmul.bf16.vlgmr.msrb.gmra.mxu3 %v9458_v10  ;;  %v8414_v55 = vld [vmem:[#allocation11 + $0x6d4] sm:$0xf]  ;;  %v6459_v48 = vor.u32 %v8350_v15, %v6456_v16 }
 0x2cc   :  { %4640 = vmatpush.bf16.msra.mxu3 %v6843_v13  ;;  %4615 = vmatpush.bf16.msra.mxu1 %v6299_v63  ;;  %v6712_v37 = vld [vmem:[#allocation11 + $0x6f0] sm:$0xf0]  ;;  %v4352_v63 = vpop.f32.mrf.mxu0  ;;  %v9513_v40 = vadd.f32 %v4389_v24, %v4377_v3 }
 0x2cd   :  { %v8214_v39 = vld [vmem:[#allocation11 + $0x94] sm:$0xf]  ;;  %v6715_v4 = vor.u32 %v8414_v55, %v6712_v37 }
 0x2ce   :  { %4628 = vmatpush.bf16.msra.mxu2 %v6555_v32  ;;  %4603 = vmatpush.bf16.msra.mxu0 %v6011_v45  ;;  %v5912_v2 = vld [vmem:[#allocation11 + $0xb0] sm:$0xf0]  ;;  %v4365_v29 = vpop.f32.mrf.mxu1 }
 0x2cf   :  { %v8278_v20 = vld [vmem:[#allocation11 + $0x294] sm:$0xf]  ;;  %v5915_v31 = vor.u32 %v8214_v39, %v5912_v2 }
 0x2d0   :  { %4641 = vmatpush.bf16.msra.mxu3 %v6811_v57  ;;  %4616 = vmatpush.bf16.msra.mxu1 %v6267_v56  ;;  %v6168_v13 = vld [vmem:[#allocation11 + $0x2b0] sm:$0xf0] }
 0x2d1   :  { %v8342_v21 = vld [vmem:[#allocation11 + $0x494] sm:$0xf]  ;;  %v6171_v32 = vor.u32 %v8278_v20, %v6168_v13 }
 0x2d2   :  { %4629 = vmatpush.bf16.msra.mxu2 %v6523_v50  ;;  %4604 = vmatpush.bf16.msra.mxu0 %v5979_v42  ;;  %v6424_v58 = vld [vmem:[#allocation11 + $0x4b0] sm:$0xf0]  ;;  %v4378_v42 = vpop.f32.mrf.mxu2 }
 0x2d3   :  { %v8406_v27 = vld [vmem:[#allocation11 + $0x694] sm:$0xf]  ;;  %v6427_v41 = vor.u32 %v8342_v21, %v6424_v58 }
 0x2d4   :  { %4642 = vmatpush.bf16.msra.mxu3 %v6779_v60  ;;  %4617 = vmatpush.bf16.msra.mxu1 %v6235_v9  ;;  %v6680_v28 = vld [vmem:[#allocation11 + $0x6b0] sm:$0xf0]  ;;  %v4391_v9 = vpop.f32.mrf.mxu3  ;;  %v4402_v42 = vpop.f32.mrf.mxu0 }
 0x2d5   :  { %v8206_v57 = vld [vmem:[#allocation11 + $0x54] sm:$0xf]  ;;  %v6683_v43 = vor.u32 %v8406_v27, %v6680_v28 }
 0x2d6   :  { %4630 = vmatpush.bf16.msra.mxu2 %v6491_v6  ;;  %4605 = vmatpush.bf16.msra.mxu0 %v5947_v34  ;;  %v5880_v35 = vld [vmem:[#allocation11 + $0x70] sm:$0xf0]  ;;  %v4415_v9 = vpop.f32.mrf.mxu1 }
 0x2d7   :  { %v8270_v44 = vld [vmem:[#allocation11 + $0x254] sm:$0xf]  ;;  %v5883_v60 = vor.u32 %v8206_v57, %v5880_v35 }
 0x2d8   :  { %4643 = vmatpush.bf16.msra.mxu3 %v6747_v38  ;;  %4618 = vmatpush.bf16.msra.mxu1 %v6203_v1  ;;  %v6136_v17 = vld [vmem:[#allocation11 + $0x270] sm:$0xf0] }
 0x2d9   :  { %v8334_v45 = vld [vmem:[#allocation11 + $0x454] sm:$0xf]  ;;  %v6139_v59 = vor.u32 %v8270_v44, %v6136_v17 }
 0x2da   :  { %4631 = vmatpush.bf16.msra.mxu2 %v6459_v48  ;;  %v6392_v56 = vld [vmem:[#allocation11 + $0x470] sm:$0xf0]  ;;  %4606 = vmatpush.bf16.msra.mxu0 %v5915_v31 }
 0x2db   :  { %v8398_v19 = vld [vmem:[#allocation11 + $0x654] sm:$0xf]  ;;  %v6395_v53 = vor.u32 %v8334_v45, %v6392_v56 }
 0x2dc   :  { %4644 = vmatpush.bf16.msra.mxu3 %v6715_v4  ;;  %v6648_v49 = vld [vmem:[#allocation11 + $0x670] sm:$0xf0]  ;;  %4619 = vmatpush.bf16.msra.mxu1 %v6171_v32 }
 0x2dd   :  { %v8198_v50 = vld [vmem:[#allocation11 + $0x14] sm:$0xf]  ;;  %v6651_v30 = vor.u32 %v8398_v19, %v6648_v49  ;;  %v9519_v49 = vld [vmem:[#allocation13] sm:$0xff] }
 0x2de   :  { %v5848_v61 = vld [vmem:[#allocation11 + $0x30] sm:$0xf0]  ;;  %4632 = vmatpush.bf16.msra.mxu2 %v6427_v41  ;;  %4607 = vmatpush.bf16.msra.mxu0 %v5883_v60 }
 0x2df   :  { %v8262_v62 = vld [vmem:[#allocation11 + $0x214] sm:$0xf]  ;;  %v5851_v15 = vor.u32 %v8198_v50, %v5848_v61  ;;  %v1508_v50 = vperm.slane %v9519_v49, 3 }
 0x2e0   :  { %v6104_v0 = vld [vmem:[#allocation11 + $0x230] sm:$0xf0]  ;;  %4645 = vmatpush.bf16.msra.mxu3 %v6683_v43  ;;  %4620 = vmatpush.bf16.msra.mxu1 %v6139_v59 }
 0x2e1   :  { %v8326_v22 = vld [vmem:[#allocation11 + $0x414] sm:$0xf]  ;;  %v6107_v12 = vor.u32 %v8262_v62, %v6104_v0 }
 0x2e2   :  { %v6360_v5 = vld [vmem:[#allocation11 + $0x430] sm:$0xf0]  ;;  %4633 = vmatpush.bf16.msra.mxu2 %v6395_v53  ;;  %4608 = vmatpush.bf16.msra.mxu0 %v5851_v15 }
 0x2e3   :  { %v8390_v23 = vld [vmem:[#allocation11 + $0x614] sm:$0xf]  ;;  %v6363_v34 = vor.u32 %v8326_v22, %v6360_v5 }
 0x2e4   :  { %v6616_v51 = vld [vmem:[#allocation11 + $0x630] sm:$0xf0]  ;;  %4646 = vmatpush.bf16.msra.mxu3 %v6651_v30  ;;  %4621 = vmatpush.bf16.msra.mxu1 %v6107_v12 }
 0x2e5   :  { %v8510_v46 = vld [vmem:[#allocation11 + $0x9d4] sm:$0xf]  ;;  %v6619_v1 = vor.u32 %v8390_v23, %v6616_v51  ;;  %4609 = vmatmul.bf16.vlgmr.msra.gmra.mxu0 %v9430_v52  ;;  %v4403_v51 = vadd.f32 %v4402_v42, %v1508_v50 }
 0x2e6   :  { %v7096_v6 = vld [vmem:[#allocation11 + $0x9f0] sm:$0xf0]  ;;  %4634 = vmatpush.bf16.msra.mxu2 %v6363_v34 }
 0x2e7   :  { %v8574_v38 = vld [vmem:[#allocation11 + $0xbd4] sm:$0xf]  ;;  %v7099_v39 = vor.u32 %v8510_v46, %v7096_v6  ;;  %4622 = vmatmul.bf16.vlgmr.msra.gmra.mxu1 %v9432_v54 }
 0x2e8   :  { %v7352_v36 = vld [vmem:[#allocation11 + $0xbf0] sm:$0xf0]  ;;  %4647 = vmatpush.bf16.msra.mxu3 %v6619_v1 }
 0x2e9   :  { %v8638_v14 = vld [vmem:[#allocation11 + $0xdd4] sm:$0xf]  ;;  %v7355_v2 = vor.u32 %v8574_v38, %v7352_v36  ;;  %4653 = vmatpush.bf16.msrb.mxu0 %v7099_v39  ;;  %4635 = vmatmul.bf16.vlgmr.msra.gmra.mxu2 %v9434_v18 }
 0x2ea   :  { %v7608_v16 = vld [vmem:[#allocation11 + $0xdf0] sm:$0xf0] }
 0x2eb   :  { %v8702_v55 = vld [vmem:[#allocation11 + $0xfd4] sm:$0xf]  ;;  %v7611_v20 = vor.u32 %v8638_v14, %v7608_v16  ;;  %4666 = vmatpush.bf16.msrb.mxu1 %v7355_v2  ;;  %4648 = vmatmul.bf16.vlgmr.msra.gmra.mxu3 %v9436_v33 }
 0x2ec   :  { %v7864_v37 = vld [vmem:[#allocation11 + $0xff0] sm:$0xf0] }
 0x2ed   :  { %v8502_v48 = vld [vmem:[#allocation11 + $0x994] sm:$0xf]  ;;  %v7867_v13 = vor.u32 %v8702_v55, %v7864_v37  ;;  %4679 = vmatpush.bf16.msrb.mxu2 %v7611_v20  ;;  %v4416_v37 = vadd.f32 %v4415_v9, %v4403_v51 }
 0x2ee   :  { %v7064_v4 = vld [vmem:[#allocation11 + $0x9b0] sm:$0xf0] }
 0x2ef   :  { %v8566_v21 = vld [vmem:[#allocation11 + $0xb94] sm:$0xf]  ;;  %v7067_v3 = vor.u32 %v8502_v48, %v7064_v4  ;;  %4692 = vmatpush.bf16.msrb.mxu3 %v7867_v13 }
 0x2f0   :  { %v7320_v26 = vld [vmem:[#allocation11 + $0xbb0] sm:$0xf0] }
 0x2f1   :  { %v8630_v24 = vld [vmem:[#allocation11 + $0xd94] sm:$0xf]  ;;  %v7323_v63 = vor.u32 %v8566_v21, %v7320_v26  ;;  %4654 = vmatpush.bf16.msrb.mxu0 %v7067_v3 }
 0x2f2   :  { %v7576_v58 = vld [vmem:[#allocation11 + $0xdb0] sm:$0xf0] }
 0x2f3   :  { %v8694_v27 = vld [vmem:[#allocation11 + $0xf94] sm:$0xf]  ;;  %v7579_v32 = vor.u32 %v8630_v24, %v7576_v58  ;;  %4667 = vmatpush.bf16.msrb.mxu1 %v7323_v63 }
 0x2f4   :  { %v7832_v28 = vld [vmem:[#allocation11 + $0xfb0] sm:$0xf0] }
 0x2f5   :  { %v8494_v29 = vld [vmem:[#allocation11 + $0x954] sm:$0xf]  ;;  %v7835_v57 = vor.u32 %v8694_v27, %v7832_v28  ;;  %4680 = vmatpush.bf16.msrb.mxu2 %v7579_v32  ;;  %v4428_v27 = vpop.f32.mrf.mxu2  ;;  %v4441_v28 = vpop.f32.mrf.mxu3 }
 0x2f6   :  { %v7032_v31 = vld [vmem:[#allocation11 + $0x970] sm:$0xf0]  ;;  %v4404_v32 = vpop.f32.mrf.mxu0 }
 0x2f7   :  { %v8558_v35 = vld [vmem:[#allocation11 + $0xb54] sm:$0xf]  ;;  %v7035_v56 = vor.u32 %v8494_v29, %v7032_v31  ;;  %4693 = vmatpush.bf16.msrb.mxu3 %v7835_v57  ;;  %v4429_v31 = vadd.f32 %v4428_v27, %v4416_v37  ;;  %v4417_v57 = vpop.f32.mrf.mxu1  ;;  %v6590_v37 = vld [vmem:[#allocation11 + $0x5d8] sm:$0xf] }
 0x2f8   :  { %v7288_v41 = vld [vmem:[#allocation11 + $0xb70] sm:$0xf0]  ;;  %v8443_v32 = vld [vmem:[#allocation11 + $0x7b4] sm:$0xf0] }
 0x2f9   :  { %v8622_v43 = vld [vmem:[#allocation11 + $0xd54] sm:$0xf]  ;;  %v7291_v19 = vor.u32 %v8558_v35, %v7288_v41  ;;  %4655 = vmatpush.bf16.msrb.mxu0 %v7035_v56 }
 0x2fa   :  { %v7544_v44 = vld [vmem:[#allocation11 + $0xd70] sm:$0xf0] }
 0x2fb   :  { %v8686_v17 = vld [vmem:[#allocation11 + $0xf54] sm:$0xf]  ;;  %v7547_v61 = vor.u32 %v8622_v43, %v7544_v44  ;;  %4668 = vmatpush.bf16.msrb.mxu1 %v7291_v19 }
 0x2fc   :  { %v7800_v45 = vld [vmem:[#allocation11 + $0xf70] sm:$0xf0] }
 0x2fd   :  { %v8486_v60 = vld [vmem:[#allocation11 + $0x914] sm:$0xf]  ;;  %v7803_v62 = vor.u32 %v8686_v17, %v7800_v45  ;;  %4681 = vmatpush.bf16.msrb.mxu2 %v7547_v61  ;;  %v9522_v17 = vadd.f32 %v4441_v28, %v4429_v31  ;;  %v6302_v28 = vld [vmem:[#allocation11 + $0x398] sm:$0xf] }
 0x2fe   :  { %v7000_v59 = vld [vmem:[#allocation11 + $0x930] sm:$0xf0]  ;;  %v6814_v31 = vld [vmem:[#allocation11 + $0x798] sm:$0xf] }
 0x2ff   :  { %v8550_v0 = vld [vmem:[#allocation11 + $0xb14] sm:$0xf]  ;;  %v7003_v46 = vor.u32 %v8486_v60, %v7000_v59  ;;  %4694 = vmatpush.bf16.msrb.mxu3 %v7803_v62 }
 0x300   :  { %v7256_v53 = vld [vmem:[#allocation11 + $0xb30] sm:$0xf0] }
 0x301   :  { %v8614_v30 = vld [vmem:[#allocation11 + $0xd14] sm:$0xf]  ;;  %v7259_v6 = vor.u32 %v8550_v0, %v7256_v53  ;;  %4656 = vmatpush.bf16.msrb.mxu0 %v7003_v46 }
 0x302   :  { %v7512_v22 = vld [vmem:[#allocation11 + $0xd30] sm:$0xf0] }
 0x303   :  { %v8678_v5 = vld [vmem:[#allocation11 + $0xf14] sm:$0xf]  ;;  %v7515_v14 = vor.u32 %v8614_v30, %v7512_v22  ;;  %4669 = vmatpush.bf16.msrb.mxu1 %v7259_v6 }
 0x304   :  { %v7768_v23 = vld [vmem:[#allocation11 + $0xf30] sm:$0xf0] }
 0x305   :  { %v8478_v38 = vld [vmem:[#allocation11 + $0x8d4] sm:$0xf]  ;;  %v7771_v15 = vor.u32 %v8678_v5, %v7768_v23  ;;  %4682 = vmatpush.bf16.msrb.mxu2 %v7515_v14 }
 0x306   :  { %v6968_v36 = vld [vmem:[#allocation11 + $0x8f0] sm:$0xf0] }
 0x307   :  { %v8542_v12 = vld [vmem:[#allocation11 + $0xad4] sm:$0xf]  ;;  %v6971_v2 = vor.u32 %v8478_v38, %v6968_v36  ;;  %4695 = vmatpush.bf16.msrb.mxu3 %v7771_v15  ;;  %v4430_v38 = vpop.f32.mrf.mxu2  ;;  %v4443_v36 = vpop.f32.mrf.mxu3  ;;  %v6078_v15 = vld [vmem:[#allocation11 + $0x1d8] sm:$0xf] }
 0x308   :  { %v7224_v16 = vld [vmem:[#allocation11 + $0xaf0] sm:$0xf0]  ;;  %v4454_v38 = vpop.f32.mrf.mxu0  ;;  %v4467_v36 = vpop.f32.mrf.mxu1 }
 0x309   :  { %v8606_v55 = vld [vmem:[#allocation11 + $0xcd4] sm:$0xf]  ;;  %v7227_v48 = vor.u32 %v8542_v12, %v7224_v16  ;;  %4657 = vmatpush.bf16.msrb.mxu0 %v6971_v2  ;;  %v8259_v12 = vld [vmem:[#allocation11 + $0x1f4] sm:$0xf0] }
 0x30a   :  { %v7480_v34 = vld [vmem:[#allocation11 + $0xcf0] sm:$0xf0]  ;;  %v6334_v16 = vld [vmem:[#allocation11 + $0x3d8] sm:$0xf] }
 0x30b   :  { %v8670_v1 = vld [vmem:[#allocation11 + $0xed4] sm:$0xf]  ;;  %v7483_v13 = vor.u32 %v8606_v55, %v7480_v34  ;;  %4670 = vmatpush.bf16.msrb.mxu1 %v7227_v48  ;;  %v8323_v55 = vld [vmem:[#allocation11 + $0x3f4] sm:$0xf0] }
 0x30c   :  { %v7736_v39 = vld [vmem:[#allocation11 + $0xef0] sm:$0xf0]  ;;  %v6846_v2 = vld [vmem:[#allocation11 + $0x7d8] sm:$0xf] }
 0x30d   :  { %v8470_v4 = vld [vmem:[#allocation11 + $0x894] sm:$0xf]  ;;  %v7739_v21 = vor.u32 %v8670_v1, %v7736_v39  ;;  %4683 = vmatpush.bf16.msrb.mxu2 %v7483_v13  ;;  %v8387_v39 = vld [vmem:[#allocation11 + $0x5f4] sm:$0xf0]  ;;  %v6079_v13 = vor.u32 %v8259_v12, %v6078_v15 }
 0x30e   :  { %v6936_v20 = vld [vmem:[#allocation11 + $0x8b0] sm:$0xf0]  ;;  %v8451_v48 = vld [vmem:[#allocation11 + $0x7f4] sm:$0xf0] }
 0x30f   :  { %v8534_v26 = vld [vmem:[#allocation11 + $0xa94] sm:$0xf]  ;;  %v6939_v35 = vor.u32 %v8470_v4, %v6936_v20  ;;  %4696 = vmatpush.bf16.msrb.mxu3 %v7739_v21  ;;  %v6335_v21 = vor.u32 %v8323_v55, %v6334_v16  ;;  %v6847_v27 = vor.u32 %v8451_v48, %v6846_v2  ;;  %v5950_v16 = vld [vmem:[#allocation11 + $0xd8] sm:$0xf] }
 0x310   :  { %v7192_v24 = vld [vmem:[#allocation11 + $0xab0] sm:$0xf0]  ;;  %v8227_v55 = vld [vmem:[#allocation11 + $0xf4] sm:$0xf0] }
 0x311   :  { %v8598_v58 = vld [vmem:[#allocation11 + $0xc94] sm:$0xf]  ;;  %v7195_v41 = vor.u32 %v8534_v26, %v7192_v24  ;;  %4658 = vmatpush.bf16.msrb.mxu0 %v6939_v35  ;;  %v6046_v26 = vld [vmem:[#allocation11 + $0x198] sm:$0xf] }
 0x312   :  { %v7448_v3 = vld [vmem:[#allocation11 + $0xcb0] sm:$0xf0]  ;;  %v8251_v24 = vld [vmem:[#allocation11 + $0x1b4] sm:$0xf0] }
 0x313   :  { %v8662_v63 = vld [vmem:[#allocation11 + $0xe94] sm:$0xf]  ;;  %v7451_v45 = vor.u32 %v8598_v58, %v7448_v3  ;;  %4671 = vmatpush.bf16.msrb.mxu1 %v7195_v41  ;;  %v6591_v58 = vor.u32 %v8387_v39, %v6590_v37  ;;  %v8315_v3 = vld [vmem:[#allocation11 + $0x3b4] sm:$0xf0]  ;;  %v6047_v57 = vor.u32 %v8251_v24, %v6046_v26 }
 0x314   :  { %v7704_v29 = vld [vmem:[#allocation11 + $0xeb0] sm:$0xf0]  ;;  %v6303_v35 = vor.u32 %v8315_v3, %v6302_v28  ;;  %v6014_v41 = vld [vmem:[#allocation11 + $0x158] sm:$0xf] }
 0x315   :  { %v8462_v43 = vld [vmem:[#allocation11 + $0x854] sm:$0xf]  ;;  %v7707_v56 = vor.u32 %v8662_v63, %v7704_v29  ;;  %4684 = vmatpush.bf16.msrb.mxu2 %v7451_v45  ;;  %v6558_v63 = vld [vmem:[#allocation11 + $0x598] sm:$0xf]  ;;  %v6815_v45 = vor.u32 %v8443_v32, %v6814_v31  ;;  %v4493_v31 = vpop.f32.mrf.mxu3 }
 0x316   :  { %v6904_v44 = vld [vmem:[#allocation11 + $0x870] sm:$0xf0]  ;;  %v8379_v29 = vld [vmem:[#allocation11 + $0x5b4] sm:$0xf0] }
 0x317   :  { %v8526_v19 = vld [vmem:[#allocation11 + $0xa54] sm:$0xf]  ;;  %v6907_v53 = vor.u32 %v8462_v43, %v6904_v44  ;;  %4697 = vmatpush.bf16.msrb.mxu3 %v7707_v56  ;;  %v8243_v43 = vld [vmem:[#allocation11 + $0x174] sm:$0xf0]  ;;  %v6559_v44 = vor.u32 %v8379_v29, %v6558_v63  ;;  %v4480_v29 = vpop.f32.mrf.mxu2 }
 0x318   :  { %v7160_v50 = vld [vmem:[#allocation11 + $0xa70] sm:$0xf0]  ;;  %v6270_v56 = vld [vmem:[#allocation11 + $0x358] sm:$0xf] }
 0x319   :  { %v8590_v60 = vld [vmem:[#allocation11 + $0xc54] sm:$0xf]  ;;  %v7163_v30 = vor.u32 %v8526_v19, %v7160_v50  ;;  %4659 = vmatpush.bf16.msrb.mxu0 %v6907_v53  ;;  %v8307_v19 = vld [vmem:[#allocation11 + $0x374] sm:$0xf0] }
 0x31a   :  { %v7416_v59 = vld [vmem:[#allocation11 + $0xc70] sm:$0xf0]  ;;  %v6526_v50 = vld [vmem:[#allocation11 + $0x558] sm:$0xf] }
 0x31b   :  { %v8654_v61 = vld [vmem:[#allocation11 + $0xe54] sm:$0xf]  ;;  %v7419_v42 = vor.u32 %v8590_v60, %v7416_v59  ;;  %4672 = vmatpush.bf16.msrb.mxu1 %v7163_v30  ;;  %v8371_v60 = vld [vmem:[#allocation11 + $0x574] sm:$0xf0] }
 0x31c   :  { %v7672_v62 = vld [vmem:[#allocation11 + $0xe70] sm:$0xf0]  ;;  %v6782_v59 = vld [vmem:[#allocation11 + $0x758] sm:$0xf] }
 0x31d   :  { %v8454_v0 = vld [vmem:[#allocation11 + $0x814] sm:$0xf]  ;;  %v7675_v9 = vor.u32 %v8654_v61, %v7672_v62  ;;  %4685 = vmatpush.bf16.msrb.mxu2 %v7419_v42  ;;  %v8435_v61 = vld [vmem:[#allocation11 + $0x774] sm:$0xf0]  ;;  %v6015_v62 = vor.u32 %v8243_v43, %v6014_v41  ;;  %v4456_v43 = vpop.f32.mrf.mxu0 }
 0x31e   :  { %v6872_v22 = vld [vmem:[#allocation11 + $0x830] sm:$0xf0]  ;;  %v5982_v53 = vld [vmem:[#allocation11 + $0x118] sm:$0xf] }
 0x31f   :  { %v8518_v5 = vld [vmem:[#allocation11 + $0xa14] sm:$0xf]  ;;  %v6875_v34 = vor.u32 %v8454_v0, %v6872_v22  ;;  %4698 = vmatpush.bf16.msrb.mxu3 %v7675_v9  ;;  %v6271_v0 = vor.u32 %v8307_v19, %v6270_v56  ;;  %v8235_v30 = vld [vmem:[#allocation11 + $0x134] sm:$0xf0]  ;;  %v6527_v22 = vor.u32 %v8371_v60, %v6526_v50 }
 0x320   :  { %v7128_v23 = vld [vmem:[#allocation11 + $0xa30] sm:$0xf0]  ;;  %v8299_v42 = vld [vmem:[#allocation11 + $0x334] sm:$0xf0]  ;;  %v5983_v15 = vor.u32 %v8235_v30, %v5982_v53 }
 0x321   :  { %v8582_v51 = vld [vmem:[#allocation11 + $0xc14] sm:$0xf]  ;;  %v7131_v1 = vor.u32 %v8518_v5, %v7128_v23  ;;  %4660 = vmatpush.bf16.msrb.mxu0 %v6875_v34  ;;  %v6783_v5 = vor.u32 %v8435_v61, %v6782_v59  ;;  %v6238_v23 = vld [vmem:[#allocation11 + $0x318] sm:$0xf] }
 0x322   :  { %v7384_v46 = vld [vmem:[#allocation11 + $0xc30] sm:$0xf0]  ;;  %v6494_v9 = vld [vmem:[#allocation11 + $0x518] sm:$0xf]  ;;  %v6239_v12 = vor.u32 %v8299_v42, %v6238_v23 }
 0x323   :  { %v8646_v6 = vld [vmem:[#allocation11 + $0xe14] sm:$0xf]  ;;  %v7387_v4 = vor.u32 %v8582_v51, %v7384_v46  ;;  %4673 = vmatpush.bf16.msrb.mxu1 %v7131_v1  ;;  %v8363_v51 = vld [vmem:[#allocation11 + $0x534] sm:$0xf0] }
 0x324   :  { %v7640_v14 = vld [vmem:[#allocation11 + $0xe30] sm:$0xf0]  ;;  %4661 = vmatmul.bf16.vlgmr.msrb.gmra.mxu0 %v9454_v7  ;;  %v6750_v46 = vld [vmem:[#allocation11 + $0x718] sm:$0xf]  ;;  %v6495_v37 = vor.u32 %v8363_v51, %v6494_v9 }
 0x325   :  { %v7643_v20 = vor.u32 %v8646_v6, %v7640_v14  ;;  %4686 = vmatpush.bf16.msrb.mxu2 %v7387_v4  ;;  %4705 = vmatpush.bf16.msra.mxu0 %v6079_v13  ;;  %v8427_v6 = vld [vmem:[#allocation11 + $0x734] sm:$0xf0]  ;;  %v4455_v14 = vadd.f32 %v4454_v38, %v9522_v17 }
 0x326   :  { %4674 = vmatmul.bf16.vlgmr.msrb.gmra.mxu1 %v9456_v8  ;;  %v6751_v34 = vor.u32 %v8427_v6, %v6750_v46  ;;  %v6206_v1 = vld [vmem:[#allocation11 + $0x2d8] sm:$0xf] }
 0x327   :  { %4699 = vmatpush.bf16.msrb.mxu3 %v7643_v20  ;;  %4718 = vmatpush.bf16.msra.mxu1 %v6335_v21  ;;  %v8291_v39 = vld [vmem:[#allocation11 + $0x2f4] sm:$0xf0]  ;;  %v4468_v48 = vadd.f32 %v4467_v36, %v4455_v14  ;;  %v5951_v21 = vor.u32 %v8227_v55, %v5950_v16  ;;  %v4482_v16 = vpop.f32.mrf.mxu2  ;;  %v4495_v55 = vpop.f32.mrf.mxu3 }
 0x328   :  { %4687 = vmatmul.bf16.vlgmr.msrb.gmra.mxu2 %v9460_v11  ;;  %v6462_v2 = vld [vmem:[#allocation11 + $0x4d8] sm:$0xf]  ;;  %v6207_v26 = vor.u32 %v8291_v39, %v6206_v1  ;;  %v4506_v55 = vpop.f32.mrf.mxu0 }
 0x329   :  { %4731 = vmatpush.bf16.msra.mxu2 %v6591_v58  ;;  %4706 = vmatpush.bf16.msra.mxu0 %v6047_v57  ;;  %v8355_v4 = vld [vmem:[#allocation11 + $0x4f4] sm:$0xf0]  ;;  %v4481_v41 = vadd.f32 %v4480_v29, %v4468_v48 }
 0x32a   :  { %4700 = vmatmul.bf16.vlgmr.msrb.gmra.mxu3 %v9458_v10  ;;  %v6718_v20 = vld [vmem:[#allocation11 + $0x6d8] sm:$0xf]  ;;  %v6463_v58 = vor.u32 %v8355_v4, %v6462_v2 }
 0x32b   :  { %4744 = vmatpush.bf16.msra.mxu3 %v6847_v27  ;;  %4719 = vmatpush.bf16.msra.mxu1 %v6303_v35  ;;  %v8419_v13 = vld [vmem:[#allocation11 + $0x6f4] sm:$0xf0]  ;;  %v9529_v60 = vadd.f32 %v4493_v31, %v4481_v41 }
 0x32c   :  { %v5918_v17 = vld [vmem:[#allocation11 + $0x98] sm:$0xf]  ;;  %v6719_v27 = vor.u32 %v8419_v13, %v6718_v20 }
 0x32d   :  { %4732 = vmatpush.bf16.msra.mxu2 %v6559_v44  ;;  %4707 = vmatpush.bf16.msra.mxu0 %v6015_v62  ;;  %v8219_v24 = vld [vmem:[#allocation11 + $0xb4] sm:$0xf0]  ;;  %v4469_v44 = vpop.f32.mrf.mxu1 }
 0x32e   :  { %v6174_v28 = vld [vmem:[#allocation11 + $0x298] sm:$0xf] }
 0x32f   :  { %4745 = vmatpush.bf16.msra.mxu3 %v6815_v45  ;;  %4720 = vmatpush.bf16.msra.mxu1 %v6271_v0  ;;  %v8283_v3 = vld [vmem:[#allocation11 + $0x2b4] sm:$0xf0]  ;;  %v5919_v45 = vor.u32 %v8219_v24, %v5918_v17 }
 0x330   :  { %v6430_v63 = vld [vmem:[#allocation11 + $0x498] sm:$0xf]  ;;  %v6175_v56 = vor.u32 %v8283_v3, %v6174_v28 }
 0x331   :  { %4733 = vmatpush.bf16.msra.mxu2 %v6527_v22  ;;  %4708 = vmatpush.bf16.msra.mxu0 %v5983_v15  ;;  %v8347_v32 = vld [vmem:[#allocation11 + $0x4b4] sm:$0xf0] }
 0x332   :  { %v6686_v57 = vld [vmem:[#allocation11 + $0x698] sm:$0xf]  ;;  %v6431_v59 = vor.u32 %v8347_v32, %v6430_v63 }
 0x333   :  { %4746 = vmatpush.bf16.msra.mxu3 %v6783_v5  ;;  %4721 = vmatpush.bf16.msra.mxu1 %v6239_v12  ;;  %v8411_v35 = vld [vmem:[#allocation11 + $0x6b4] sm:$0xf0] }
 0x334   :  { %v5886_v19 = vld [vmem:[#allocation11 + $0x58] sm:$0xf]  ;;  %v6687_v61 = vor.u32 %v8411_v35, %v6686_v57 }
 0x335   :  { %4734 = vmatpush.bf16.msra.mxu2 %v6495_v37  ;;  %4709 = vmatpush.bf16.msra.mxu0 %v5951_v21  ;;  %v8211_v50 = vld [vmem:[#allocation11 + $0x74] sm:$0xf0] }
 0x336   :  { %v6142_v62 = vld [vmem:[#allocation11 + $0x258] sm:$0xf]  ;;  %v5887_v42 = vor.u32 %v8211_v50, %v5886_v19 }
 0x337   :  { %4747 = vmatpush.bf16.msra.mxu3 %v6751_v34  ;;  %4722 = vmatpush.bf16.msra.mxu1 %v6207_v26  ;;  %v8275_v0 = vld [vmem:[#allocation11 + $0x274] sm:$0xf0] }
 0x338   :  { %v6398_v53 = vld [vmem:[#allocation11 + $0x458] sm:$0xf]  ;;  %v6143_v9 = vor.u32 %v8275_v0, %v6142_v62 }
 0x339   :  { %4735 = vmatpush.bf16.msra.mxu2 %v6463_v58  ;;  %v8339_v30 = vld [vmem:[#allocation11 + $0x474] sm:$0xf0]  ;;  %4710 = vmatpush.bf16.msra.mxu0 %v5919_v45 }
 0x33a   :  { %v6654_v22 = vld [vmem:[#allocation11 + $0x658] sm:$0xf]  ;;  %v6399_v38 = vor.u32 %v8339_v30, %v6398_v53 }
 0x33b   :  { %4748 = vmatpush.bf16.msra.mxu3 %v6719_v27  ;;  %v8403_v5 = vld [vmem:[#allocation11 + $0x674] sm:$0xf0]  ;;  %4723 = vmatpush.bf16.msra.mxu1 %v6175_v56 }
 0x33c   :  { %v5854_v23 = vld [vmem:[#allocation11 + $0x18] sm:$0xf]  ;;  %v6655_v36 = vor.u32 %v8403_v5, %v6654_v22 }
 0x33d   :  { %v8203_v51 = vld [vmem:[#allocation11 + $0x34] sm:$0xf0]  ;;  %4736 = vmatpush.bf16.msra.mxu2 %v6431_v59  ;;  %4711 = vmatpush.bf16.msra.mxu0 %v5887_v42  ;;  %v1509_v42 = vperm.slane %v9519_v49, 4 }
 0x33e   :  { %v6110_v46 = vld [vmem:[#allocation11 + $0x218] sm:$0xf]  ;;  %v5855_v4 = vor.u32 %v8203_v51, %v5854_v23 }
 0x33f   :  { %v8267_v6 = vld [vmem:[#allocation11 + $0x234] sm:$0xf0]  ;;  %4749 = vmatpush.bf16.msra.mxu3 %v6687_v61  ;;  %4724 = vmatpush.bf16.msra.mxu1 %v6143_v9 }
 0x340   :  { %v6366_v14 = vld [vmem:[#allocation11 + $0x418] sm:$0xf]  ;;  %v6111_v20 = vor.u32 %v8267_v6, %v6110_v46 }
 0x341   :  { %v8331_v15 = vld [vmem:[#allocation11 + $0x434] sm:$0xf0]  ;;  %4737 = vmatpush.bf16.msra.mxu2 %v6399_v38  ;;  %4712 = vmatpush.bf16.msra.mxu0 %v5855_v4 }
 0x342   :  { %v6622_v12 = vld [vmem:[#allocation11 + $0x618] sm:$0xf]  ;;  %v6367_v17 = vor.u32 %v8331_v15, %v6366_v14 }
 0x343   :  { %v8395_v37 = vld [vmem:[#allocation11 + $0x634] sm:$0xf0]  ;;  %4750 = vmatpush.bf16.msra.mxu3 %v6655_v36  ;;  %4725 = vmatpush.bf16.msra.mxu1 %v6111_v20 }
 0x344   :  { %v7102_v34 = vld [vmem:[#allocation11 + $0x9d8] sm:$0xf]  ;;  %v6623_v24 = vor.u32 %v8395_v37, %v6622_v12  ;;  %4713 = vmatmul.bf16.vlgmr.msra.gmra.mxu0 %v9430_v52  ;;  %v4519_v37 = vpop.f32.mrf.mxu1 }
 0x345   :  { %v8515_v1 = vld [vmem:[#allocation11 + $0x9f4] sm:$0xf0]  ;;  %4738 = vmatpush.bf16.msra.mxu2 %v6367_v17 }
 0x346   :  { %v7358_v39 = vld [vmem:[#allocation11 + $0xbd8] sm:$0xf]  ;;  %v7103_v58 = vor.u32 %v8515_v1, %v7102_v34  ;;  %4726 = vmatmul.bf16.vlgmr.msra.gmra.mxu1 %v9432_v54  ;;  %v4507_v34 = vadd.f32 %v4506_v55, %v1509_v42 }
 0x347   :  { %v8579_v2 = vld [vmem:[#allocation11 + $0xbf4] sm:$0xf0]  ;;  %4751 = vmatpush.bf16.msra.mxu3 %v6623_v24 }
 0x348   :  { %v7614_v48 = vld [vmem:[#allocation11 + $0xdd8] sm:$0xf]  ;;  %v7359_v27 = vor.u32 %v8579_v2, %v7358_v39  ;;  %4757 = vmatpush.bf16.msrb.mxu0 %v7103_v58  ;;  %4739 = vmatmul.bf16.vlgmr.msra.gmra.mxu2 %v9434_v18 }
 0x349   :  { %v8643_v13 = vld [vmem:[#allocation11 + $0xdf4] sm:$0xf0] }
 0x34a   :  { %v7870_v21 = vld [vmem:[#allocation11 + $0xfd8] sm:$0xf]  ;;  %v7615_v63 = vor.u32 %v8643_v13, %v7614_v48  ;;  %4770 = vmatpush.bf16.msrb.mxu1 %v7359_v27  ;;  %4752 = vmatmul.bf16.vlgmr.msra.gmra.mxu3 %v9436_v33 }
 0x34b   :  { %v8707_v26 = vld [vmem:[#allocation11 + $0xff4] sm:$0xf0] }
 0x34c   :  { %v7070_v28 = vld [vmem:[#allocation11 + $0x998] sm:$0xf]  ;;  %v7871_v29 = vor.u32 %v8707_v26, %v7870_v21  ;;  %4783 = vmatpush.bf16.msrb.mxu2 %v7615_v63  ;;  %v4520_v26 = vadd.f32 %v4519_v37, %v4507_v34 }
 0x34d   :  { %v8507_v3 = vld [vmem:[#allocation11 + $0x9b4] sm:$0xf0] }
 0x34e   :  { %v7326_v31 = vld [vmem:[#allocation11 + $0xb98] sm:$0xf]  ;;  %v7071_v44 = vor.u32 %v8507_v3, %v7070_v28  ;;  %4796 = vmatpush.bf16.msrb.mxu3 %v7871_v29 }
 0x34f   :  { %v8571_v32 = vld [vmem:[#allocation11 + $0xbb4] sm:$0xf0] }
 0x350   :  { %v7582_v57 = vld [vmem:[#allocation11 + $0xd98] sm:$0xf]  ;;  %v7327_v45 = vor.u32 %v8571_v32, %v7326_v31  ;;  %4758 = vmatpush.bf16.msrb.mxu0 %v7071_v44 }
 0x351   :  { %v8635_v35 = vld [vmem:[#allocation11 + $0xdb4] sm:$0xf0] }
 0x352   :  { %v7838_v41 = vld [vmem:[#allocation11 + $0xf98] sm:$0xf]  ;;  %v7583_v50 = vor.u32 %v8635_v35, %v7582_v57  ;;  %4771 = vmatpush.bf16.msrb.mxu1 %v7327_v45 }
 0x353   :  { %v8699_v43 = vld [vmem:[#allocation11 + $0xfb4] sm:$0xf0] }
 0x354   :  { %v7038_v56 = vld [vmem:[#allocation11 + $0x958] sm:$0xf]  ;;  %v7839_v59 = vor.u32 %v8699_v43, %v7838_v41  ;;  %4784 = vmatpush.bf16.msrb.mxu2 %v7583_v50  ;;  %v4532_v41 = vpop.f32.mrf.mxu2  ;;  %v4545_v43 = vpop.f32.mrf.mxu3 }
 0x355   :  { %v8499_v19 = vld [vmem:[#allocation11 + $0x974] sm:$0xf0]  ;;  %v4508_v50 = vpop.f32.mrf.mxu0 }
 0x356   :  { %v7294_v61 = vld [vmem:[#allocation11 + $0xb58] sm:$0xf]  ;;  %v7039_v5 = vor.u32 %v8499_v19, %v7038_v56  ;;  %4797 = vmatpush.bf16.msrb.mxu3 %v7839_v59  ;;  %v4533_v19 = vadd.f32 %v4532_v41, %v4520_v26  ;;  %v4521_v59 = vpop.f32.mrf.mxu1  ;;  %v8383_v26 = vld [vmem:[#allocation11 + $0x5dc] sm:$0xf] }
 0x357   :  { %v8563_v62 = vld [vmem:[#allocation11 + $0xb74] sm:$0xf0]  ;;  %v6816_v50 = vld [vmem:[#allocation11 + $0x7b8] sm:$0xf0] }
 0x358   :  { %v7550_v0 = vld [vmem:[#allocation11 + $0xd58] sm:$0xf]  ;;  %v7295_v23 = vor.u32 %v8563_v62, %v7294_v61  ;;  %4759 = vmatpush.bf16.msrb.mxu0 %v7039_v5 }
 0x359   :  { %v8627_v53 = vld [vmem:[#allocation11 + $0xd74] sm:$0xf0] }
 0x35a   :  { %v7806_v30 = vld [vmem:[#allocation11 + $0xf58] sm:$0xf]  ;;  %v7551_v46 = vor.u32 %v8627_v53, %v7550_v0  ;;  %4772 = vmatpush.bf16.msrb.mxu1 %v7295_v23 }
 0x35b   :  { %v8691_v22 = vld [vmem:[#allocation11 + $0xf74] sm:$0xf0] }
 0x35c   :  { %v7006_v9 = vld [vmem:[#allocation11 + $0x918] sm:$0xf]  ;;  %v7807_v6 = vor.u32 %v8691_v22, %v7806_v30  ;;  %4785 = vmatpush.bf16.msrb.mxu2 %v7551_v46  ;;  %v9536_v30 = vadd.f32 %v4545_v43, %v4533_v19  ;;  %v8311_v43 = vld [vmem:[#allocation11 + $0x39c] sm:$0xf] }
 0x35d   :  { %v8491_v51 = vld [vmem:[#allocation11 + $0x934] sm:$0xf0]  ;;  %v8439_v19 = vld [vmem:[#allocation11 + $0x79c] sm:$0xf] }
 0x35e   :  { %v7262_v38 = vld [vmem:[#allocation11 + $0xb18] sm:$0xf]  ;;  %v7007_v1 = vor.u32 %v8491_v51, %v7006_v9  ;;  %4798 = vmatpush.bf16.msrb.mxu3 %v7807_v6 }
 0x35f   :  { %v8555_v36 = vld [vmem:[#allocation11 + $0xb34] sm:$0xf0] }
 0x360   :  { %v7518_v14 = vld [vmem:[#allocation11 + $0xd18] sm:$0xf]  ;;  %v7263_v39 = vor.u32 %v8555_v36, %v7262_v38  ;;  %4760 = vmatpush.bf16.msrb.mxu0 %v7007_v1 }
 0x361   :  { %v8619_v15 = vld [vmem:[#allocation11 + $0xd34] sm:$0xf0] }
 0x362   :  { %v7774_v12 = vld [vmem:[#allocation11 + $0xf18] sm:$0xf]  ;;  %v7519_v48 = vor.u32 %v8619_v15, %v7518_v14  ;;  %4773 = vmatpush.bf16.msrb.mxu1 %v7263_v39 }
 0x363   :  { %v8683_v16 = vld [vmem:[#allocation11 + $0xf34] sm:$0xf0] }
 0x364   :  { %v6974_v49 = vld [vmem:[#allocation11 + $0x8d8] sm:$0xf]  ;;  %v7775_v4 = vor.u32 %v8683_v16, %v7774_v12  ;;  %4786 = vmatpush.bf16.msrb.mxu2 %v7519_v48 }
 0x365   :  { %v8483_v2 = vld [vmem:[#allocation11 + $0x8f4] sm:$0xf0] }
 0x366   :  { %v7230_v20 = vld [vmem:[#allocation11 + $0xad8] sm:$0xf]  ;;  %v6975_v27 = vor.u32 %v8483_v2, %v6974_v49  ;;  %4799 = vmatpush.bf16.msrb.mxu3 %v7775_v4  ;;  %v4534_v49 = vpop.f32.mrf.mxu2  ;;  %v4547_v2 = vpop.f32.mrf.mxu3  ;;  %v8255_v4 = vld [vmem:[#allocation11 + $0x1dc] sm:$0xf] }
 0x367   :  { %v8547_v13 = vld [vmem:[#allocation11 + $0xaf4] sm:$0xf0]  ;;  %v4558_v49 = vpop.f32.mrf.mxu0  ;;  %v4571_v2 = vpop.f32.mrf.mxu1 }
 0x368   :  { %v7486_v21 = vld [vmem:[#allocation11 + $0xcd8] sm:$0xf]  ;;  %v7231_v28 = vor.u32 %v8547_v13, %v7230_v20  ;;  %4761 = vmatpush.bf16.msrb.mxu0 %v6975_v27  ;;  %v6080_v20 = vld [vmem:[#allocation11 + $0x1f8] sm:$0xf0] }
 0x369   :  { %v8611_v17 = vld [vmem:[#allocation11 + $0xcf4] sm:$0xf0]  ;;  %v8319_v13 = vld [vmem:[#allocation11 + $0x3dc] sm:$0xf] }
 0x36a   :  { %v7742_v24 = vld [vmem:[#allocation11 + $0xed8] sm:$0xf]  ;;  %v7487_v29 = vor.u32 %v8611_v17, %v7486_v21  ;;  %4774 = vmatpush.bf16.msrb.mxu1 %v7231_v28  ;;  %v6336_v21 = vld [vmem:[#allocation11 + $0x3f8] sm:$0xf0] }
 0x36b   :  { %v8675_v58 = vld [vmem:[#allocation11 + $0xef4] sm:$0xf0]  ;;  %v8447_v27 = vld [vmem:[#allocation11 + $0x7dc] sm:$0xf] }
 0x36c   :  { %v6942_v3 = vld [vmem:[#allocation11 + $0x898] sm:$0xf]  ;;  %v7743_v31 = vor.u32 %v8675_v58, %v7742_v24  ;;  %4787 = vmatpush.bf16.msrb.mxu2 %v7487_v29  ;;  %v6592_v58 = vld [vmem:[#allocation11 + $0x5f8] sm:$0xf0]  ;;  %v6083_v29 = vor.u32 %v8255_v4, %v6080_v20 }
 0x36d   :  { %v8475_v63 = vld [vmem:[#allocation11 + $0x8b4] sm:$0xf0]  ;;  %v6848_v28 = vld [vmem:[#allocation11 + $0x7f8] sm:$0xf0] }
 0x36e   :  { %v7198_v32 = vld [vmem:[#allocation11 + $0xa98] sm:$0xf]  ;;  %v6943_v61 = vor.u32 %v8475_v63, %v6942_v3  ;;  %4800 = vmatpush.bf16.msrb.mxu3 %v7743_v31  ;;  %v6339_v31 = vor.u32 %v8319_v13, %v6336_v21  ;;  %v6851_v41 = vor.u32 %v8447_v27, %v6848_v28  ;;  %v8223_v13 = vld [vmem:[#allocation11 + $0xdc] sm:$0xf] }
 0x36f   :  { %v8539_v57 = vld [vmem:[#allocation11 + $0xab4] sm:$0xf0]  ;;  %v5952_v21 = vld [vmem:[#allocation11 + $0xf8] sm:$0xf0] }
 0x370   :  { %v7454_v35 = vld [vmem:[#allocation11 + $0xc98] sm:$0xf]  ;;  %v7199_v62 = vor.u32 %v8539_v57, %v7198_v32  ;;  %4762 = vmatpush.bf16.msrb.mxu0 %v6943_v61  ;;  %v8247_v32 = vld [vmem:[#allocation11 + $0x19c] sm:$0xf] }
 0x371   :  { %v8603_v44 = vld [vmem:[#allocation11 + $0xcb4] sm:$0xf0]  ;;  %v6048_v57 = vld [vmem:[#allocation11 + $0x1b8] sm:$0xf0] }
 0x372   :  { %v7710_v45 = vld [vmem:[#allocation11 + $0xe98] sm:$0xf]  ;;  %v7455_v22 = vor.u32 %v8603_v44, %v7454_v35  ;;  %4775 = vmatpush.bf16.msrb.mxu1 %v7199_v62  ;;  %v6595_v35 = vor.u32 %v8383_v26, %v6592_v58  ;;  %v6304_v44 = vld [vmem:[#allocation11 + $0x3b8] sm:$0xf0]  ;;  %v6051_v59 = vor.u32 %v8247_v32, %v6048_v57 }
 0x373   :  { %v8667_v56 = vld [vmem:[#allocation11 + $0xeb4] sm:$0xf0]  ;;  %v6307_v61 = vor.u32 %v8311_v43, %v6304_v44  ;;  %v8239_v62 = vld [vmem:[#allocation11 + $0x15c] sm:$0xf] }
 0x374   :  { %v6910_v0 = vld [vmem:[#allocation11 + $0x858] sm:$0xf]  ;;  %v7711_v5 = vor.u32 %v8667_v56, %v7710_v45  ;;  %4788 = vmatpush.bf16.msrb.mxu2 %v7455_v22  ;;  %v8375_v45 = vld [vmem:[#allocation11 + $0x59c] sm:$0xf]  ;;  %v6819_v22 = vor.u32 %v8439_v19, %v6816_v50  ;;  %v4597_v19 = vpop.f32.mrf.mxu3 }
 0x375   :  { %v8467_v53 = vld [vmem:[#allocation11 + $0x874] sm:$0xf0]  ;;  %v6560_v56 = vld [vmem:[#allocation11 + $0x5b8] sm:$0xf0] }
 0x376   :  { %v7166_v23 = vld [vmem:[#allocation11 + $0xa58] sm:$0xf]  ;;  %v6911_v36 = vor.u32 %v8467_v53, %v6910_v0  ;;  %4801 = vmatpush.bf16.msrb.mxu3 %v7711_v5  ;;  %v6016_v0 = vld [vmem:[#allocation11 + $0x178] sm:$0xf0]  ;;  %v6563_v53 = vor.u32 %v8375_v45, %v6560_v56  ;;  %v4584_v56 = vpop.f32.mrf.mxu2 }
 0x377   :  { %v8531_v42 = vld [vmem:[#allocation11 + $0xa74] sm:$0xf0]  ;;  %v8303_v5 = vld [vmem:[#allocation11 + $0x35c] sm:$0xf] }
 0x378   :  { %v7422_v9 = vld [vmem:[#allocation11 + $0xc58] sm:$0xf]  ;;  %v7167_v14 = vor.u32 %v8531_v42, %v7166_v23  ;;  %4763 = vmatpush.bf16.msrb.mxu0 %v6911_v36  ;;  %v6272_v23 = vld [vmem:[#allocation11 + $0x378] sm:$0xf0] }
 0x379   :  { %v8595_v51 = vld [vmem:[#allocation11 + $0xc74] sm:$0xf0]  ;;  %v8367_v42 = vld [vmem:[#allocation11 + $0x55c] sm:$0xf] }
 0x37a   :  { %v7678_v46 = vld [vmem:[#allocation11 + $0xe58] sm:$0xf]  ;;  %v7423_v55 = vor.u32 %v8595_v51, %v7422_v9  ;;  %4776 = vmatpush.bf16.msrb.mxu1 %v7167_v14  ;;  %v6528_v9 = vld [vmem:[#allocation11 + $0x578] sm:$0xf0] }
 0x37b   :  { %v8659_v6 = vld [vmem:[#allocation11 + $0xe74] sm:$0xf0]  ;;  %v8431_v51 = vld [vmem:[#allocation11 + $0x75c] sm:$0xf] }
 0x37c   :  { %v6878_v38 = vld [vmem:[#allocation11 + $0x818] sm:$0xf]  ;;  %v7679_v37 = vor.u32 %v8659_v6, %v7678_v46  ;;  %4789 = vmatpush.bf16.msrb.mxu2 %v7423_v55  ;;  %v6784_v46 = vld [vmem:[#allocation11 + $0x778] sm:$0xf0]  ;;  %v6019_v6 = vor.u32 %v8239_v62, %v6016_v0  ;;  %v4560_v0 = vpop.f32.mrf.mxu0 }
 0x37d   :  { %v8459_v15 = vld [vmem:[#allocation11 + $0x834] sm:$0xf0]  ;;  %v8231_v36 = vld [vmem:[#allocation11 + $0x11c] sm:$0xf] }
 0x37e   :  { %v7134_v12 = vld [vmem:[#allocation11 + $0xa18] sm:$0xf]  ;;  %v6879_v17 = vor.u32 %v8459_v15, %v6878_v38  ;;  %4802 = vmatpush.bf16.msrb.mxu3 %v7679_v37  ;;  %v6275_v38 = vor.u32 %v8303_v5, %v6272_v23  ;;  %v5984_v14 = vld [vmem:[#allocation11 + $0x138] sm:$0xf0]  ;;  %v6531_v15 = vor.u32 %v8367_v42, %v6528_v9 }
 0x37f   :  { %v8523_v16 = vld [vmem:[#allocation11 + $0xa34] sm:$0xf0]  ;;  %v6240_v55 = vld [vmem:[#allocation11 + $0x338] sm:$0xf0]  ;;  %v5987_v4 = vor.u32 %v8231_v36, %v5984_v14 }
 0x380   :  { %v7390_v34 = vld [vmem:[#allocation11 + $0xc18] sm:$0xf]  ;;  %v7135_v24 = vor.u32 %v8523_v16, %v7134_v12  ;;  %4764 = vmatpush.bf16.msrb.mxu0 %v6879_v17  ;;  %v6787_v12 = vor.u32 %v8431_v51, %v6784_v46  ;;  %v8295_v16 = vld [vmem:[#allocation11 + $0x31c] sm:$0xf] }
 0x381   :  { %v8587_v1 = vld [vmem:[#allocation11 + $0xc34] sm:$0xf0]  ;;  %v8359_v37 = vld [vmem:[#allocation11 + $0x51c] sm:$0xf]  ;;  %v6243_v20 = vor.u32 %v8295_v16, %v6240_v55 }
 0x382   :  { %v7646_v39 = vld [vmem:[#allocation11 + $0xe18] sm:$0xf]  ;;  %v7391_v3 = vor.u32 %v8587_v1, %v7390_v34  ;;  %4777 = vmatpush.bf16.msrb.mxu1 %v7135_v24  ;;  %v6496_v34 = vld [vmem:[#allocation11 + $0x538] sm:$0xf0] }
 0x383   :  { %v8651_v48 = vld [vmem:[#allocation11 + $0xe34] sm:$0xf0]  ;;  %4765 = vmatmul.bf16.vlgmr.msrb.gmra.mxu0 %v9454_v7  ;;  %v8423_v1 = vld [vmem:[#allocation11 + $0x71c] sm:$0xf]  ;;  %v6499_v26 = vor.u32 %v8359_v37, %v6496_v34 }
 0x384   :  { %v7647_v63 = vor.u32 %v8651_v48, %v7646_v39  ;;  %4790 = vmatpush.bf16.msrb.mxu2 %v7391_v3  ;;  %4809 = vmatpush.bf16.msra.mxu0 %v6083_v29  ;;  %v6752_v39 = vld [vmem:[#allocation11 + $0x738] sm:$0xf0]  ;;  %v4559_v48 = vadd.f32 %v4558_v49, %v9536_v30 }
 0x385   :  { %4778 = vmatmul.bf16.vlgmr.msrb.gmra.mxu1 %v9456_v8  ;;  %v6755_v17 = vor.u32 %v8423_v1, %v6752_v39  ;;  %v8287_v24 = vld [vmem:[#allocation11 + $0x2dc] sm:$0xf] }
 0x386   :  { %4803 = vmatpush.bf16.msrb.mxu3 %v7647_v63  ;;  %4822 = vmatpush.bf16.msra.mxu1 %v6339_v31  ;;  %v6208_v58 = vld [vmem:[#allocation11 + $0x2f8] sm:$0xf0]  ;;  %v4572_v28 = vadd.f32 %v4571_v2, %v4559_v48  ;;  %v5955_v31 = vor.u32 %v8223_v13, %v5952_v21  ;;  %v4586_v13 = vpop.f32.mrf.mxu2  ;;  %v4599_v21 = vpop.f32.mrf.mxu3 }
 0x387   :  { %4791 = vmatmul.bf16.vlgmr.msrb.gmra.mxu2 %v9460_v11  ;;  %v8351_v27 = vld [vmem:[#allocation11 + $0x4dc] sm:$0xf]  ;;  %v6211_v32 = vor.u32 %v8287_v24, %v6208_v58 }
 0x388   :  { %4835 = vmatpush.bf16.msra.mxu2 %v6595_v35  ;;  %4810 = vmatpush.bf16.msra.mxu0 %v6051_v59  ;;  %v6464_v3 = vld [vmem:[#allocation11 + $0x4f8] sm:$0xf0]  ;;  %v4585_v62 = vadd.f32 %v4584_v56, %v4572_v28 }
 0x389   :  { %4804 = vmatmul.bf16.vlgmr.msrb.gmra.mxu3 %v9458_v10  ;;  %v8415_v63 = vld [vmem:[#allocation11 + $0x6dc] sm:$0xf]  ;;  %v6467_v35 = vor.u32 %v8351_v27, %v6464_v3 }
 0x38a   :  { %4848 = vmatpush.bf16.msra.mxu3 %v6851_v41  ;;  %4823 = vmatpush.bf16.msra.mxu1 %v6307_v61  ;;  %v6720_v29 = vld [vmem:[#allocation11 + $0x6f8] sm:$0xf0]  ;;  %v9543_v9 = vadd.f32 %v4597_v19, %v4585_v62 }
 0x38b   :  { %v8215_v30 = vld [vmem:[#allocation11 + $0x9c] sm:$0xf]  ;;  %v6723_v41 = vor.u32 %v8415_v63, %v6720_v29 }
 0x38c   :  { %4836 = vmatpush.bf16.msra.mxu2 %v6563_v53  ;;  %4811 = vmatpush.bf16.msra.mxu0 %v6019_v6  ;;  %v5920_v57 = vld [vmem:[#allocation11 + $0xb8] sm:$0xf0]  ;;  %v4573_v53 = vpop.f32.mrf.mxu1 }
 0x38d   :  { %v8279_v43 = vld [vmem:[#allocation11 + $0x29c] sm:$0xf] }
 0x38e   :  { %4849 = vmatpush.bf16.msra.mxu3 %v6819_v22  ;;  %4824 = vmatpush.bf16.msra.mxu1 %v6275_v38  ;;  %v6176_v44 = vld [vmem:[#allocation11 + $0x2b8] sm:$0xf0]  ;;  %v5923_v22 = vor.u32 %v8215_v30, %v5920_v57 }
 0x38f   :  { %v8343_v45 = vld [vmem:[#allocation11 + $0x49c] sm:$0xf]  ;;  %v6179_v5 = vor.u32 %v8279_v43, %v6176_v44 }
 0x390   :  { %4837 = vmatpush.bf16.msra.mxu2 %v6531_v15  ;;  %4812 = vmatpush.bf16.msra.mxu0 %v5987_v4  ;;  %v6432_v50 = vld [vmem:[#allocation11 + $0x4b8] sm:$0xf0] }
 0x391   :  { %v8407_v59 = vld [vmem:[#allocation11 + $0x69c] sm:$0xf]  ;;  %v6435_v51 = vor.u32 %v8343_v45, %v6432_v50 }
 0x392   :  { %4850 = vmatpush.bf16.msra.mxu3 %v6787_v12  ;;  %4825 = vmatpush.bf16.msra.mxu1 %v6243_v20  ;;  %v6688_v61 = vld [vmem:[#allocation11 + $0x6b8] sm:$0xf0] }
 0x393   :  { %v8207_v23 = vld [vmem:[#allocation11 + $0x5c] sm:$0xf]  ;;  %v6691_v46 = vor.u32 %v8407_v59, %v6688_v61 }
 0x394   :  { %4838 = vmatpush.bf16.msra.mxu2 %v6499_v26  ;;  %4813 = vmatpush.bf16.msra.mxu0 %v5955_v31  ;;  %v5888_v42 = vld [vmem:[#allocation11 + $0x78] sm:$0xf0] }
 0x395   :  { %v8271_v6 = vld [vmem:[#allocation11 + $0x25c] sm:$0xf]  ;;  %v5891_v55 = vor.u32 %v8207_v23, %v5888_v42 }
 0x396   :  { %4851 = vmatpush.bf16.msra.mxu3 %v6755_v17  ;;  %4826 = vmatpush.bf16.msra.mxu1 %v6211_v32  ;;  %v6144_v38 = vld [vmem:[#allocation11 + $0x278] sm:$0xf0] }
 0x397   :  { %v8335_v36 = vld [vmem:[#allocation11 + $0x45c] sm:$0xf]  ;;  %v6147_v37 = vor.u32 %v8271_v6, %v6144_v38 }
 0x398   :  { %4839 = vmatpush.bf16.msra.mxu2 %v6467_v35  ;;  %v6400_v14 = vld [vmem:[#allocation11 + $0x478] sm:$0xf0]  ;;  %4814 = vmatpush.bf16.msra.mxu0 %v5923_v22 }
 0x399   :  { %v8399_v15 = vld [vmem:[#allocation11 + $0x65c] sm:$0xf]  ;;  %v6403_v49 = vor.u32 %v8335_v36, %v6400_v14 }
 0x39a   :  { %4852 = vmatpush.bf16.msra.mxu3 %v6723_v41  ;;  %v6656_v12 = vld [vmem:[#allocation11 + $0x678] sm:$0xf0]  ;;  %4827 = vmatpush.bf16.msra.mxu1 %v6179_v5 }
 0x39b   :  { %v8199_v16 = vld [vmem:[#allocation11 + $0x1c] sm:$0xf]  ;;  %v6659_v2 = vor.u32 %v8399_v15, %v6656_v12 }
 0x39c   :  { %v5856_v34 = vld [vmem:[#allocation11 + $0x38] sm:$0xf0]  ;;  %4840 = vmatpush.bf16.msra.mxu2 %v6435_v51  ;;  %4815 = vmatpush.bf16.msra.mxu0 %v5891_v55 }
 0x39d   :  { %v8263_v1 = vld [vmem:[#allocation11 + $0x21c] sm:$0xf]  ;;  %v5859_v3 = vor.u32 %v8199_v16, %v5856_v34 }
 0x39e   :  { %v6112_v39 = vld [vmem:[#allocation11 + $0x238] sm:$0xf0]  ;;  %4853 = vmatpush.bf16.msra.mxu3 %v6691_v46  ;;  %4828 = vmatpush.bf16.msra.mxu1 %v6147_v37 }
 0x39f   :  { %v8327_v48 = vld [vmem:[#allocation11 + $0x41c] sm:$0xf]  ;;  %v6115_v63 = vor.u32 %v8263_v1, %v6112_v39 }
 0x3a0   :  { %v6368_v4 = vld [vmem:[#allocation11 + $0x438] sm:$0xf0]  ;;  %4841 = vmatpush.bf16.msra.mxu2 %v6403_v49  ;;  %4816 = vmatpush.bf16.msra.mxu0 %v5859_v3 }
 0x3a1   :  { %v8391_v20 = vld [vmem:[#allocation11 + $0x61c] sm:$0xf]  ;;  %v6371_v30 = vor.u32 %v8327_v48, %v6368_v4  ;;  %v9549_v4 = vpop.f32.mrf.mxu0 }
 0x3a2   :  { %v6624_v26 = vld [vmem:[#allocation11 + $0x638] sm:$0xf0]  ;;  %4854 = vmatpush.bf16.msra.mxu3 %v6659_v2  ;;  %4829 = vmatpush.bf16.msra.mxu1 %v6115_v63 }
 0x3a3   :  { %v8511_v17 = vld [vmem:[#allocation11 + $0x9dc] sm:$0xf]  ;;  %v6627_v57 = vor.u32 %v8391_v20, %v6624_v26  ;;  %4817 = vmatmul.bf16.vlgmr.msra.gmra.mxu0 %v9430_v52 }
 0x3a4   :  { %v7104_v24 = vld [vmem:[#allocation11 + $0x9f8] sm:$0xf0]  ;;  %4842 = vmatpush.bf16.msra.mxu2 %v6371_v30 }
 0x3a5   :  { %v8575_v58 = vld [vmem:[#allocation11 + $0xbdc] sm:$0xf]  ;;  %v7107_v35 = vor.u32 %v8511_v17, %v7104_v24  ;;  %4830 = vmatmul.bf16.vlgmr.msra.gmra.mxu1 %v9432_v54 }
 0x3a6   :  { %v7360_v27 = vld [vmem:[#allocation11 + $0xbf8] sm:$0xf0]  ;;  %4855 = vmatpush.bf16.msra.mxu3 %v6627_v57 }
 0x3a7   :  { %v8639_v28 = vld [vmem:[#allocation11 + $0xddc] sm:$0xf]  ;;  %v7363_v41 = vor.u32 %v8575_v58, %v7360_v27  ;;  %4861 = vmatpush.bf16.msrb.mxu0 %v7107_v35  ;;  %4843 = vmatmul.bf16.vlgmr.msra.gmra.mxu2 %v9434_v18  ;;  %v9551_v18 = vpop.f32.mrf.mxu1 }
 0x3a8   :  { %v7616_v29 = vld [vmem:[#allocation11 + $0xdf8] sm:$0xf0] }
 0x3a9   :  { %v8703_v31 = vld [vmem:[#allocation11 + $0xfdc] sm:$0xf]  ;;  %v7619_v45 = vor.u32 %v8639_v28, %v7616_v29  ;;  %4874 = vmatpush.bf16.msrb.mxu1 %v7363_v41  ;;  %4856 = vmatmul.bf16.vlgmr.msra.gmra.mxu3 %v9436_v33 }
 0x3aa   :  { %v7872_v32 = vld [vmem:[#allocation11 + $0xff8] sm:$0xf0] }
 0x3ab   :  { %v8503_v43 = vld [vmem:[#allocation11 + $0x99c] sm:$0xf]  ;;  %v7875_v56 = vor.u32 %v8703_v31, %v7872_v32  ;;  %4887 = vmatpush.bf16.msrb.mxu2 %v7619_v45  ;;  %v9553_v45 = vpop.f32.mrf.mxu2 }
 0x3ac   :  { %v7072_v44 = vld [vmem:[#allocation11 + $0x9b8] sm:$0xf0] }
 0x3ad   :  { %v8567_v19 = vld [vmem:[#allocation11 + $0xb9c] sm:$0xf]  ;;  %v7075_v53 = vor.u32 %v8503_v43, %v7072_v44  ;;  %4900 = vmatpush.bf16.msrb.mxu3 %v7875_v56  ;;  %v9555_v56 = vpop.f32.mrf.mxu3 }
 0x3ae   :  { %v7328_v50 = vld [vmem:[#allocation11 + $0xbb8] sm:$0xf0] }
 0x3af   :  { %v8631_v59 = vld [vmem:[#allocation11 + $0xd9c] sm:$0xf]  ;;  %v7331_v22 = vor.u32 %v8567_v19, %v7328_v50  ;;  %4862 = vmatpush.bf16.msrb.mxu0 %v7075_v53 }
 0x3b0   :  { %v7584_v61 = vld [vmem:[#allocation11 + $0xdb8] sm:$0xf0] }
 0x3b1   :  { %v8695_v62 = vld [vmem:[#allocation11 + $0xf9c] sm:$0xf]  ;;  %v7587_v42 = vor.u32 %v8631_v59, %v7584_v61  ;;  %4875 = vmatpush.bf16.msrb.mxu1 %v7331_v22  ;;  %v4612_v61 = vpop.f32.mrf.mxu0 }
 0x3b2   :  { %v7840_v0 = vld [vmem:[#allocation11 + $0xfb8] sm:$0xf0] }
 0x3b3   :  { %v8495_v5 = vld [vmem:[#allocation11 + $0x95c] sm:$0xf]  ;;  %v7843_v51 = vor.u32 %v8695_v62, %v7840_v0  ;;  %4888 = vmatpush.bf16.msrb.mxu2 %v7587_v42  ;;  %v4625_v62 = vpop.f32.mrf.mxu1 }
 0x3b4   :  { %v7040_v23 = vld [vmem:[#allocation11 + $0x978] sm:$0xf0] }
 0x3b5   :  { %v8559_v46 = vld [vmem:[#allocation11 + $0xb5c] sm:$0xf]  ;;  %v7043_v12 = vor.u32 %v8495_v5, %v7040_v23  ;;  %4901 = vmatpush.bf16.msrb.mxu3 %v7843_v51 }
 0x3b6   :  { %v7296_v6 = vld [vmem:[#allocation11 + $0xb78] sm:$0xf0] }
 0x3b7   :  { %v8623_v38 = vld [vmem:[#allocation11 + $0xd5c] sm:$0xf]  ;;  %v7299_v16 = vor.u32 %v8559_v46, %v7296_v6  ;;  %4863 = vmatpush.bf16.msrb.mxu0 %v7043_v12 }
 0x3b8   :  { %v7552_v36 = vld [vmem:[#allocation11 + $0xd78] sm:$0xf0] }
 0x3b9   :  { %v8687_v14 = vld [vmem:[#allocation11 + $0xf5c] sm:$0xf]  ;;  %v7555_v34 = vor.u32 %v8623_v38, %v7552_v36  ;;  %4876 = vmatpush.bf16.msrb.mxu1 %v7299_v16 }
 0x3ba   :  { %v7808_v15 = vld [vmem:[#allocation11 + $0xf78] sm:$0xf0] }
 0x3bb   :  { %v8487_v55 = vld [vmem:[#allocation11 + $0x91c] sm:$0xf]  ;;  %v7811_v1 = vor.u32 %v8687_v14, %v7808_v15  ;;  %4889 = vmatpush.bf16.msrb.mxu2 %v7555_v34 }
 0x3bc   :  { %v7008_v37 = vld [vmem:[#allocation11 + $0x938] sm:$0xf0] }
 0x3bd   :  { %v8551_v52 = vld [vmem:[#allocation11 + $0xb1c] sm:$0xf]  ;;  %v7011_v33 = vor.u32 %v8487_v55, %v7008_v37  ;;  %4902 = vmatpush.bf16.msrb.mxu3 %v7811_v1 }
 0x3be   :  { %v7264_v39 = vld [vmem:[#allocation11 + $0xb38] sm:$0xf0] }
 0x3bf   :  { %v8615_v54 = vld [vmem:[#allocation11 + $0xd1c] sm:$0xf]  ;;  %v7267_v20 = vor.u32 %v8551_v52, %v7264_v39  ;;  %4864 = vmatpush.bf16.msrb.mxu0 %v7011_v33 }
 0x3c0   :  { %v7520_v49 = vld [vmem:[#allocation11 + $0xd38] sm:$0xf0] }
 0x3c1   :  { %v8679_v2 = vld [vmem:[#allocation11 + $0xf1c] sm:$0xf]  ;;  %v7523_v26 = vor.u32 %v8615_v54, %v7520_v49  ;;  %4877 = vmatpush.bf16.msrb.mxu1 %v7267_v20  ;;  %v4638_v54 = vpop.f32.mrf.mxu2  ;;  %v4651_v49 = vpop.f32.mrf.mxu3 }
 0x3c2   :  { %v7776_v48 = vld [vmem:[#allocation11 + $0xf38] sm:$0xf0]  ;;  %v8747_v54 = vld [vmem:[#allocation14 + $0x138] sm:$0xff] }
 0x3c3   :  { %v8479_v13 = vld [vmem:[#allocation11 + $0x8dc] sm:$0xf]  ;;  %v7779_v17 = vor.u32 %v8679_v2, %v7776_v48  ;;  %4890 = vmatpush.bf16.msrb.mxu2 %v7523_v26  ;;  %v8755_v49 = vld [vmem:[#allocation14 + $0x178] sm:$0xff] }
 0x3c4   :  { %v6976_v21 = vld [vmem:[#allocation11 + $0x8f8] sm:$0xf0] }
 0x3c5   :  { %v8543_v24 = vld [vmem:[#allocation11 + $0xadc] sm:$0xf]  ;;  %v6979_v29 = vor.u32 %v8479_v13, %v6976_v21  ;;  %4903 = vmatpush.bf16.msrb.mxu3 %v7779_v17  ;;  %v8715_v17 = vld [vmem:[#allocation14 + $0x38] sm:$0xff] }
 0x3c6   :  { %v7232_v58 = vld [vmem:[#allocation11 + $0xaf8] sm:$0xf0] }
 0x3c7   :  { %v8607_v27 = vld [vmem:[#allocation11 + $0xcdc] sm:$0xf]  ;;  %v7235_v31 = vor.u32 %v8543_v24, %v7232_v58  ;;  %4865 = vmatpush.bf16.msrb.mxu0 %v6979_v29  ;;  %v8723_v24 = vld [vmem:[#allocation14 + $0x78] sm:$0xff] }
 0x3c8   :  { %v7488_v28 = vld [vmem:[#allocation11 + $0xcf8] sm:$0xf0]  ;;  %v8731_v58 = vld [vmem:[#allocation14 + $0xb8] sm:$0xff] }
 0x3c9   :  { %v8671_v3 = vld [vmem:[#allocation11 + $0xedc] sm:$0xf]  ;;  %v7491_v57 = vor.u32 %v8607_v27, %v7488_v28  ;;  %4878 = vmatpush.bf16.msrb.mxu1 %v7235_v31  ;;  %v8739_v27 = vld [vmem:[#allocation14 + $0xf8] sm:$0xff]  ;;  %v8713_v31 = vld [vmem:[#allocation14 + $0x28] sm:$0xff]  ;;  %v9567_v61 = vpop.f32.mrf.mxu3 }
 0x3ca   :  { %v7744_v63 = vld [vmem:[#allocation11 + $0xef8] sm:$0xf0] }
 0x3cb   :  { %v8471_v32 = vld [vmem:[#allocation11 + $0x89c] sm:$0xf]  ;;  %v7747_v35 = vor.u32 %v8671_v3, %v7744_v63  ;;  %4891 = vmatpush.bf16.msrb.mxu2 %v7491_v57  ;;  %v8737_v57 = vld [vmem:[#allocation14 + $0xe8] sm:$0xff] }
 0x3cc   :  { %v6944_v30 = vld [vmem:[#allocation11 + $0x8b8] sm:$0xf0] }
 0x3cd   :  { %v8535_v41 = vld [vmem:[#allocation11 + $0xa9c] sm:$0xf]  ;;  %v6947_v0 = vor.u32 %v8471_v32, %v6944_v30  ;;  %4904 = vmatpush.bf16.msrb.mxu3 %v7747_v35  ;;  %v8721_v32 = vld [vmem:[#allocation14 + $0x68] sm:$0xff]  ;;  %v9561_v35 = vpop.f32.mrf.mxu0 }
 0x3ce   :  { %v7200_v43 = vld [vmem:[#allocation11 + $0xab8] sm:$0xf0]  ;;  %v8729_v30 = vld [vmem:[#allocation14 + $0xa8] sm:$0xff] }
 0x3cf   :  { %v8599_v44 = vld [vmem:[#allocation11 + $0xc9c] sm:$0xf]  ;;  %v7203_v53 = vor.u32 %v8535_v41, %v7200_v43  ;;  %4866 = vmatpush.bf16.msrb.mxu0 %v6947_v0  ;;  %v9563_v41 = vpop.f32.mrf.mxu1  ;;  %v8711_v43 = vld [vmem:[#allocation14 + $0x18] sm:$0xff] }
 0x3d0   :  { %v7456_v19 = vld [vmem:[#allocation11 + $0xcb8] sm:$0xf0] }
 0x3d1   :  { %v8663_v50 = vld [vmem:[#allocation11 + $0xe9c] sm:$0xf]  ;;  %v7459_v23 = vor.u32 %v8599_v44, %v7456_v19  ;;  %4879 = vmatpush.bf16.msrb.mxu1 %v7203_v53  ;;  %v8719_v44 = vld [vmem:[#allocation14 + $0x58] sm:$0xff] }
 0x3d2   :  { %v7712_v59 = vld [vmem:[#allocation11 + $0xeb8] sm:$0xf0]  ;;  %v8727_v19 = vld [vmem:[#allocation14 + $0x98] sm:$0xff] }
 0x3d3   :  { %v8463_v22 = vld [vmem:[#allocation11 + $0x85c] sm:$0xf]  ;;  %v7715_v42 = vor.u32 %v8663_v50, %v7712_v59  ;;  %4892 = vmatpush.bf16.msrb.mxu2 %v7459_v23  ;;  %v8735_v50 = vld [vmem:[#allocation14 + $0xd8] sm:$0xff]  ;;  %v9565_v59 = vpop.f32.mrf.mxu2 }
 0x3d4   :  { %v6912_v5 = vld [vmem:[#allocation11 + $0x878] sm:$0xf0] }
 0x3d5   :  { %v8527_v51 = vld [vmem:[#allocation11 + $0xa5c] sm:$0xf]  ;;  %v6915_v15 = vor.u32 %v8463_v22, %v6912_v5  ;;  %4905 = vmatpush.bf16.msrb.mxu3 %v7715_v42  ;;  %v4664_v62 = vpop.f32.mrf.mxu0  ;;  %v8709_v42 = vld [vmem:[#allocation14 + $0x8] sm:$0xff] }
 0x3d6   :  { %v7168_v46 = vld [vmem:[#allocation11 + $0xa78] sm:$0xf0] }
 0x3d7   :  { %v8591_v6 = vld [vmem:[#allocation11 + $0xc5c] sm:$0xf]  ;;  %v7171_v12 = vor.u32 %v8527_v51, %v7168_v46  ;;  %4867 = vmatpush.bf16.msrb.mxu0 %v6915_v15  ;;  %v4677_v0 = vpop.f32.mrf.mxu1  ;;  %v8717_v51 = vld [vmem:[#allocation14 + $0x48] sm:$0xff]  ;;  %v8716_v15 = vld [vmem:[#allocation14 + $0x40] sm:$0xff] }
 0x3d8   :  { %v7424_v38 = vld [vmem:[#allocation11 + $0xc78] sm:$0xf0]  ;;  %v8725_v46 = vld [vmem:[#allocation14 + $0x88] sm:$0xff] }
 0x3d9   :  { %v8655_v36 = vld [vmem:[#allocation11 + $0xe5c] sm:$0xf]  ;;  %v7427_v37 = vor.u32 %v8591_v6, %v7424_v38  ;;  %4880 = vmatpush.bf16.msrb.mxu1 %v7171_v12  ;;  %v8733_v6 = vld [vmem:[#allocation14 + $0xc8] sm:$0xff]  ;;  %v4913_v12 = vmax.f32 %v9485_v25, 0.0 }
 0x3da   :  { %v7680_v14 = vld [vmem:[#allocation11 + $0xe78] sm:$0xf0] }
 0x3db   :  { %v8455_v16 = vld [vmem:[#allocation11 + $0x81c] sm:$0xf]  ;;  %v7683_v34 = vor.u32 %v8655_v36, %v7680_v14  ;;  %4893 = vmatpush.bf16.msrb.mxu2 %v7427_v37  ;;  %v4690_v38 = vpop.f32.mrf.mxu2  ;;  %v4703_v36 = vpop.f32.mrf.mxu3  ;;  %v8708_v14 = vld [vmem:[#allocation14] sm:$0xff] }
 0x3dc   :  { %v6880_v55 = vld [vmem:[#allocation11 + $0x838] sm:$0xf0] }
 0x3dd   :  { %v8519_v1 = vld [vmem:[#allocation11 + $0xa1c] sm:$0xf]  ;;  %v6883_v20 = vor.u32 %v8455_v16, %v6880_v55  ;;  %4906 = vmatpush.bf16.msrb.mxu3 %v7683_v34  ;;  %v4914_v16 = vmax.f32 %v9499_v47, 0.0  ;;  %v9571_v55 = vld [vmem:[#allocation13] sm:$0xff]  ;;  %v8724_v34 = vld [vmem:[#allocation14 + $0x80] sm:$0xff] }
 0x3de   :  { %v7136_v52 = vld [vmem:[#allocation11 + $0xa38] sm:$0xf0]  ;;  %v1510_v37 = vperm.slane %v9571_v55, 5  ;;  %v1511_v0 = vperm.slane %v9571_v55, 6 }
 0x3df   :  { %v8583_v39 = vld [vmem:[#allocation11 + $0xc1c] sm:$0xf]  ;;  %v7139_v13 = vor.u32 %v8519_v1, %v7136_v52  ;;  %4868 = vmatpush.bf16.msrb.mxu0 %v6883_v20  ;;  %v8732_v1 = vld [vmem:[#allocation14 + $0xc0] sm:$0xff]  ;;  %v4915_v52 = vmax.f32 %v9513_v40, 0.0  ;;  %v4922_v25 = vpack.c.bf16 %v4914_v16, %v4914_v16 }
 0x3e0   :  { %v7392_v2 = vld [vmem:[#allocation11 + $0xc38] sm:$0xf0]  ;;  %v4611_v47 = vadd.f32 %v9549_v4, %v1510_v37  ;;  %v8745_v4 = vld [vmem:[#allocation14 + $0x128] sm:$0xff] }
 0x3e1   :  { %v8647_v48 = vld [vmem:[#allocation11 + $0xe1c] sm:$0xf]  ;;  %v7395_v21 = vor.u32 %v8583_v39, %v7392_v2  ;;  %4881 = vmatpush.bf16.msrb.mxu1 %v7139_v13  ;;  %v4916_v39 = vmax.f32 %v9529_v60, 0.0  ;;  %v4921_v2 = vpack.c.bf16 %v4913_v12, %v4913_v12 }
 0x3e2   :  { %v7648_v33 = vld [vmem:[#allocation11 + $0xe38] sm:$0xf0]  ;;  %4869 = vmatmul.bf16.vlgmr.msrb.gmra.mxu0 %v9454_v7  ;;  %v8712_v7 = vld [vmem:[#allocation14 + $0x20] sm:$0xff]  ;;  %v4624_v40 = vadd.f32 %v9551_v18, %v4611_v47 }
 0x3e3   :  { %v7651_v26 = vor.u32 %v8647_v48, %v7648_v33  ;;  %4894 = vmatpush.bf16.msrb.mxu2 %v7395_v21  ;;  %5445 = vmatpush.bf16.msra.mxu0 %v8715_v17  ;;  %v8714_v28 = vld [vmem:[#allocation14 + $0x30] sm:$0xff]  ;;  %v8763_v48 = vld [vmem:[#allocation14 + $0x1b8] sm:$0xff]  ;;  %v4923_v33 = vpack.c.bf16 %v4915_v52, %v4915_v52  ;;  %v4924_v20 = vpack.c.bf16 %v4916_v39, %v4916_v39 }
 0x3e4   :  { %v8722_v3 = vld [vmem:[#allocation14 + $0x70] sm:$0xff]  ;;  %4882 = vmatmul.bf16.vlgmr.msrb.gmra.mxu1 %v9456_v8  ;;  %v8720_v8 = vld [vmem:[#allocation14 + $0x60] sm:$0xff]  ;;  %v4637_v17 = vadd.f32 %v9553_v45, %v4624_v40  ;;  %v4753_v45 = vpop.f32.mrf.mxu3  ;;  %v8771_v39 = vld [vmem:[#allocation14 + $0x1f8] sm:$0xff] }
 0x3e5   :  { %4907 = vmatpush.bf16.msrb.mxu3 %v7651_v26  ;;  %5458 = vmatpush.bf16.msra.mxu1 %v8723_v24  ;;  %v8730_v63 = vld [vmem:[#allocation14 + $0xb0] sm:$0xff]  ;;  %v8753_v26 = vld [vmem:[#allocation14 + $0x168] sm:$0xff]  ;;  %v4714_v24 = vpop.f32.mrf.mxu0 }
 0x3e6   :  { %v8738_v29 = vld [vmem:[#allocation14 + $0xf0] sm:$0xff]  ;;  %4895 = vmatmul.bf16.vlgmr.msrb.gmra.mxu2 %v9460_v11  ;;  %v8728_v11 = vld [vmem:[#allocation14 + $0xa0] sm:$0xff] }
 0x3e7   :  { %5471 = vmatpush.bf16.msra.mxu2 %v8731_v58  ;;  %5446 = vmatpush.bf16.msra.mxu0 %v8714_v28  ;;  %v8710_v53 = vld [vmem:[#allocation14 + $0x10] sm:$0xff]  ;;  %v4727_v58 = vpop.f32.mrf.mxu1  ;;  %v8744_v28 = vld [vmem:[#allocation14 + $0x120] sm:$0xff] }
 0x3e8   :  { %4908 = vmatmul.bf16.vlgmr.msrb.gmra.mxu3 %v9458_v10  ;;  %v8736_v10 = vld [vmem:[#allocation14 + $0xe0] sm:$0xff]  ;;  %v8718_v22 = vld [vmem:[#allocation14 + $0x50] sm:$0xff] }
 0x3e9   :  { %5484 = vmatpush.bf16.msra.mxu3 %v8739_v27  ;;  %5459 = vmatpush.bf16.msra.mxu1 %v8722_v3  ;;  %v8726_v5 = vld [vmem:[#allocation14 + $0x90] sm:$0xff]  ;;  %v8761_v27 = vld [vmem:[#allocation14 + $0x1a8] sm:$0xff]  ;;  %v8752_v3 = vld [vmem:[#allocation14 + $0x160] sm:$0xff] }
 0x3ea   :  { %v8734_v23 = vld [vmem:[#allocation14 + $0xd0] sm:$0xff] }
 0x3eb   :  { %5472 = vmatpush.bf16.msra.mxu2 %v8730_v63  ;;  %5447 = vmatpush.bf16.msra.mxu0 %v8713_v31  ;;  %v8746_v13 = vld [vmem:[#allocation14 + $0x130] sm:$0xff]  ;;  %v4650_v63 = vadd.f32 %v9555_v56, %v4637_v17  ;;  %v8743_v31 = vld [vmem:[#allocation14 + $0x118] sm:$0xff] }
 0x3ec   :  { %v8754_v21 = vld [vmem:[#allocation14 + $0x170] sm:$0xff] }
 0x3ed   :  { %5485 = vmatpush.bf16.msra.mxu3 %v8738_v29  ;;  %5460 = vmatpush.bf16.msra.mxu1 %v8721_v32  ;;  %v8762_v60 = vld [vmem:[#allocation14 + $0x1b0] sm:$0xff]  ;;  %v4663_v18 = vadd.f32 %v9561_v35, %v4650_v63  ;;  %v8760_v29 = vld [vmem:[#allocation14 + $0x1a0] sm:$0xff]  ;;  %v8751_v32 = vld [vmem:[#allocation14 + $0x158] sm:$0xff]  ;;  %v1512_v63 = vperm.slane %v9571_v55, 7 }
 0x3ee   :  { %v8750_v56 = vld [vmem:[#allocation14 + $0x150] sm:$0xff]  ;;  %v8787_v55 = vld [vmem:[#allocation16] ss:$0 sm:$0xff] }
 0x3ef   :  { %5473 = vmatpush.bf16.msra.mxu2 %v8729_v30  ;;  %5448 = vmatpush.bf16.msra.mxu0 %v8712_v7  ;;  %v4740_v30 = vpop.f32.mrf.mxu2  ;;  %v4716_v7 = vpop.f32.mrf.mxu0 }
 0x3f1   :  { %5486 = vmatpush.bf16.msra.mxu3 %v8737_v57  ;;  %5461 = vmatpush.bf16.msra.mxu1 %v8720_v8  ;;  %v4676_v57 = vadd.f32 %v9563_v41, %v4663_v18  ;;  %v4729_v8 = vpop.f32.mrf.mxu1  ;;  %v4755_v41 = vpop.f32.mrf.mxu3 }
 0x3f3   :  { %5474 = vmatpush.bf16.msra.mxu2 %v8728_v11  ;;  %5449 = vmatpush.bf16.msra.mxu0 %v8711_v43  ;;  %v8759_v11 = vld [vmem:[#allocation14 + $0x198] sm:$0xff]  ;;  %v4689_v35 = vadd.f32 %v9565_v59, %v4676_v57  ;;  %v8758_v43 = vld [vmem:[#allocation14 + $0x190] sm:$0xff]  ;;  %v4917_v59 = vmax.f32 %v9543_v9, 0.0 }
 0x3f5   :  { %5487 = vmatpush.bf16.msra.mxu3 %v8736_v10  ;;  %5462 = vmatpush.bf16.msra.mxu1 %v8719_v44  ;;  %v8742_v10 = vld [vmem:[#allocation14 + $0x110] sm:$0xff]  ;;  %v8741_v44 = vld [vmem:[#allocation14 + $0x108] sm:$0xff] }
 0x3f7   :  { %5475 = vmatpush.bf16.msra.mxu2 %v8727_v19  ;;  %5450 = vmatpush.bf16.msra.mxu0 %v8710_v53  ;;  %v8749_v19 = vld [vmem:[#allocation14 + $0x148] sm:$0xff]  ;;  %v4742_v62 = vpop.f32.mrf.mxu2 }
 0x3f8   :  { %v8757_v53 = vld [vmem:[#allocation14 + $0x188] sm:$0xff] }
 0x3f9   :  { %5488 = vmatpush.bf16.msra.mxu3 %v8735_v50  ;;  %5463 = vmatpush.bf16.msra.mxu1 %v8718_v22  ;;  %v4702_v50 = vadd.f32 %v9567_v61, %v4689_v35  ;;  %v8740_v22 = vld [vmem:[#allocation14 + $0x100] sm:$0xff] }
 0x3fb   :  { %5476 = vmatpush.bf16.msra.mxu2 %v8726_v5  ;;  %5451 = vmatpush.bf16.msra.mxu0 %v8709_v42  ;;  %v8748_v5 = vld [vmem:[#allocation14 + $0x140] sm:$0xff]  ;;  %v4715_v42 = vadd.f32 %v4714_v24, %v1511_v0 }
 0x3fd   :  { %5489 = vmatpush.bf16.msra.mxu3 %v8734_v23  ;;  %5464 = vmatpush.bf16.msra.mxu1 %v8717_v51  ;;  %v4918_v23 = vmax.f32 %v4702_v50, 0.0  ;;  %v8756_v51 = vld [vmem:[#allocation14 + $0x180] sm:$0xff] }
 0x3ff   :  { %5477 = vmatpush.bf16.msra.mxu2 %v8725_v46  ;;  %5452 = vmatpush.bf16.msra.mxu0 %v8708_v14  ;;  %v4925_v46 = vpack.c.bf16 %v4917_v59, %v4917_v59  ;;  %v4926_v61 = vpack.c.bf16 %v4918_v23, %v4918_v23 }
 0x400   :  { %v4766_v14 = vpop.f32.mrf.mxu0 }
 0x401   :  { %5490 = vmatpush.bf16.msra.mxu3 %v8733_v6  ;;  %5465 = vmatpush.bf16.msra.mxu1 %v8716_v15  ;;  %v4728_v6 = vadd.f32 %v4727_v58, %v4715_v42 }
 0x402   :  { %5453 = vmatmul.bf16.vlgmr.msra.gmra.mxu0 %v4921_v2  ;;  %v4779_v15 = vpop.f32.mrf.mxu1  ;;  %v8770_v2 = vld [vmem:[#allocation14 + $0x1f0] sm:$0xff] }
 0x403   :  { %5478 = vmatpush.bf16.msra.mxu2 %v8724_v34  ;;  %5497 = vmatpush.bf16.msrb.mxu0 %v8747_v54  ;;  %v4741_v38 = vadd.f32 %v4740_v30, %v4728_v6 }
 0x404   :  { %5466 = vmatmul.bf16.vlgmr.msra.gmra.mxu1 %v4922_v25 }
 0x405   :  { %5491 = vmatpush.bf16.msra.mxu3 %v8732_v1  ;;  %5510 = vmatpush.bf16.msrb.mxu1 %v8755_v49  ;;  %v4754_v36 = vadd.f32 %v4753_v45, %v4741_v38 }
 0x406   :  { %5479 = vmatmul.bf16.vlgmr.msra.gmra.mxu2 %v4923_v33  ;;  %v8769_v33 = vld [vmem:[#allocation14 + $0x1e8] sm:$0xff] }
 0x407   :  { %5523 = vmatpush.bf16.msrb.mxu2 %v8763_v48  ;;  %5498 = vmatpush.bf16.msrb.mxu0 %v8746_v13  ;;  %v4767_v12 = vadd.f32 %v4766_v14, %v4754_v36  ;;  %v8767_v13 = vld [vmem:[#allocation14 + $0x1d8] sm:$0xff] }
 0x408   :  { %5492 = vmatmul.bf16.vlgmr.msra.gmra.mxu3 %v4924_v20  ;;  %v4768_v1 = vpop.f32.mrf.mxu0  ;;  %v8768_v20 = vld [vmem:[#allocation14 + $0x1e0] sm:$0xff] }
 0x409   :  { %5511 = vmatpush.bf16.msrb.mxu1 %v8754_v21  ;;  %v4780_v16 = vadd.f32 %v4779_v15, %v4767_v12  ;;  %5536 = vmatpush.bf16.msrb.mxu3 %v8771_v39 }
 0x40a   :  { %v4792_v37 = vpop.f32.mrf.mxu2  ;;  %v4781_v52 = vpop.f32.mrf.mxu1 }
 0x40b   :  { %5524 = vmatpush.bf16.msrb.mxu2 %v8762_v60  ;;  %5499 = vmatpush.bf16.msrb.mxu0 %v8745_v4  ;;  %v4793_v34 = vadd.f32 %v4792_v37, %v4780_v16  ;;  %v8766_v60 = vld [vmem:[#allocation14 + $0x1d0] sm:$0xff]  ;;  %v8765_v4 = vld [vmem:[#allocation14 + $0x1c8] sm:$0xff] }
 0x40c   :  { %v4805_v9 = vpop.f32.mrf.mxu3 }
 0x40d   :  { %5512 = vmatpush.bf16.msrb.mxu1 %v8753_v26  ;;  %v4806_v54 = vadd.f32 %v4805_v9, %v4793_v34  ;;  %5537 = vmatpush.bf16.msrb.mxu3 %v8770_v2 }
 0x40f   :  { %5525 = vmatpush.bf16.msrb.mxu2 %v8761_v27  ;;  %5500 = vmatpush.bf16.msrb.mxu0 %v8744_v28  ;;  %v4919_v49 = vmax.f32 %v4806_v54, 0.0  ;;  %v8764_v27 = vld [vmem:[#allocation14 + $0x1c0] sm:$0xff] }
 0x411   :  { %5513 = vmatpush.bf16.msrb.mxu1 %v8752_v3  ;;  %v4927_v25 = vpack.c.bf16 %v4919_v49, %v4919_v49  ;;  %5538 = vmatpush.bf16.msrb.mxu3 %v8769_v33 }
 0x412   :  { %v4794_v47 = vpop.f32.mrf.mxu2 }
 0x413   :  { %5526 = vmatpush.bf16.msrb.mxu2 %v8760_v29  ;;  %5501 = vmatpush.bf16.msrb.mxu0 %v8743_v31 }
 0x414   :  { %v4807_v48 = vpop.f32.mrf.mxu3 }
 0x415   :  { %5514 = vmatpush.bf16.msrb.mxu1 %v8751_v32  ;;  %5539 = vmatpush.bf16.msrb.mxu3 %v8768_v20 }
 0x417   :  { %5527 = vmatpush.bf16.msrb.mxu2 %v8759_v11  ;;  %5502 = vmatpush.bf16.msrb.mxu0 %v8742_v10 }
 0x419   :  { %5515 = vmatpush.bf16.msrb.mxu1 %v8750_v56  ;;  %5540 = vmatpush.bf16.msrb.mxu3 %v8767_v13 }
 0x41b   :  { %5528 = vmatpush.bf16.msrb.mxu2 %v8758_v43  ;;  %5503 = vmatpush.bf16.msrb.mxu0 %v8741_v44 }
 0x41d   :  { %5516 = vmatpush.bf16.msrb.mxu1 %v8749_v19  ;;  %5541 = vmatpush.bf16.msrb.mxu3 %v8766_v60 }
 0x41f   :  { %5529 = vmatpush.bf16.msrb.mxu2 %v8757_v53  ;;  %5504 = vmatpush.bf16.msrb.mxu0 %v8740_v22 }
 0x420   :  { %v4818_v21 = vpop.f32.mrf.mxu0 }
 0x421   :  { %5517 = vmatpush.bf16.msrb.mxu1 %v8748_v5  ;;  %5542 = vmatpush.bf16.msrb.mxu3 %v8765_v4  ;;  %v4819_v18 = vadd.f32 %v4818_v21, %v1512_v63 }
 0x422   :  { %5505 = vmatmul.bf16.vlgmr.msrb.gmra.mxu0 %v4925_v46  ;;  %v4831_v40 = vpop.f32.mrf.mxu1 }
 0x423   :  { %5530 = vmatpush.bf16.msrb.mxu2 %v8756_v51  ;;  %v4832_v29 = vadd.f32 %v4831_v40, %v4819_v18 }
 0x424   :  { %5518 = vmatmul.bf16.vlgmr.msrb.gmra.mxu1 %v4926_v61 }
 0x425   :  { %5543 = vmatpush.bf16.msrb.mxu3 %v8764_v27 }
 0x426   :  { %5531 = vmatmul.bf16.vlgmr.msrb.gmra.mxu2 %v4927_v25 }
 0x428   :  { %v4820_v24 = vpop.f32.mrf.mxu0 }
 0x42a   :  { %v4844_v26 = vpop.f32.mrf.mxu2  ;;  %v4833_v58 = vpop.f32.mrf.mxu1 }
 0x42b   :  { %v4845_v31 = vadd.f32 %v4844_v26, %v4832_v29 }
 0x42c   :  { %v4857_v17 = vpop.f32.mrf.mxu3 }
 0x42d   :  { %v4858_v32 = vadd.f32 %v4857_v17, %v4845_v31 }
 0x432   :  { %v4846_v28 = vpop.f32.mrf.mxu2 }
 0x434   :  { %v4859_v3 = vpop.f32.mrf.mxu3 }
 0x45f   :  { %v4870_v30 = vpop.f32.mrf.mxu0 }
 0x460   :  { %v4871_v57 = vadd.f32 %v4870_v30, %v4858_v32 }
 0x461   :  { %v4883_v45 = vpop.f32.mrf.mxu1 }
 0x462   :  { %v4884_v7 = vadd.f32 %v4883_v45, %v4871_v57 }
 0x467   :  { %v4872_v56 = vpop.f32.mrf.mxu0 }
 0x469   :  { %v4896_v8 = vpop.f32.mrf.mxu2  ;;  %v4885_v35 = vpop.f32.mrf.mxu1 }
 0x46a   :  { %v4897_v10 = vadd.f32 %v4896_v8, %v4884_v7 }
 0x46b   :  { %v4909_v11 = vpop.f32.mrf.mxu3 }
 0x46c   :  { %v4910_v43 = vadd.f32 %v4909_v11, %v4897_v10 }
 0x46e   :  { %v4920_v44 = vmax.f32 %v4910_v43, 0.0 }
 0x470   :  { %v4928_v19 = vpack.c.bf16 %v4920_v44, %v4920_v44 }
 0x471   :  { %v4898_v50 = vpop.f32.mrf.mxu2 }
 0x472   :  { %5544 = vmatmul.bf16.vlgmr.msrb.gmra.mxu3 %v4928_v19 }
 0x473   :  { %v4911_v62 = vpop.f32.mrf.mxu3 }
 0x47f   :  { %v5454_v41 = vpop.f32.mrf.mxu0 }
 0x480   :  { %v5455_v53 = vadd.f32 %v8787_v55, %v5454_v41 }
 0x481   :  { %v5467_v0 = vpop.f32.mrf.mxu1 }
 0x482   :  { %v5468_v22 = vadd.f32 %v5467_v0, %v5455_v53 }
 0x487   :  { %v5456_v42 = vpop.f32.mrf.mxu0 }
 0x489   :  { %v5480_v5 = vpop.f32.mrf.mxu2  ;;  %v5469_v51 = vpop.f32.mrf.mxu1 }
 0x48a   :  { %v5481_v23 = vadd.f32 %v5480_v5, %v5468_v22 }
 0x48b   :  { %v5493_v59 = vpop.f32.mrf.mxu3 }
 0x48c   :  { %v5494_v46 = vadd.f32 %v5493_v59, %v5481_v23 }
 0x491   :  { %v5482_v61 = vpop.f32.mrf.mxu2 }
 0x493   :  { %v5495_v6 = vpop.f32.mrf.mxu3 }
 0x49f   :  { %v5506_v38 = vpop.f32.mrf.mxu0 }
 0x4a0   :  { %v5507_v14 = vadd.f32 %v5506_v38, %v5494_v46 }
 0x4a1   :  { %v5519_v36 = vpop.f32.mrf.mxu1 }
 0x4a2   :  { %v5520_v15 = vadd.f32 %v5519_v36, %v5507_v14 }
 0x4a7   :  { %v5508_v12 = vpop.f32.mrf.mxu0 }
 0x4a9   :  { %v5521_v16 = vpop.f32.mrf.mxu1  ;;  %v5532_v37 = vpop.f32.mrf.mxu2 }
 0x4aa   :  { %v5533_v34 = vadd.f32 %v5532_v37, %v5520_v15 }
 0x4b1   :  { %v5534_v9 = vpop.f32.mrf.mxu2 }
 0x4f5   :  { %v5545_v1 = vpop.f32.mrf.mxu3 }
 0x4f6   :  { %v5546_v52 = vadd.f32 %v5545_v1, %v5533_v34 }
 0x4f8   :  { %8806 = vtanh.f32 %v5546_v52 }
 0x4fd   :  { %v5547_v39 = vpop.f32.mrf.mxu3 }
 0x4fe   :  { %v8807_v54 = vpop.eup %8806 }
 0x4ff   :  { %5550 = vst [vmem:[#allocation17] sm:$0xff] %v8807_v54 }
 0x500   :  { %5561 = dma.vmem_to_hbm [thread:$0]  %s5557_s8, 128, %s5559_s30, [#allocation4]  }
 0x501   :  { %9060 = dma.done.wait [#allocation4], 128  }
 0x502   :  { %9061 = vsyncadd [#allocation4], 4294967168 }
 0x503   :  { %5566 = vsyncpa [#allocation3], 1 }
 0x504   :  { %5567 = vsyncpa [#allocation6], 1 }
 0x505   :  { %5568 = vsyncpa [#allocation9], 1 }
 0x506   :  { %5569 = vsyncpa [#allocation12], 1 }
 0x507   :  { %5570 = vsyncpa [#allocation15], 1 }
 0x508   :  { %5571 = vsyncpa [#allocation4], 1 }

</bundles_post_ra>
